<compile_context>
chip_gen: v6e
topology: v6e:2x2x1
jax: 0.10.0
libtpu: 0.0.40
codegen_flags: <defaults>
</compile_context>

<pallas_src>
import jax
import jax.numpy as jnp
from jax.experimental import pallas as pl
from jax.experimental.pallas import tpu as pltpu

_D_IN, _D_H1, _D_H2, _N_CLS = 768, 384, 192, 5
_N_PAD = 128          # lane-dense padded width of the final layer
_NEG_BIG = -1e30      # finite "minus infinity" for padded softmax lanes


def _round_up(n, m):
    return -(-n // m) * m


def _classifier_kernel(x_ref, w1_ref, b1_ref, w2_ref, b2_ref, w3_ref, b3_ref,
                       o_ref):
    x = x_ref[...]                                    # (TILE_B, 768) f32

    # ---- Linear(768, 384) + ReLU (Dropout == identity in eval) ----
    h1 = jnp.dot(x, w1_ref[...].astype(jnp.float32),
                 preferred_element_type=jnp.float32) + b1_ref[...]
    h1 = jnp.maximum(h1, 0.0)

    # ---- Linear(384, 192) + ReLU ----
    h2 = jnp.dot(h1, w2_ref[...].astype(jnp.float32),
                 preferred_element_type=jnp.float32) + b2_ref[...]
    h2 = jnp.maximum(h2, 0.0)

    # ---- Linear(192, 128-padded) ; padded lanes get bias -1e30 ----
    logits = jnp.dot(h2, w3_ref[...].astype(jnp.float32),
                     preferred_element_type=jnp.float32) + b3_ref[...]

    # ---- Softmax over the 128 lanes (padded lanes -> exp underflows to 0,
    #      so the result on the first 5 lanes is identical to softmax over 5).
    m = jnp.max(logits, axis=1, keepdims=True)
    e = jnp.exp(logits - m)
    denom = jnp.sum(e, axis=1, keepdims=True)
    o_ref[...] = e * pl.reciprocal(denom, approx=False)


def nlp_classifier2_head(x, w1, b1, w2, b2, w3, b3, *, tile_b=None):
    """x: (B, 768) f32 embeddings -> (B, 5) f32 softmax probabilities.

    Weights w1/w2/w3 are (in, out) (already transposed vs. torch), bf16 or
    f32; biases are (1, out) f32.
    """
    B = x.shape[0]
    if tile_b is None:
        # 256-row tiles saturate the 2x256x256 MXU on v6e/v7x; use 128 on
        # v5e (pass tile_b=128).  Tiny batches fall back to one 8-aligned tile.
        tile_b = 256 if B >= 256 else (128 if B >= 128 else _round_up(max(B, 8), 8))

    # Pad batch to a multiple of the tile (zero rows; sliced off at the end).
    Bp = _round_up(B, tile_b)
    if Bp != B:
        x = jnp.pad(x, ((0, Bp - B), (0, 0)))

    # Pad the final layer to a lane-dense 128-wide output.
    w3p = jnp.zeros((_D_H2, _N_PAD), w3.dtype).at[:, :_N_CLS].set(w3)
    b3p = jnp.full((1, _N_PAD), _NEG_BIG, jnp.float32).at[:, :_N_CLS].set(
        b3.astype(jnp.float32))

    grid = (Bp // tile_b,)

    param_bytes = (w1.size * w1.dtype.itemsize + w2.size * w2.dtype.itemsize
                   + w3p.size * w3p.dtype.itemsize
                   + (b1.size + b2.size + b3p.size) * 4)
    cost = pl.CostEstimate(
        flops=2 * Bp * (_D_IN * _D_H1 + _D_H1 * _D_H2 + _D_H2 * _N_PAD),
        transcendentals=Bp * _N_PAD,
        bytes_accessed=Bp * _D_IN * 4 + Bp * _N_PAD * 4 + param_bytes,
    )

    out = pl.pallas_call(
        _classifier_kernel,
        out_shape=jax.ShapeDtypeStruct((Bp, _N_PAD), jnp.float32),
        grid=grid,
        in_specs=[
            pl.BlockSpec((tile_b, _D_IN), lambda i: (i, 0)),     # x tile
            pl.BlockSpec((_D_IN, _D_H1), lambda i: (0, 0)),      # w1 (resident)
            pl.BlockSpec((1, _D_H1), lambda i: (0, 0)),          # b1
            pl.BlockSpec((_D_H1, _D_H2), lambda i: (0, 0)),      # w2
            pl.BlockSpec((1, _D_H2), lambda i: (0, 0)),          # b2
            pl.BlockSpec((_D_H2, _N_PAD), lambda i: (0, 0)),     # w3 (padded)
            pl.BlockSpec((1, _N_PAD), lambda i: (0, 0)),         # b3 (padded)
        ],
        out_specs=pl.BlockSpec((tile_b, _N_PAD), lambda i: (i, 0)),
        compiler_params=pltpu.CompilerParams(
            dimension_semantics=("parallel",)),
        cost_estimate=cost,
    )(x, w1, b1, w2, b2, w3p, b3p)

    return out[:B, :_N_CLS]


def init_params(key):
    """Deterministic synthetic parameters (torch Linear init, transposed).

    Weights are stored bf16 (halves HBM weight traffic); biases stay f32.
    """
    ks = jax.random.split(key, 6)

    def lin(kw, kb, fan_in, fan_out):
        bound = 1.0 / (fan_in ** 0.5)
        w = jax.random.uniform(kw, (fan_in, fan_out), jnp.float32, -bound, bound)
        b = jax.random.uniform(kb, (1, fan_out), jnp.float32, -bound, bound)
        return w.astype(jnp.bfloat16), b

    w1, b1 = lin(ks[0], ks[1], _D_IN, _D_H1)
    w2, b2 = lin(ks[2], ks[3], _D_H1, _D_H2)
    w3, b3 = lin(ks[4], ks[5], _D_H2, _N_CLS)
    return w1, b1, w2, b2, w3, b3


def reference(x, w1, b1, w2, b2, w3, b3):
    w1f, w2f, w3f = (w.astype(jnp.float32) for w in (w1, w2, w3))
    h1 = jnp.maximum(x @ w1f + b1, 0.0)
    h2 = jnp.maximum(h1 @ w2f + b2, 0.0)
    return jax.nn.softmax(h2 @ w3f + b3, axis=1)


if __name__ == "__main__":
    key = jax.random.PRNGKey(0)
    k_x, k_p = jax.random.split(key)

    # Small batch of synthetic CLIP ViT-L/14 text embeddings (.float() in the
    # torch forward -> f32).  B=200 is deliberately not a tile multiple to
    # exercise the pad-and-slice path; tile_b=128 exercises a 2-step grid.
    B = 200
    x = jax.random.normal(k_x, (B, _D_IN), dtype=jnp.float32)

    params = init_params(k_p)

    out = nlp_classifier2_head(x, *params, tile_b=128)
    out = jax.block_until_ready(out)

    ref = reference(x, *params)
    assert out.shape == (B, _N_CLS)
    assert jnp.allclose(out, ref, atol=2e-5, rtol=2e-5), (
        float(jnp.max(jnp.abs(out - ref))))
    assert jnp.allclose(jnp.sum(out, axis=1), 1.0, atol=1e-5)

    print("KERNEL_OK")
</pallas_src>

<mosaic_0001>
module attributes {stable_mosaic.version = 11 : i64} {
  func.func @_classifier_kernel(%arg0: i32, %arg1: memref<128x768xf32, #tpu.memory_space<vmem>>, %arg2: memref<768x384xbf16, #tpu.memory_space<vmem>>, %arg3: memref<1x384xf32, #tpu.memory_space<vmem>>, %arg4: memref<384x192xbf16, #tpu.memory_space<vmem>>, %arg5: memref<1x192xf32, #tpu.memory_space<vmem>>, %arg6: memref<192x128xbf16, #tpu.memory_space<vmem>>, %arg7: memref<1x128xf32, #tpu.memory_space<vmem>>, %arg8: memref<128x128xf32, #tpu.memory_space<vmem>>) attributes {dimension_semantics = [#tpu.dimension_semantics<parallel>], iteration_bounds = array<i64: 2>, scalar_prefetch = 0 : i64, scratch_operands = 0 : i64, tpu.core_type = #tpu.core_type<tc>, window_params = [{transform_indices = @transform_0, window_bounds = array<i64: 128, 768>}, {pipeline_mode = #tpu.pipeline_mode<synchronous>, transform_indices = @transform_1, window_bounds = array<i64: 768, 384>}, {pipeline_mode = #tpu.pipeline_mode<synchronous>, transform_indices = @transform_2, window_bounds = array<i64: 1, 384>}, {pipeline_mode = #tpu.pipeline_mode<synchronous>, transform_indices = @transform_3, window_bounds = array<i64: 384, 192>}, {pipeline_mode = #tpu.pipeline_mode<synchronous>, transform_indices = @transform_4, window_bounds = array<i64: 1, 192>}, {pipeline_mode = #tpu.pipeline_mode<synchronous>, transform_indices = @transform_5, window_bounds = array<i64: 192, 128>}, {pipeline_mode = #tpu.pipeline_mode<synchronous>, transform_indices = @transform_6, window_bounds = array<i64: 1, 128>}, {transform_indices = @transform_7, window_bounds = array<i64: 128, 128>}]} {
    %c0 = arith.constant 0 : index
    %c0_0 = arith.constant 0 : index
    %0 = vector.load %arg1[%c0, %c0_0] : memref<128x768xf32, #tpu.memory_space<vmem>>, vector<128x768xf32>
    %c0_1 = arith.constant 0 : index
    %c0_2 = arith.constant 0 : index
    %1 = vector.load %arg2[%c0_1, %c0_2] : memref<768x384xbf16, #tpu.memory_space<vmem>>, vector<768x384xbf16>
    %2 = arith.extf %1 : vector<768x384xbf16> to vector<768x384xf32>
    %cst = arith.constant dense<0.000000e+00> : vector<128x384xf32>
    %3 = tpu.matmul %0, %2, %cst {dimension_numbers = #tpu.dot_dimension_numbers<[1], [0], [0], [1], [0, 0, 1, 1], [], []>} : vector<128x768xf32>, vector<768x384xf32>, vector<128x384xf32> -> vector<128x384xf32>
    %c0_3 = arith.constant 0 : index
    %c0_4 = arith.constant 0 : index
    %4 = vector.load %arg3[%c0_3, %c0_4] : memref<1x384xf32, #tpu.memory_space<vmem>>, vector<1x384xf32>
    %5 = vector.broadcast %4 : vector<1x384xf32> to vector<128x384xf32>
    %6 = arith.addf %3, %5 : vector<128x384xf32>
    %cst_5 = arith.constant 0.000000e+00 : f32
    %7 = vector.broadcast %cst_5 : f32 to vector<128x384xf32>
    %8 = arith.maximumf %6, %7 : vector<128x384xf32>
    %c0_6 = arith.constant 0 : index
    %c0_7 = arith.constant 0 : index
    %9 = vector.load %arg4[%c0_6, %c0_7] : memref<384x192xbf16, #tpu.memory_space<vmem>>, vector<384x192xbf16>
    %10 = arith.extf %9 : vector<384x192xbf16> to vector<384x192xf32>
    %cst_8 = arith.constant dense<0.000000e+00> : vector<128x192xf32>
    %11 = tpu.matmul %8, %10, %cst_8 {dimension_numbers = #tpu.dot_dimension_numbers<[1], [0], [0], [1], [0, 0, 1, 1], [], []>} : vector<128x384xf32>, vector<384x192xf32>, vector<128x192xf32> -> vector<128x192xf32>
    %c0_9 = arith.constant 0 : index
    %c0_10 = arith.constant 0 : index
    %12 = vector.load %arg5[%c0_9, %c0_10] : memref<1x192xf32, #tpu.memory_space<vmem>>, vector<1x192xf32>
    %13 = vector.broadcast %12 : vector<1x192xf32> to vector<128x192xf32>
    %14 = arith.addf %11, %13 : vector<128x192xf32>
    %cst_11 = arith.constant 0.000000e+00 : f32
    %15 = vector.broadcast %cst_11 : f32 to vector<128x192xf32>
    %16 = arith.maximumf %14, %15 : vector<128x192xf32>
    %c0_12 = arith.constant 0 : index
    %c0_13 = arith.constant 0 : index
    %17 = vector.load %arg6[%c0_12, %c0_13] : memref<192x128xbf16, #tpu.memory_space<vmem>>, vector<192x128xbf16>
    %18 = arith.extf %17 : vector<192x128xbf16> to vector<192x128xf32>
    %cst_14 = arith.constant dense<0.000000e+00> : vector<128x128xf32>
    %19 = tpu.matmul %16, %18, %cst_14 {dimension_numbers = #tpu.dot_dimension_numbers<[1], [0], [0], [1], [0, 0, 1, 1], [], []>} : vector<128x192xf32>, vector<192x128xf32>, vector<128x128xf32> -> vector<128x128xf32>
    %c0_15 = arith.constant 0 : index
    %c0_16 = arith.constant 0 : index
    %20 = vector.load %arg7[%c0_15, %c0_16] : memref<1x128xf32, #tpu.memory_space<vmem>>, vector<1x128xf32>
    %21 = vector.broadcast %20 : vector<1x128xf32> to vector<128x128xf32>
    %22 = arith.addf %19, %21 : vector<128x128xf32>
    %cst_17 = arith.constant dense<0xFF800000> : vector<128xf32>
    %23 = vector.multi_reduction <maximumf>, %22, %cst_17 [1] : vector<128x128xf32> to vector<128xf32>
    %24 = vector.shape_cast %23 : vector<128xf32> to vector<128x1xf32>
    %25 = vector.broadcast %24 : vector<128x1xf32> to vector<128x128xf32>
    %26 = arith.subf %22, %25 : vector<128x128xf32>
    %27 = math.exp %26 : vector<128x128xf32>
    %cst_18 = arith.constant dense<0.000000e+00> : vector<128xf32>
    %28 = vector.multi_reduction <add>, %27, %cst_18 [1] : vector<128x128xf32> to vector<128xf32>
    %29 = vector.shape_cast %28 : vector<128xf32> to vector<128x1xf32>
    %30 = tpu.reciprocal %29 : vector<128x1xf32> -> vector<128x1xf32>
    %31 = vector.broadcast %30 : vector<128x1xf32> to vector<128x128xf32>
    %32 = arith.mulf %27, %31 : vector<128x128xf32>
    %c0_19 = arith.constant 0 : index
    %c0_20 = arith.constant 0 : index
    %33 = vector.load %arg8[%c0_19, %c0_20] : memref<128x128xf32, #tpu.memory_space<vmem>>, vector<128x128xf32>
    tpu.vector_store %arg8[%c0_19, %c0_20], %32 {strides = array<i32>} : memref<128x128xf32, #tpu.memory_space<vmem>>, vector<128x128xf32>,
    return
  }
  func.func @transform_0(%arg0: i32) -> (i32, i32) {
    %c0_i32 = arith.constant 0 : i32
    %c0_i32_0 = arith.constant 0 : i32
    return %arg0, %c0_i32 : i32, i32
  }
  func.func @transform_1(%arg0: i32) -> (i32, i32) {
    %c0_i32 = arith.constant 0 : i32
    %c0_i32_0 = arith.constant 0 : i32
    %c0_i32_1 = arith.constant 0 : i32
    return %c0_i32, %c0_i32_0 : i32, i32
  }
  func.func @transform_2(%arg0: i32) -> (i32, i32) {
    %c0_i32 = arith.constant 0 : i32
    %c0_i32_0 = arith.constant 0 : i32
    %c0_i32_1 = arith.constant 0 : i32
    return %c0_i32, %c0_i32_0 : i32, i32
  }
  func.func @transform_3(%arg0: i32) -> (i32, i32) {
    %c0_i32 = arith.constant 0 : i32
    %c0_i32_0 = arith.constant 0 : i32
    %c0_i32_1 = arith.constant 0 : i32
    return %c0_i32, %c0_i32_0 : i32, i32
  }
  func.func @transform_4(%arg0: i32) -> (i32, i32) {
    %c0_i32 = arith.constant 0 : i32
    %c0_i32_0 = arith.constant 0 : i32
    %c0_i32_1 = arith.constant 0 : i32
    return %c0_i32, %c0_i32_0 : i32, i32
  }
  func.func @transform_5(%arg0: i32) -> (i32, i32) {
    %c0_i32 = arith.constant 0 : i32
    %c0_i32_0 = arith.constant 0 : i32
    %c0_i32_1 = arith.constant 0 : i32
    return %c0_i32, %c0_i32_0 : i32, i32
  }
  func.func @transform_6(%arg0: i32) -> (i32, i32) {
    %c0_i32 = arith.constant 0 : i32
    %c0_i32_0 = arith.constant 0 : i32
    %c0_i32_1 = arith.constant 0 : i32
    return %c0_i32, %c0_i32_0 : i32, i32
  }
  func.func @transform_7(%arg0: i32) -> (i32, i32) {
    %c0_i32 = arith.constant 0 : i32
    %c0_i32_0 = arith.constant 0 : i32
    return %arg0, %c0_i32 : i32, i32
  }
}

</mosaic_0001>

<bundles_post_ra>
// kernel: tpu_custom_call.1
= control target key start
LH: loop header
LB: loop body
LE: loop exit
PB: predicated region body
PF: predicated region fallthrough
CT: control target
= control target key end

     0   :  { %s5103_s0 = inlined_call_operand.hbm [shape: f32[256,768], index: 0, kind: input, shape index: {}]   ;;  %s5104_s1 = inlined_call_operand.hbm [shape: bf16[768,384], index: 1, kind: input, shape index: {}]   ;;  %s5105_s2 = inlined_call_operand.vmem [shape: f32[1,384], index: 2, kind: input, shape index: {}]   ;;  %s5106_s3 = inlined_call_operand.vmem [shape: bf16[384,192], index: 3, kind: input, shape index: {}]   ;;  %s5107_s4 = inlined_call_operand.vmem [shape: f32[1,192], index: 4, kind: input, shape index: {}]   ;;  %s5108_s5 = inlined_call_operand.vmem [shape: bf16[192,128], index: 5, kind: input, shape index: {}]   ;;  %s5109_s6 = inlined_call_operand.vmem [shape: f32[1,128], index: 6, kind: input, shape index: {}]   ;;  %s5110_s7 = inlined_call_operand.hbm [shape: f32[256,128], index: 7, kind: output, shape index: {}]  }
   0x1   :  { %5122 = sst [smem:[#allocation29_spill]] %s5104_s1 }
   0x2   :  { %12 = vsyncpa [#allocation3], 0 }
   0x3   :  { %14 = vsyncpa [#allocation3 + $0x1], 0 }
   0x4   :  { %15 = vsyncpa [#allocation6], 0 }
   0x5   :  { %16 = vsyncpa [#allocation4], 0 }
   0x6   :  { %18 = vsyncpa [#allocation4 + $0x1], 0  ;;  %s3640_s24 = smov 0   ;;  %s3642_s25 = smov 0  }
   0x7   :  { %s3644_s26 = smov 0   ;;  %s3646_s27 = smov 0  }
   0x8 LB: > { %s3661_s28 = sadd.s32 4294967295, %s3588_s27   ;;  %s2890_s29 = sadd.s32 4294967294, %s3588_s27   ;;  %s3588_s27 = sphi %s3646_s27, %s5183_s27   ;;  %s3584_s26 = sphi %s3644_s26, %s5182_s26   ;;  %s3580_s25 = sphi %s3642_s25, %s5181_s25   ;;  %s3576_s24 = sphi %s3640_s24, %s5180_s24  }
   0x9   : > { %p44_p0 = scmp.ne.s32.totalorder %s3580_s25, %s3576_s24  ;;  %p5111_p1 = scmp.eq.s32.totalorder %s3661_s28, 0 }
   0xa   : > { %p200_p3 = scmp.eq.s32.totalorder %s2890_s29, 1  ;;  %p2891_p5 = scmp.ge.s32.totalorder %s3588_s27, 1 }
   0xb   : > { %p3670_p4 = por %p5111_p1, %p44_p0  ;;  %p207_p7 = scmp.lt.s32.totalorder %s3588_s27, 3 }
   0xc   : > { %p3675_p6 = por %p200_p3, %p44_p0  ;;  %s3590_s10 = smov [#allocation5]  }
   0xd   : > { %s5123_s30 = scalar_select %p3670_p4, 1, 0 }
   0xe   : > { %s5124_s8 = scalar_select %p3675_p6, 1, 0 }
   0xf   : > { %p3680_p8 = pnand %p2891_p5, %p207_p7  ;;  %s219_s11 = sshll.u32 %s3590_s10, 4  ;;  %s220_s11 = int_to_ptr.vmem [resolvable:$true] %s219_s11 }
  0x10   : > { %s3694_s13 = sadd.s32 1, %s3588_s27   ;;  %s31_s14 = sadd.s32 1, %s3584_s26 }
  0x11   : > { %s5125_s9 = scalar_select %p3680_p8, 1, 0 }
  0x12   : > { %p3297_p9 = pneg %p3680_p8  ;;  %s28_s15 = ssub.s32 %s3588_s27, %s3694_s13 }
  0x13   : > { %s3477_s16 = scalar_lea.vmem %s220_s11, 18432  ;;  %p3485_p5 = scmp.lt.s32.totalorder %s220_s11, %s220_s11 }
  0x14   : > { %p3689_p11 = pnand %p3297_p9, %p5111_p1  ;;  %p3478_p13 = scmp.ne.s32.totalorder %s220_s11, %s3477_s16 }
  0x15   : > { %p3486_p7 = scmp.lt.s32.totalorder %s3477_s16, %s3477_s16 }
  0x16   : > { %p3468_p12 = pneg %p3689_p11 }
  0x17   : > { %p3487_p10 = por %p3486_p7, %p3485_p5 }
  0x18   : > { %p3480_p0 = pnand %p3478_p13, %p3468_p12 }
  0x1a   : > { %p3481_p3 = pneg %p3480_p0 }
  0x1c   : > { %p3488_p2 = pnand %p3487_p10, %p3481_p3 }
  0x1e   : > { %3491 = shalt.err (!%p3488_p2)
}
  0x1f   : > { %s3591_s17 = smov 192   ;;  %s3592_s18 = smov 12  }
  0x20   : > { %s5127_s1 = sld [smem:[#allocation29_spill]]  ;;  %p29_p9 = scmp.eq.s32.totalorder %s28_s15, 0 }
  0x21   : > { %p38_p12 = scmp.ne.s32.totalorder %s3584_s26, %s3580_s25  ;;  %p39_p10 = scmp.eq.s32.totalorder %s3588_s27, 0 }
  0x22   : > { %p3310_p2 = scmp.lt.s32.totalorder %s3588_s27, 2  ;;  %p5128_p0 = scmp.eq.s32.totalorder %s3661_s28, 1 }
  0x23   : > { %s3711_s21 = scalar_select %p29_p9, %s3584_s26, %s31_s14  }
  0x24   : > { %p40_p13 = por %p39_p10, %p38_p12  ;;  %p3715_p3 = por %p5128_p0, %p38_p12 }
  0x25   : > { %s248_s23 = sand.u32 1, %s3584_s26   ;;  %s3287_s29 = smul.u32 12288, %s3588_s27 }
  0x26   : > { %3300 = dma.hbm_to_vmem [thread:$0]  (!%p3689_p11), %s5127_s1, 18432, %s220_s11, [#allocation6], %s3591_s17, %s3591_s17, %s3592_s18  }
  0x27   : > { %s5129_s22 = scalar_select %p3715_p3, 1, 0 }
  0x28   : > { %s3286_s10 = smul.u32 768, %s248_s23  ;;  %s3724_s19 = scalar_lea.hbm %s5103_s0, %s3287_s29 }
  0x29   : > { %p3726_p11 = pnand %p3310_p2, %p40_p13  ;;  %s3732_s17 = scalar_lea.sflag [#allocation3], %s248_s23 }
  0x2a   : > { %s252_s14 = scalar_lea.vmem [#allocation2], %s3286_s10  ;;  %s3492_s18 = scalar_lea.hbm %s3724_s19, 12288 }
  0x2b   : > { %s260_s15 = sshll.u32 %s252_s14, 4  ;;  %p3493_p5 = scmp.ne.s32.totalorder %s3724_s19, %s3492_s18  ;;  %s3730_s15 = int_to_ptr.vmem [resolvable:$true] %s260_s15 }
  0x2c   : > { %p3494_p7 = pneg %p3726_p11  ;;  %s3497_s12 = scalar_lea.hbm %s5103_s0, 24576 }
  0x2d   : > { %p3498_p10 = scmp.lt.s32.totalorder %s3724_s19, %s5103_s0  ;;  %p3499_p2 = scmp.lt.s32.totalorder %s3497_s12, %s3492_s18 }
  0x2e   : > { %p3495_p9 = pnand %p3494_p7, %p3493_p5 }
  0x2f   : > { %p3500_p13 = por %p3499_p2, %p3498_p10 }
  0x30   : > { %p3496_p12 = pneg %p3495_p9 }
  0x32   : > { %p3501_p0 = pnand %p3500_p13, %p3496_p12 }
  0x34   : > { %3504 = shalt.err (!%p3501_p0)
}
  0x35   : > { %s3505_s23 = scalar_lea.vmem %s3730_s15, 12288  ;;  %s3593_s10 = smov [#allocation2]  }
  0x36   : > { %p3506_p1 = scmp.ne.s32.totalorder %s3730_s15, %s3505_s23  ;;  %s3510_s14 = sshll.u32 %s3593_s10, 4  ;;  %s3511_s14 = int_to_ptr.vmem [resolvable:$false] %s3510_s14 }
  0x37   : > { %s3512_s20 = scalar_lea.vmem %s3511_s14, 24576  ;;  %p3513_p9 = scmp.lt.s32.totalorder %s3730_s15, %s3511_s14 }
  0x38   : > { %p3508_p6 = pnand %p3506_p1, %p3494_p7  ;;  %p3514_p3 = scmp.lt.s32.totalorder %s3512_s20, %s3505_s23 }
  0x3a   : > { %p3509_p5 = pneg %p3508_p6  ;;  %p3515_p4 = por %p3514_p3, %p3513_p9 }
  0x3c   : > { %p3516_p8 = pnand %p3515_p4, %p3509_p5 }
  0x3e   : > { %3519 = shalt.err (!%p3516_p8)
}
  0x3f   : > { %s3594_s1 = smov 768   ;;  %s3595_s18 = smov 48  }
  0x40   : > { %3304 = dma.hbm_to_vmem [thread:$0]  (!%p3726_p11), %s3724_s19, 12288, %s3730_s15, %s3732_s17, %s3594_s1, %s3594_s1, %s3595_s18  }
  0x41   : > { %p5131_p1 = scmp.ne.s32.totalorder %s5125_s9, 0 }
  0x43   : > { %272 = sbr.rel (%p5131_p1) target bundleno = 1336 (0x538), region = 48 }
  0x48   : > { %s3756_s29 = sand.u32 1, %s3580_s25   ;;  %p5132_p4 = scmp.ne.s32.totalorder %s5123_s30, 0 }
  0x49   : > { %s3288_s12 = smul.u32 768, %s3756_s29  ;;  %s275_s16 = scalar_lea.sflag [#allocation3], %s3756_s29 }
  0x4b   : > { %s3760_s23 = scalar_lea.vmem [#allocation2], %s3288_s12 }
  0x4c   : > { %3563 = dma.done.wait (%p5132_p4), %s275_s16, 12288  }
  0x4d   : > { %3565 = vsyncadd (%p5132_p4), %s275_s16, 4294955008  ;;  %p5133_p6 = scmp.eq.s32.totalorder %s3661_s28, 0 }
  0x4f   : > { %3567 = dma.done.wait (%p5133_p6), [#allocation6], 18432   ;;  %p5134_p8 = pmov %p5133_p6 }
  0x50   : > { %v441_v0 = vld [vmem:[#allocation5 + $0xb4] sm:$0xff]  ;;  %v439_v2 = vld [vmem:[#allocation5 + $0xa8] sm:$0xff]  ;;  %v437_v8 = vld [vmem:[#allocation5 + $0x9c] sm:$0xff]  ;;  %vm2439_vm0 = vcmask 523264   ;;  %s2899_s10 = sshll.u32 %s3756_s29, 7  ;;  %s2922_s20 = sshll.u32 %s3661_s28, 11 }
  0x51   : > { %3569 = vsyncadd (%p5134_p8), [#allocation6], 4294948864  ;;  %v505_v1 = vld [vmem:[#allocation5 + $0x234] sm:$0xff]  ;;  %v649_v3 = vunpack.c.h.bf16 %v441_v0  ;;  %v648_v5 = vunpack.c.l.bf16 %v441_v0  ;;  %v503_v7 = vld [vmem:[#allocation5 + $0x228] sm:$0xff]  ;;  %v646_v10 = vunpack.c.h.bf16 %v439_v2  ;;  %v645_v12 = vunpack.c.l.bf16 %v439_v2  ;;  %s5020_s14 = scalar_lea.vmem [#allocation7], %s2899_s10  ;;  %s5056_s12 = scalar_lea.hbm %s5110_s7, %s2922_s20 }
  0x52   : > { %v745_v4 = vunpack.c.h.bf16 %v505_v1  ;;  %v744_v6 = vunpack.c.l.bf16 %v505_v1  ;;  %v501_v9 = vld [vmem:[#allocation5 + $0x21c] sm:$0xff]  ;;  %v742_v11 = vunpack.c.h.bf16 %v503_v7  ;;  %v741_v13 = vunpack.c.l.bf16 %v503_v7  ;;  %v435_v14 = vld [vmem:[#allocation5 + $0x90] sm:$0xff]  ;;  %v433_v20 = vld [vmem:[#allocation5 + $0x84] sm:$0xff]  ;;  %s2807_s1 = sshll.u32 %s5020_s14, 4  ;;  %s2794_s16 = scalar_lea.sflag [#allocation4], %s3756_s29  ;;  %s5058_s1 = int_to_ptr.vmem [resolvable:$true] %s2807_s1 }
  0x53   : > { %v499_v15 = vld [vmem:[#allocation5 + $0x210] sm:$0xff]  ;;  %908 = vmatprep.subr.mxu0 %v649_v3  ;;  %v643_v16 = vunpack.c.h.bf16 %v437_v8  ;;  %v739_v17 = vunpack.c.h.bf16 %v501_v9  ;;  %v642_v18 = vunpack.c.l.bf16 %v437_v8  ;;  %v738_v19 = vunpack.c.l.bf16 %v501_v9  ;;  %v497_v21 = vld [vmem:[#allocation5 + $0x204] sm:$0xff]  ;;  %v431_v26 = vld [vmem:[#allocation5 + $0x78] sm:$0xff]  ;;  %s3520_s30 = scalar_lea.vmem %s5058_s1, 2048  ;;  %p5177_p11 = scmp.ne.s32.totalorder %s5129_s22, 0 }
  0x54   : > { %1069 = vmatprep.subr.mxu1 %v745_v4  ;;  %909 = vmatpush1.msra.mxu0 %v648_v5  ;;  %v640_v22 = vunpack.c.h.bf16 %v435_v14  ;;  %v736_v23 = vunpack.c.h.bf16 %v499_v15  ;;  %v639_v24 = vunpack.c.l.bf16 %v435_v14  ;;  %v735_v25 = vunpack.c.l.bf16 %v499_v15  ;;  %v495_v27 = vld [vmem:[#allocation5 + $0x1f8] sm:$0xff]  ;;  %v429_v32 = vld [vmem:[#allocation5 + $0x6c] sm:$0xff]  ;;  %v427_v38 = vld [vmem:[#allocation5 + $0x60] sm:$0xff]  ;;  %p3521_p3 = scmp.ne.s32.totalorder %s5058_s1, %s3520_s30  ;;  %s3597_s28 = smov [#allocation7]  }
  0x55   : > { %1070 = vmatpush1.msra.mxu1 %v744_v6  ;;  %910 = vmatprep.subr.mxu0 %v646_v10  ;;  %v637_v28 = vunpack.c.h.bf16 %v433_v20  ;;  %v733_v29 = vunpack.c.h.bf16 %v497_v21  ;;  %v636_v30 = vunpack.c.l.bf16 %v433_v20  ;;  %v732_v31 = vunpack.c.l.bf16 %v497_v21  ;;  %v493_v33 = vld [vmem:[#allocation5 + $0x1ec] sm:$0xff]  ;;  %v491_v39 = vld [vmem:[#allocation5 + $0x1e0] sm:$0xff]  ;;  %v425_v44 = vld [vmem:[#allocation5 + $0x54] sm:$0xff]  ;;  %s3524_s9 = sshll.u32 %s3597_s28, 4  ;;  %s3525_s9 = int_to_ptr.vmem [resolvable:$false] %s3524_s9 }
  0x56   : > { %1071 = vmatprep.subr.mxu1 %v742_v11  ;;  %911 = vmatpush1.msra.mxu0 %v645_v12  ;;  %v634_v34 = vunpack.c.h.bf16 %v431_v26  ;;  %v730_v35 = vunpack.c.h.bf16 %v495_v27  ;;  %v633_v36 = vunpack.c.l.bf16 %v431_v26  ;;  %v729_v37 = vunpack.c.l.bf16 %v495_v27  ;;  %v489_v45 = vld [vmem:[#allocation5 + $0x1d4] sm:$0xff]  ;;  %v423_v50 = vld [vmem:[#allocation5 + $0x48] sm:$0xff]  ;;  %v421_v56 = vld [vmem:[#allocation5 + $0x3c] sm:$0xff]  ;;  %p3522_p7 = pnand %p3521_p3, %p5177_p11  ;;  %s3526_s19 = scalar_lea.vmem %s3525_s9, 4096 }
  0x57   : > { %1072 = vmatpush1.msra.mxu1 %v741_v13  ;;  %912 = vmatprep.subr.mxu0 %v643_v16  ;;  %v631_v40 = vunpack.c.h.bf16 %v429_v32  ;;  %v727_v41 = vunpack.c.h.bf16 %v493_v33  ;;  %v630_v42 = vunpack.c.l.bf16 %v429_v32  ;;  %v726_v43 = vunpack.c.l.bf16 %v493_v33  ;;  %v487_v51 = vld [vmem:[#allocation5 + $0x1c8] sm:$0xff]  ;;  %v485_v57 = vld [vmem:[#allocation5 + $0x1bc] sm:$0xff]  ;;  %v419_v62 = vld [vmem:[#allocation5 + $0x30] sm:$0xff]  ;;  %p3527_p10 = scmp.lt.s32.totalorder %s5058_s1, %s3525_s9  ;;  %p3528_p2 = scmp.lt.s32.totalorder %s3526_s19, %s3520_s30 }
  0x58   : > { %1073 = vmatprep.subr.mxu1 %v739_v17  ;;  %913 = vmatpush1.msra.mxu0 %v642_v18  ;;  %v628_v46 = vunpack.c.h.bf16 %v427_v38  ;;  %v724_v47 = vunpack.c.h.bf16 %v491_v39  ;;  %v627_v48 = vunpack.c.l.bf16 %v427_v38  ;;  %v723_v49 = vunpack.c.l.bf16 %v491_v39  ;;  %v483_v63 = vld [vmem:[#allocation5 + $0x1b0] sm:$0xff]  ;;  %v417_v4 = vld [vmem:[#allocation5 + $0x24] sm:$0xff]  ;;  %v415_v10 = vld [vmem:[#allocation5 + $0x18] sm:$0xff]  ;;  %p3523_p12 = pneg %p3522_p7 }
  0x59   : > { %1074 = vmatpush1.msra.mxu1 %v738_v19  ;;  %914 = vmatprep.subr.mxu0 %v640_v22  ;;  %v625_v52 = vunpack.c.h.bf16 %v425_v44  ;;  %v721_v53 = vunpack.c.h.bf16 %v489_v45  ;;  %v624_v54 = vunpack.c.l.bf16 %v425_v44  ;;  %v720_v55 = vunpack.c.l.bf16 %v489_v45  ;;  %v481_v5 = vld [vmem:[#allocation5 + $0x1a4] sm:$0xff]  ;;  %v479_v11 = vld [vmem:[#allocation5 + $0x198] sm:$0xff]  ;;  %v413_v16 = vld [vmem:[#allocation5 + $0xc] sm:$0xff]  ;;  %p3529_p13 = por %p3528_p2, %p3527_p10 }
  0x5a   : > { %1075 = vmatprep.subr.mxu1 %v736_v23  ;;  %915 = vmatpush1.msra.mxu0 %v639_v24  ;;  %v622_v58 = vunpack.c.h.bf16 %v423_v50  ;;  %v718_v59 = vunpack.c.h.bf16 %v487_v51  ;;  %v621_v60 = vunpack.c.l.bf16 %v423_v50  ;;  %v717_v61 = vunpack.c.l.bf16 %v487_v51  ;;  %v477_v17 = vld [vmem:[#allocation5 + $0x18c] sm:$0xff]  ;;  %v411_v22 = vld [vmem:[#allocation5] sm:$0xff] }
  0x5b   : > { %1076 = vmatpush1.msra.mxu1 %v735_v25  ;;  %916 = vmatprep.subr.mxu0 %v637_v28  ;;  %v619_v0 = vunpack.c.h.bf16 %v421_v56  ;;  %v715_v1 = vunpack.c.h.bf16 %v485_v57  ;;  %v618_v2 = vunpack.c.l.bf16 %v421_v56  ;;  %v714_v3 = vunpack.c.l.bf16 %v485_v57  ;;  %v475_v23 = vld [vmem:[#allocation5 + $0x180] sm:$0xff]  ;;  %v473_v28 = vld [vmem:[#allocation5 + $0x174] sm:$0xff]  ;;  %p3530_p0 = pnand %p3529_p13, %p3523_p12 }
  0x5c   : > { %1077 = vmatprep.subr.mxu1 %v733_v29  ;;  %917 = vmatpush1.msra.mxu0 %v636_v30  ;;  %v616_v6 = vunpack.c.h.bf16 %v419_v62  ;;  %v712_v7 = vunpack.c.h.bf16 %v483_v63  ;;  %v615_v8 = vunpack.c.l.bf16 %v419_v62  ;;  %v711_v9 = vunpack.c.l.bf16 %v483_v63  ;;  %v537_v29 = vld [vmem:[#allocation5 + $0x2f4] sm:$0xff] }
  0x5d   : > { %1078 = vmatpush1.msra.mxu1 %v732_v31  ;;  %918 = vmatprep.subr.mxu0 %v634_v34  ;;  %v613_v12 = vunpack.c.h.bf16 %v417_v4  ;;  %v709_v13 = vunpack.c.h.bf16 %v481_v5  ;;  %v612_v14 = vunpack.c.l.bf16 %v417_v4  ;;  %v708_v15 = vunpack.c.l.bf16 %v481_v5  ;;  %v471_v34 = vld [vmem:[#allocation5 + $0x168] sm:$0xff] }
  0x5e   : > { %1079 = vmatprep.subr.mxu1 %v730_v35  ;;  %919 = vmatpush1.msra.mxu0 %v633_v36  ;;  %v610_v18 = vunpack.c.h.bf16 %v415_v10  ;;  %v706_v19 = vunpack.c.h.bf16 %v479_v11  ;;  %v609_v20 = vunpack.c.l.bf16 %v415_v10  ;;  %v705_v21 = vunpack.c.l.bf16 %v479_v11  ;;  %v535_v35 = vld [vmem:[#allocation5 + $0x2e8] sm:$0xff] }
  0x5f   : > { %1080 = vmatpush1.msra.mxu1 %v729_v37  ;;  %920 = vmatprep.subr.mxu0 %v631_v40  ;;  %v607_v24 = vunpack.c.h.bf16 %v413_v16  ;;  %v703_v25 = vunpack.c.h.bf16 %v477_v17  ;;  %v606_v26 = vunpack.c.l.bf16 %v413_v16  ;;  %v702_v27 = vunpack.c.l.bf16 %v477_v17  ;;  %v469_v40 = vld [vmem:[#allocation5 + $0x15c] sm:$0xff] }
  0x60   : > { %1081 = vmatprep.subr.mxu1 %v727_v41  ;;  %921 = vmatpush1.msra.mxu0 %v630_v42  ;;  %v604_v30 = vunpack.c.h.bf16 %v411_v22  ;;  %v700_v31 = vunpack.c.h.bf16 %v475_v23  ;;  %v603_v32 = vunpack.c.l.bf16 %v411_v22  ;;  %v699_v33 = vunpack.c.l.bf16 %v475_v23  ;;  %v533_v41 = vld [vmem:[#allocation5 + $0x2dc] sm:$0xff] }
  0x61   : > { %1082 = vmatpush1.msra.mxu1 %v726_v43  ;;  %922 = vmatprep.subr.mxu0 %v628_v46  ;;  %v697_v36 = vunpack.c.h.bf16 %v473_v28  ;;  %v793_v37 = vunpack.c.h.bf16 %v537_v29  ;;  %v696_v38 = vunpack.c.l.bf16 %v473_v28  ;;  %v792_v39 = vunpack.c.l.bf16 %v537_v29  ;;  %v467_v46 = vld [vmem:[#allocation5 + $0x150] sm:$0xff] }
  0x62   : > { %1083 = vmatprep.subr.mxu1 %v724_v47  ;;  %923 = vmatpush1.msra.mxu0 %v627_v48  ;;  %v694_v42 = vunpack.c.h.bf16 %v471_v34  ;;  %v790_v43 = vunpack.c.h.bf16 %v535_v35  ;;  %v693_v44 = vunpack.c.l.bf16 %v471_v34  ;;  %v789_v45 = vunpack.c.l.bf16 %v535_v35  ;;  %v531_v47 = vld [vmem:[#allocation5 + $0x2d0] sm:$0xff] }
  0x63   : > { %1084 = vmatpush1.msra.mxu1 %v723_v49  ;;  %924 = vmatprep.subr.mxu0 %v625_v52  ;;  %v691_v48 = vunpack.c.h.bf16 %v469_v40  ;;  %v787_v49 = vunpack.c.h.bf16 %v533_v41  ;;  %v690_v50 = vunpack.c.l.bf16 %v469_v40  ;;  %v786_v51 = vunpack.c.l.bf16 %v533_v41  ;;  %v465_v52 = vld [vmem:[#allocation5 + $0x144] sm:$0xff] }
  0x64   : > { %1085 = vmatprep.subr.mxu1 %v721_v53  ;;  %925 = vmatpush1.msra.mxu0 %v624_v54  ;;  %v529_v53 = vld [vmem:[#allocation5 + $0x2c4] sm:$0xff]  ;;  %v688_v54 = vunpack.c.h.bf16 %v467_v46  ;;  %v687_v56 = vunpack.c.l.bf16 %v467_v46  ;;  %v783_v57 = vunpack.c.l.bf16 %v531_v47  ;;  %v684_v62 = vunpack.c.l.bf16 %v465_v52 }
  0x65   : > { %1086 = vmatpush1.msra.mxu1 %v720_v55  ;;  %926 = vmatprep.subr.mxu0 %v622_v58  ;;  %v784_v55 = vunpack.c.h.bf16 %v531_v47  ;;  %v463_v58 = vld [vmem:[#allocation5 + $0x138] sm:$0xff]  ;;  %v780_v63 = vunpack.c.l.bf16 %v529_v53 }
  0x66   : > { %1087 = vmatprep.subr.mxu1 %v718_v59  ;;  %927 = vmatpush1.msra.mxu0 %v621_v60  ;;  %v527_v59 = vld [vmem:[#allocation5 + $0x2b8] sm:$0xff]  ;;  %v685_v60 = vunpack.c.h.bf16 %v465_v52  ;;  %v681_v4 = vunpack.c.l.bf16 %v463_v58 }
  0x67   : > { %1088 = vmatpush1.msra.mxu1 %v717_v61  ;;  %928 = vmatprep.subr.mxu0 %v619_v0  ;;  %v781_v61 = vunpack.c.h.bf16 %v529_v53  ;;  %v461_v0 = vld [vmem:[#allocation5 + $0x12c] sm:$0xff]  ;;  %v777_v5 = vunpack.c.l.bf16 %v527_v59 }
  0x68   : > { %1089 = vmatprep.subr.mxu1 %v715_v1  ;;  %929 = vmatpush1.msra.mxu0 %v618_v2  ;;  %v525_v1 = vld [vmem:[#allocation5 + $0x2ac] sm:$0xff]  ;;  %v682_v2 = vunpack.c.h.bf16 %v463_v58  ;;  %v678_v10 = vunpack.c.l.bf16 %v461_v0 }
  0x69   : > { %1090 = vmatpush1.msra.mxu1 %v714_v3  ;;  %930 = vmatprep.subr.mxu0 %v616_v6  ;;  %v778_v3 = vunpack.c.h.bf16 %v527_v59  ;;  %v459_v6 = vld [vmem:[#allocation5 + $0x120] sm:$0xff]  ;;  %v774_v11 = vunpack.c.l.bf16 %v525_v1 }
  0x6a   : > { %1091 = vmatprep.subr.mxu1 %v712_v7  ;;  %931 = vmatpush1.msra.mxu0 %v615_v8  ;;  %v523_v7 = vld [vmem:[#allocation5 + $0x2a0] sm:$0xff]  ;;  %v679_v8 = vunpack.c.h.bf16 %v461_v0  ;;  %v675_v16 = vunpack.c.l.bf16 %v459_v6  ;;  %v316_v0 = vld [vmem:[%s3760_s23 + $0x8] sm:$0xff] }
  0x6b   : > { %1092 = vmatpush1.msra.mxu1 %v711_v9  ;;  %932 = vmatprep.subr.mxu0 %v613_v12  ;;  %v775_v9 = vunpack.c.h.bf16 %v525_v1  ;;  %v457_v12 = vld [vmem:[#allocation5 + $0x114] sm:$0xff]  ;;  %v771_v17 = vunpack.c.l.bf16 %v523_v7 }
  0x6c   : > { %1093 = vmatprep.subr.mxu1 %v709_v13  ;;  %933 = vmatpush1.msra.mxu0 %v612_v14  ;;  %v521_v13 = vld [vmem:[#allocation5 + $0x294] sm:$0xff]  ;;  %v676_v14 = vunpack.c.h.bf16 %v459_v6  ;;  %v672_v22 = vunpack.c.l.bf16 %v457_v12 }
  0x6d   : > { %1094 = vmatpush1.msra.mxu1 %v708_v15  ;;  %934 = vmatprep.subr.mxu0 %v610_v18  ;;  %v772_v15 = vunpack.c.h.bf16 %v523_v7  ;;  %v455_v18 = vld [vmem:[#allocation5 + $0x108] sm:$0xff]  ;;  %v768_v23 = vunpack.c.l.bf16 %v521_v13 }
  0x6e   : > { %1095 = vmatprep.subr.mxu1 %v706_v19  ;;  %935 = vmatpush1.msra.mxu0 %v609_v20  ;;  %v519_v19 = vld [vmem:[#allocation5 + $0x288] sm:$0xff]  ;;  %v673_v20 = vunpack.c.h.bf16 %v457_v12  ;;  %v669_v28 = vunpack.c.l.bf16 %v455_v18 }
  0x6f   : > { %1096 = vmatpush1.msra.mxu1 %v705_v21  ;;  %936 = vmatprep.subr.mxu0 %v607_v24  ;;  %v769_v21 = vunpack.c.h.bf16 %v521_v13  ;;  %v453_v24 = vld [vmem:[#allocation5 + $0xfc] sm:$0xff]  ;;  %v765_v29 = vunpack.c.l.bf16 %v519_v19  ;;  %v324_v12 = vld [vmem:[%s3760_s23 + $0x48] sm:$0xff]  ;;  %v563_v13 = vld [vmem:[#allocation5 + $0x390] sm:$0xff] }
  0x70   : > { %1097 = vmatprep.subr.mxu1 %v703_v25  ;;  %937 = vmatpush1.msra.mxu0 %v606_v26  ;;  %v517_v25 = vld [vmem:[#allocation5 + $0x27c] sm:$0xff]  ;;  %v670_v26 = vunpack.c.h.bf16 %v455_v18  ;;  %v666_v34 = vunpack.c.l.bf16 %v453_v24  ;;  %v832_v18 = vunpack.c.h.bf16 %v563_v13 }
  0x71   : > { %1098 = vmatpush1.msra.mxu1 %v702_v27  ;;  %938 = vmatprep.subr.mxu0 %v604_v30  ;;  %v766_v27 = vunpack.c.h.bf16 %v519_v19  ;;  %v451_v30 = vld [vmem:[#allocation5 + $0xf0] sm:$0xff]  ;;  %v762_v35 = vunpack.c.l.bf16 %v517_v25  ;;  %v561_v19 = vld [vmem:[#allocation5 + $0x384] sm:$0xff] }
  0x72   : > { %1099 = vmatprep.subr.mxu1 %v700_v31  ;;  %939 = vmatpush1.msra.mxu0 %v603_v32  ;;  %v515_v31 = vld [vmem:[#allocation5 + $0x270] sm:$0xff]  ;;  %v667_v32 = vunpack.c.h.bf16 %v453_v24  ;;  %v663_v40 = vunpack.c.l.bf16 %v451_v30  ;;  %v327_v24 = vld [vmem:[%s3760_s23 + $0x60] sm:$0xff] }
  0x73   : > { %1100 = vmatpush1.msra.mxu1 %v699_v33  ;;  %940 = vmatprep.subr.mxu0 %v697_v36  ;;  %v763_v33 = vunpack.c.h.bf16 %v517_v25  ;;  %v449_v36 = vld [vmem:[#allocation5 + $0xe4] sm:$0xff]  ;;  %v759_v41 = vunpack.c.l.bf16 %v515_v31  ;;  %v329_v25 = vld [vmem:[%s3760_s23 + $0x70] sm:$0xff] }
  0x74   : > { %1101 = vmatprep.subr.mxu1 %v793_v37  ;;  %941 = vmatpush2.msra.mxu0 %v696_v38  ;;  %v513_v37 = vld [vmem:[#allocation5 + $0x264] sm:$0xff]  ;;  %v664_v38 = vunpack.c.h.bf16 %v451_v30  ;;  %v660_v46 = vunpack.c.l.bf16 %v449_v36 }
  0x75   : > { %1102 = vmatpush2.msra.mxu1 %v792_v39  ;;  %942 = vmatprep.subr.mxu0 %v694_v42  ;;  %v760_v39 = vunpack.c.h.bf16 %v515_v31  ;;  %v447_v42 = vld [vmem:[#allocation5 + $0xd8] sm:$0xff]  ;;  %v756_v47 = vunpack.c.l.bf16 %v513_v37 }
  0x76   : > { %1103 = vmatprep.subr.mxu1 %v790_v43  ;;  %943 = vmatpush2.msra.mxu0 %v693_v44  ;;  %v511_v43 = vld [vmem:[#allocation5 + $0x258] sm:$0xff]  ;;  %v661_v44 = vunpack.c.h.bf16 %v449_v36  ;;  %v657_v52 = vunpack.c.l.bf16 %v447_v42 }
  0x77   : > { %1104 = vmatpush2.msra.mxu1 %v789_v45  ;;  %944 = vmatprep.subr.mxu0 %v691_v48  ;;  %v757_v45 = vunpack.c.h.bf16 %v513_v37  ;;  %v445_v48 = vld [vmem:[#allocation5 + $0xcc] sm:$0xff]  ;;  %v753_v53 = vunpack.c.l.bf16 %v511_v43  ;;  %v334_v31 = vld [vmem:[%s3760_s23 + $0x98] sm:$0xff] }
  0x78   : > { %1105 = vmatprep.subr.mxu1 %v787_v49  ;;  %945 = vmatpush2.msra.mxu0 %v690_v50  ;;  %v509_v49 = vld [vmem:[#allocation5 + $0x24c] sm:$0xff]  ;;  %v658_v50 = vunpack.c.h.bf16 %v447_v42  ;;  %v654_v58 = vunpack.c.l.bf16 %v445_v48  ;;  %v342_v42 = vld [vmem:[%s3760_s23 + $0xd8] sm:$0xff] }
  0x79   : > { %1106 = vmatpush2.msra.mxu1 %v786_v51  ;;  %946 = vmatprep.subr.mxu0 %v688_v54  ;;  %v754_v51 = vunpack.c.h.bf16 %v511_v43  ;;  %v443_v54 = vld [vmem:[#allocation5 + $0xc0] sm:$0xff]  ;;  %v750_v59 = vunpack.c.l.bf16 %v509_v49  ;;  %v551_v43 = vld [vmem:[#allocation5 + $0x348] sm:$0xff] }
  0x7a   : > { %1107 = vmatprep.subr.mxu1 %v784_v55  ;;  %947 = vmatpush2.msra.mxu0 %v687_v56  ;;  %v507_v55 = vld [vmem:[#allocation5 + $0x240] sm:$0xff]  ;;  %v655_v56 = vunpack.c.h.bf16 %v445_v48  ;;  %v814_v48 = vunpack.c.h.bf16 %v551_v43 }
  0x7b   : > { %1108 = vmatpush2.msra.mxu1 %v783_v57  ;;  %948 = vmatprep.subr.mxu0 %v685_v60  ;;  %v751_v57 = vunpack.c.h.bf16 %v509_v49  ;;  %v652_v60 = vunpack.c.h.bf16 %v443_v54  ;;  %v747_v1 = vunpack.c.l.bf16 %v507_v55  ;;  %v549_v49 = vld [vmem:[#allocation5 + $0x33c] sm:$0xff] }
  0x7c   : > { %1109 = vmatprep.subr.mxu1 %v781_v61  ;;  %949 = vmatpush2.msra.mxu0 %v684_v62  ;;  %v748_v61 = vunpack.c.h.bf16 %v507_v55  ;;  %v651_v62 = vunpack.c.l.bf16 %v443_v54  ;;  %v345_v54 = vld [vmem:[%s3760_s23 + $0xf0] sm:$0xff]  ;;  %v347_v55 = vld [vmem:[%s3760_s23 + $0x100] sm:$0xff] }
  0x7d   : > { %1110 = vmatpush2.msra.mxu1 %v780_v63  ;;  %950 = vmatprep.subr.mxu0 %v682_v2  ;;  %v569_v63 = vld [vmem:[#allocation5 + $0x3b4] sm:$0xff] }
  0x7e   : > { %1111 = vmatprep.subr.mxu1 %v778_v3  ;;  %951 = vmatpush2.msra.mxu0 %v681_v4  ;;  %v318_v2 = vld [vmem:[%s3760_s23 + $0x18] sm:$0xff]  ;;  %v567_v3 = vld [vmem:[#allocation5 + $0x3a8] sm:$0xff]  ;;  %v315_v4 = vld [vmem:[%s3760_s23] sm:$0xff]  ;;  %v841_v6 = vunpack.c.h.bf16 %v569_v63  ;;  %v840_v7 = vunpack.c.l.bf16 %v569_v63 }
  0x7f   : > { %1112 = vmatpush2.msra.mxu1 %v777_v5  ;;  %952 = vmatprep.subr.mxu0 %v679_v8  ;;  %v317_v5 = vld [vmem:[%s3760_s23 + $0x10] sm:$0xff]  ;;  %v838_v8 = vunpack.c.h.bf16 %v567_v3  ;;  %v543_v63 = vld [vmem:[#allocation5 + $0x318] sm:$0xff] }
  0x80   : > { %1113 = vmatprep.subr.mxu1 %v775_v9  ;;  %953 = vmatpush2.msra.mxu0 %v678_v10  ;;  %v565_v9 = vld [vmem:[#allocation5 + $0x39c] sm:$0xff]  ;;  %v837_v10 = vunpack.c.l.bf16 %v567_v3 }
  0x81   : > { %1114 = vmatpush2.msra.mxu1 %v774_v11  ;;  %954 = vmatprep.subr.mxu0 %v676_v14  ;;  %v322_v11 = vld [vmem:[%s3760_s23 + $0x38] sm:$0xff]  ;;  %v321_v14 = vld [vmem:[%s3760_s23 + $0x30] sm:$0xff] }
  0x82   : > { %1115 = vmatprep.subr.mxu1 %v772_v15  ;;  %955 = vmatpush2.msra.mxu0 %v675_v16  ;;  %v323_v15 = vld [vmem:[%s3760_s23 + $0x40] sm:$0xff]  ;;  %v835_v16 = vunpack.c.h.bf16 %v565_v9 }
  0x83   : > { %1116 = vmatpush2.msra.mxu1 %v771_v17  ;;  %956 = vmatprep.subr.mxu0 %v673_v20  ;;  %v834_v17 = vunpack.c.l.bf16 %v565_v9  ;;  %v831_v20 = vunpack.c.l.bf16 %v563_v13  ;;  %v539_v9 = vld [vmem:[#allocation5 + $0x300] sm:$0xff] }
  0x84   : > { %1117 = vmatprep.subr.mxu1 %v769_v21  ;;  %957 = vmatpush2.msra.mxu0 %v672_v22  ;;  %v328_v21 = vld [vmem:[%s3760_s23 + $0x68] sm:$0xff]  ;;  %v330_v22 = vld [vmem:[%s3760_s23 + $0x78] sm:$0xff] }
  0x85   : > { %1118 = vmatpush2.msra.mxu1 %v768_v23  ;;  %958 = vmatprep.subr.mxu0 %v670_v26  ;;  %v559_v23 = vld [vmem:[#allocation5 + $0x378] sm:$0xff]  ;;  %v829_v26 = vunpack.c.h.bf16 %v561_v19 }
  0x86   : > { %1119 = vmatprep.subr.mxu1 %v766_v27  ;;  %959 = vmatpush2.msra.mxu0 %v669_v28  ;;  %v828_v27 = vunpack.c.l.bf16 %v561_v19  ;;  %v826_v28 = vunpack.c.h.bf16 %v559_v23  ;;  %v825_v30 = vunpack.c.l.bf16 %v559_v23  ;;  %v599_v19 = vld [vmem:[#allocation5 + $0x468] sm:$0xff] }
  0x87   : > { %1120 = vmatpush2.msra.mxu1 %v765_v29  ;;  %960 = vmatprep.subr.mxu0 %v667_v32  ;;  %v557_v29 = vld [vmem:[#allocation5 + $0x36c] sm:$0xff] }
  0x88   : > { %1121 = vmatprep.subr.mxu1 %v763_v33  ;;  %961 = vmatpush2.msra.mxu0 %v666_v34  ;;  %v336_v32 = vld [vmem:[%s3760_s23 + $0xa8] sm:$0xff]  ;;  %v555_v33 = vld [vmem:[#allocation5 + $0x360] sm:$0xff]  ;;  %v333_v34 = vld [vmem:[%s3760_s23 + $0x90] sm:$0xff]  ;;  %v823_v36 = vunpack.c.h.bf16 %v557_v29  ;;  %v822_v37 = vunpack.c.l.bf16 %v557_v29 }
  0x89   : > { %1122 = vmatpush2.msra.mxu1 %v762_v35  ;;  %962 = vmatprep.subr.mxu0 %v664_v38  ;;  %v335_v35 = vld [vmem:[%s3760_s23 + $0xa0] sm:$0xff]  ;;  %v820_v38 = vunpack.c.h.bf16 %v555_v33  ;;  %v595_v29 = vld [vmem:[#allocation5 + $0x450] sm:$0xff] }
  0x8a   : > { %1123 = vmatprep.subr.mxu1 %v760_v39  ;;  %963 = vmatpush2.msra.mxu0 %v663_v40  ;;  %v553_v39 = vld [vmem:[#allocation5 + $0x354] sm:$0xff]  ;;  %v819_v40 = vunpack.c.l.bf16 %v555_v33 }
  0x8b   : > { %1124 = vmatpush2.msra.mxu1 %v759_v41  ;;  %964 = vmatprep.subr.mxu0 %v661_v44  ;;  %v340_v41 = vld [vmem:[%s3760_s23 + $0xc8] sm:$0xff]  ;;  %v339_v44 = vld [vmem:[%s3760_s23 + $0xc0] sm:$0xff] }
  0x8c   : > { %1125 = vmatprep.subr.mxu1 %v757_v45  ;;  %965 = vmatpush2.msra.mxu0 %v660_v46  ;;  %v341_v45 = vld [vmem:[%s3760_s23 + $0xd0] sm:$0xff]  ;;  %v817_v46 = vunpack.c.h.bf16 %v553_v39 }
  0x8d   : > { %1126 = vmatpush2.msra.mxu1 %v756_v47  ;;  %966 = vmatprep.subr.mxu0 %v658_v50  ;;  %v816_v47 = vunpack.c.l.bf16 %v553_v39  ;;  %v813_v50 = vunpack.c.l.bf16 %v551_v43  ;;  %v591_v39 = vld [vmem:[#allocation5 + $0x438] sm:$0xff] }
  0x8e   : > { %1127 = vmatprep.subr.mxu1 %v754_v51  ;;  %967 = vmatpush2.msra.mxu0 %v657_v52  ;;  %v346_v51 = vld [vmem:[%s3760_s23 + $0xf8] sm:$0xff]  ;;  %v348_v52 = vld [vmem:[%s3760_s23 + $0x108] sm:$0xff] }
  0x8f   : > { %1128 = vmatpush2.msra.mxu1 %v753_v53  ;;  %968 = vmatprep.subr.mxu0 %v655_v56  ;;  %v547_v53 = vld [vmem:[#allocation5 + $0x330] sm:$0xff]  ;;  %v811_v56 = vunpack.c.h.bf16 %v549_v49 }
  0x90   : > { %1129 = vmatprep.subr.mxu1 %v751_v57  ;;  %969 = vmatpush2.msra.mxu0 %v654_v58  ;;  %v810_v57 = vunpack.c.l.bf16 %v549_v49  ;;  %v808_v58 = vunpack.c.h.bf16 %v547_v53  ;;  %v587_v49 = vld [vmem:[#allocation5 + $0x420] sm:$0xff] }
  0x91   : > { %1130 = vmatpush2.msra.mxu1 %v750_v59  ;;  %970 = vmatprep.subr.mxu0 %v652_v60  ;;  %v545_v59 = vld [vmem:[#allocation5 + $0x324] sm:$0xff]  ;;  %v807_v60 = vunpack.c.l.bf16 %v547_v53 }
  0x92   : > { %1131 = vmatprep.subr.mxu1 %v748_v61  ;;  %971 = vmatpush2.msra.mxu0 %v651_v62  ;;  %v352_v61 = vld [vmem:[%s3760_s23 + $0x128] sm:$0xff]  ;;  %v354_v62 = vld [vmem:[%s3760_s23 + $0x138] sm:$0xff]  ;;  %v804_v3 = vunpack.c.l.bf16 %v545_v59 }
  0x93   : > { %972 = vmatprep.mubr.f32.mxu0 %v316_v0  ;;  %1132 = vmatpush2.msra.mxu1 %v747_v1  ;;  %v351_v0 = vld [vmem:[%s3760_s23 + $0x120] sm:$0xff]  ;;  %v353_v1 = vld [vmem:[%s3760_s23 + $0x130] sm:$0xff] }
  0x94   : > { %1133 = vmatprep.mubr.f32.mxu1 %v318_v2  ;;  %973 = vmatmul.mubr.f32.vlgmr.msra.gmra.mxu0 %v315_v4  ;;  %v805_v2 = vunpack.c.h.bf16 %v545_v59  ;;  %v802_v4 = vunpack.c.h.bf16 %v543_v63  ;;  %v583_v59 = vld [vmem:[#allocation5 + $0x408] sm:$0xff] }
  0x95   : > { %1134 = vmatmul.mubr.f32.vlgmr.msra.gmra.mxu1 %v317_v5  ;;  %1230 = vmatprep.subr.mxu0 %v841_v6  ;;  %v541_v5 = vld [vmem:[#allocation5 + $0x30c] sm:$0xff] }
  0x96   : > { %3222 = vmatprep.subr.mxu1 %v841_v6  ;;  %1231 = vmatpush1.msra.mxu0 %v840_v7  ;;  %v801_v6 = vunpack.c.l.bf16 %v543_v63  ;;  %v798_v13 = vunpack.c.l.bf16 %v541_v5 }
  0x97   : > { %3254 = vmatpush1.msra.mxu1 %v840_v7  ;;  %1232 = vmatprep.subr.mxu0 %v838_v8  ;;  %v358_v7 = vld [vmem:[%s3760_s23 + $0x158] sm:$0xff] }
  0x98   : > { %3223 = vmatprep.subr.mxu1 %v838_v8  ;;  %978 = vmatprep.mubr.f32.mxu0 %v322_v11  ;;  %v360_v8 = vld [vmem:[%s3760_s23 + $0x168] sm:$0xff]  ;;  %v359_v11 = vld [vmem:[%s3760_s23 + $0x160] sm:$0xff] }
  0x99   : > { %1139 = vmatprep.mubr.f32.mxu1 %v324_v12  ;;  %1233 = vmatpush1.msra.mxu0 %v837_v10  ;;  %v799_v12 = vunpack.c.h.bf16 %v541_v5  ;;  %v579_v5 = vld [vmem:[#allocation5 + $0x3f0] sm:$0xff] }
  0x9a   : > { %3255 = vmatpush1.msra.mxu1 %v837_v10  ;;  %979 = vmatmul.mubr.f32.gmra.mxu0 %v321_v14  ;;  %v357_v10 = vld [vmem:[%s3760_s23 + $0x150] sm:$0xff]  ;;  %v796_v14 = vunpack.c.h.bf16 %v539_v9 }
  0x9b   : > { %1140 = vmatmul.mubr.f32.gmra.mxu1 %v323_v15  ;;  %1234 = vmatprep.subr.mxu0 %v835_v16  ;;  %v601_v15 = vld [vmem:[#allocation5 + $0x474] sm:$0xff] }
  0x9c   : > { %3224 = vmatprep.subr.mxu1 %v835_v16  ;;  %1235 = vmatpush1.msra.mxu0 %v834_v17  ;;  %v795_v16 = vunpack.c.l.bf16 %v539_v9  ;;  %v888_v23 = vunpack.c.l.bf16 %v601_v15 }
  0x9d   : > { %3256 = vmatpush1.msra.mxu1 %v834_v17  ;;  %1236 = vmatprep.subr.mxu0 %v832_v18  ;;  %v364_v17 = vld [vmem:[%s3760_s23 + $0x188] sm:$0xff] }
  0x9e   : > { %3225 = vmatprep.subr.mxu1 %v832_v18  ;;  %984 = vmatprep.mubr.f32.mxu0 %v328_v21  ;;  %v366_v18 = vld [vmem:[%s3760_s23 + $0x198] sm:$0xff]  ;;  %v365_v21 = vld [vmem:[%s3760_s23 + $0x190] sm:$0xff] }
  0x9f   : > { %1145 = vmatprep.mubr.f32.mxu1 %v330_v22  ;;  %1237 = vmatpush1.msra.mxu0 %v831_v20  ;;  %v889_v22 = vunpack.c.h.bf16 %v601_v15  ;;  %v575_v15 = vld [vmem:[#allocation5 + $0x3d8] sm:$0xff] }
  0xa0   : > { %3257 = vmatpush1.msra.mxu1 %v831_v20  ;;  %985 = vmatmul.mubr.f32.gmra.mxu0 %v327_v24  ;;  %v363_v20 = vld [vmem:[%s3760_s23 + $0x180] sm:$0xff]  ;;  %v886_v24 = vunpack.c.h.bf16 %v599_v19 }
  0xa1   : > { %1146 = vmatmul.mubr.f32.gmra.mxu1 %v329_v25  ;;  %1238 = vmatprep.subr.mxu0 %v829_v26  ;;  %v597_v25 = vld [vmem:[#allocation5 + $0x45c] sm:$0xff] }
  0xa2   : > { %3226 = vmatprep.subr.mxu1 %v829_v26  ;;  %1239 = vmatpush1.msra.mxu0 %v828_v27  ;;  %v885_v26 = vunpack.c.l.bf16 %v599_v19  ;;  %v882_v33 = vunpack.c.l.bf16 %v597_v25 }
  0xa3   : > { %3258 = vmatpush1.msra.mxu1 %v828_v27  ;;  %1240 = vmatprep.subr.mxu0 %v826_v28  ;;  %v3807_v27 = vld [vmem:[%s3760_s23 + $0x1b8] sm:$0xff] }
  0xa4   : > { %3227 = vmatprep.subr.mxu1 %v826_v28  ;;  %990 = vmatprep.mubr.f32.mxu0 %v334_v31  ;;  %v3810_v28 = vld [vmem:[%s3760_s23 + $0x1c8] sm:$0xff]  ;;  %v371_v31 = vld [vmem:[%s3760_s23 + $0x1c0] sm:$0xff] }
  0xa5   : > { %1151 = vmatprep.mubr.f32.mxu1 %v336_v32  ;;  %1241 = vmatpush1.msra.mxu0 %v825_v30  ;;  %v883_v32 = vunpack.c.h.bf16 %v597_v25  ;;  %v571_v25 = vld [vmem:[#allocation5 + $0x3c0] sm:$0xff] }
  0xa6   : > { %3259 = vmatpush1.msra.mxu1 %v825_v30  ;;  %991 = vmatmul.mubr.f32.gmra.mxu0 %v333_v34  ;;  %v3813_v30 = vld [vmem:[%s3760_s23 + $0x1b0] sm:$0xff]  ;;  %v880_v34 = vunpack.c.h.bf16 %v595_v29 }
  0xa7   : > { %1152 = vmatmul.mubr.f32.gmra.mxu1 %v335_v35  ;;  %1242 = vmatprep.subr.mxu0 %v823_v36  ;;  %v593_v35 = vld [vmem:[#allocation5 + $0x444] sm:$0xff] }
  0xa8   : > { %3228 = vmatprep.subr.mxu1 %v823_v36  ;;  %1243 = vmatpush1.msra.mxu0 %v822_v37  ;;  %v879_v36 = vunpack.c.l.bf16 %v595_v29  ;;  %v876_v43 = vunpack.c.l.bf16 %v593_v35  ;;  %v3909_v29 = vld [vmem:[%s3760_s23 + $0x2e0] sm:$0xff] }
  0xa9   : > { %3260 = vmatpush1.msra.mxu1 %v822_v37  ;;  %1244 = vmatprep.subr.mxu0 %v820_v38  ;;  %v3820_v37 = vld [vmem:[%s3760_s23 + $0x1e8] sm:$0xff] }
  0xaa   : > { %3229 = vmatprep.subr.mxu1 %v820_v38  ;;  %996 = vmatprep.mubr.f32.mxu0 %v340_v41  ;;  %v3823_v38 = vld [vmem:[%s3760_s23 + $0x1f8] sm:$0xff]  ;;  %v3829_v41 = vld [vmem:[%s3760_s23 + $0x1f0] sm:$0xff] }
  0xab   : > { %1157 = vmatprep.mubr.f32.mxu1 %v342_v42  ;;  %1245 = vmatpush1.msra.mxu0 %v819_v40  ;;  %v877_v42 = vunpack.c.h.bf16 %v593_v35  ;;  %v474_v35 = vld [vmem:[#allocation5 + $0x170] ss:$12 sps:$4 sm:$0xff]  }
  0xac   : > { %3261 = vmatpush1.msra.mxu1 %v819_v40  ;;  %997 = vmatmul.mubr.f32.gmra.mxu0 %v339_v44  ;;  %v3826_v40 = vld [vmem:[%s3760_s23 + $0x1e0] sm:$0xff]  ;;  %v874_v44 = vunpack.c.h.bf16 %v591_v39 }
  0xad   : > { %1158 = vmatmul.mubr.f32.gmra.mxu1 %v341_v45  ;;  %1246 = vmatprep.subr.mxu0 %v817_v46  ;;  %v589_v45 = vld [vmem:[#allocation5 + $0x42c] sm:$0xff] }
  0xae   : > { %3230 = vmatprep.subr.mxu1 %v817_v46  ;;  %1247 = vmatpush1.msra.mxu0 %v816_v47  ;;  %v873_v46 = vunpack.c.l.bf16 %v591_v39  ;;  %v870_v53 = vunpack.c.l.bf16 %v589_v45  ;;  %v442_v39 = vld [vmem:[#allocation5 + $0xb0] ss:$12 sps:$4 sm:$0xff]  }
  0xaf   : > { %3262 = vmatpush1.msra.mxu1 %v816_v47  ;;  %1248 = vmatprep.subr.mxu0 %v814_v48  ;;  %v3836_v47 = vld [vmem:[%s3760_s23 + $0x218] sm:$0xff] }
  0xb0   : > { %3231 = vmatprep.subr.mxu1 %v814_v48  ;;  %1002 = vmatprep.mubr.f32.mxu0 %v346_v51  ;;  %v3839_v48 = vld [vmem:[%s3760_s23 + $0x228] sm:$0xff]  ;;  %v3845_v51 = vld [vmem:[%s3760_s23 + $0x220] sm:$0xff] }
  0xb1   : > { %1163 = vmatprep.mubr.f32.mxu1 %v348_v52  ;;  %1249 = vmatpush1.msra.mxu0 %v813_v50  ;;  %v871_v52 = vunpack.c.h.bf16 %v589_v45  ;;  %v367_v45 = vld [vmem:[%s3760_s23 + $0x1a0] sm:$0xff] }
  0xb2   : > { %3263 = vmatpush1.msra.mxu1 %v813_v50  ;;  %1003 = vmatmul.mubr.f32.gmra.mxu0 %v345_v54  ;;  %v3842_v50 = vld [vmem:[%s3760_s23 + $0x210] sm:$0xff]  ;;  %v868_v54 = vunpack.c.h.bf16 %v587_v49 }
  0xb3   : > { %1164 = vmatmul.mubr.f32.gmra.mxu1 %v347_v55  ;;  %1250 = vmatprep.subr.mxu0 %v811_v56  ;;  %v585_v55 = vld [vmem:[#allocation5 + $0x414] sm:$0xff] }
  0xb4   : > { %3232 = vmatprep.subr.mxu1 %v811_v56  ;;  %1251 = vmatpush1.msra.mxu0 %v810_v57  ;;  %v867_v56 = vunpack.c.l.bf16 %v587_v49  ;;  %v864_v63 = vunpack.c.l.bf16 %v585_v55 }
  0xb5   : > { %3264 = vmatpush1.msra.mxu1 %v810_v57  ;;  %1252 = vmatprep.subr.mxu0 %v808_v58  ;;  %v3852_v57 = vld [vmem:[%s3760_s23 + $0x248] sm:$0xff] }
  0xb6   : > { %3233 = vmatprep.subr.mxu1 %v808_v58  ;;  %1008 = vmatprep.mubr.f32.mxu0 %v352_v61  ;;  %v3855_v58 = vld [vmem:[%s3760_s23 + $0x258] sm:$0xff]  ;;  %v3861_v61 = vld [vmem:[%s3760_s23 + $0x250] sm:$0xff] }
  0xb7   : > { %1169 = vmatprep.mubr.f32.mxu1 %v354_v62  ;;  %1253 = vmatpush1.msra.mxu0 %v807_v60  ;;  %v865_v62 = vunpack.c.h.bf16 %v585_v55  ;;  %v3925_v55 = vld [vmem:[%s3760_s23 + $0x58] sm:$0xff] }
  0xb8   : > { %3265 = vmatpush1.msra.mxu1 %v807_v60  ;;  %1009 = vmatmul.mubr.f32.gmra.mxu0 %v351_v0  ;;  %v3858_v60 = vld [vmem:[%s3760_s23 + $0x240] sm:$0xff]  ;;  %v862_v0 = vunpack.c.h.bf16 %v583_v59 }
  0xb9   : > { %1170 = vmatmul.mubr.f32.gmra.mxu1 %v353_v1  ;;  %1254 = vmatprep.subr.mxu0 %v805_v2  ;;  %v581_v1 = vld [vmem:[#allocation5 + $0x3fc] sm:$0xff] }
  0xba   : > { %3234 = vmatprep.subr.mxu1 %v805_v2  ;;  %1255 = vmatpush1.msra.mxu0 %v804_v3  ;;  %v861_v2 = vunpack.c.l.bf16 %v583_v59  ;;  %v858_v9 = vunpack.c.l.bf16 %v581_v1  ;;  %v647_v59 = vunpack.c.l.bf16 %v442_v39 }
  0xbb   : > { %3266 = vmatpush1.msra.mxu1 %v804_v3  ;;  %1256 = vmatprep.subr.mxu0 %v802_v4  ;;  %v3868_v3 = vld [vmem:[%s3760_s23 + $0x278] sm:$0xff] }
  0xbc   : > { %3235 = vmatprep.subr.mxu1 %v802_v4  ;;  %1014 = vmatprep.mubr.f32.mxu0 %v358_v7  ;;  %v3871_v4 = vld [vmem:[%s3760_s23 + $0x288] sm:$0xff]  ;;  %v3877_v7 = vld [vmem:[%s3760_s23 + $0x280] sm:$0xff] }
  0xbd   : > { %1175 = vmatprep.mubr.f32.mxu1 %v360_v8  ;;  %1257 = vmatpush1.msra.mxu0 %v801_v6  ;;  %v859_v8 = vunpack.c.h.bf16 %v581_v1  ;;  %v3931_v1 = vld [vmem:[%s3760_s23 + $0x50] sm:$0xff] }
  0xbe   : > { %3267 = vmatpush1.msra.mxu1 %v801_v6  ;;  %1015 = vmatmul.mubr.f32.gmra.mxu0 %v357_v10  ;;  %v3874_v6 = vld [vmem:[%s3760_s23 + $0x270] sm:$0xff]  ;;  %v856_v10 = vunpack.c.h.bf16 %v579_v5 }
  0xbf   : > { %1176 = vmatmul.mubr.f32.gmra.mxu1 %v359_v11  ;;  %1258 = vmatprep.subr.mxu0 %v799_v12  ;;  %v577_v11 = vld [vmem:[#allocation5 + $0x3e4] sm:$0xff] }
  0xc0   : > { %3236 = vmatprep.subr.mxu1 %v799_v12  ;;  %1259 = vmatpush1.msra.mxu0 %v798_v13  ;;  %v855_v12 = vunpack.c.l.bf16 %v579_v5  ;;  %v852_v19 = vunpack.c.l.bf16 %v577_v11 }
  0xc1   : > { %3268 = vmatpush1.msra.mxu1 %v798_v13  ;;  %1260 = vmatprep.subr.mxu0 %v796_v14  ;;  %v3884_v13 = vld [vmem:[%s3760_s23 + $0x2a8] sm:$0xff] }
  0xc2   : > { %3237 = vmatprep.subr.mxu1 %v796_v14  ;;  %1020 = vmatprep.mubr.f32.mxu0 %v364_v17  ;;  %v3887_v14 = vld [vmem:[%s3760_s23 + $0x2b8] sm:$0xff]  ;;  %v3893_v17 = vld [vmem:[%s3760_s23 + $0x2b0] sm:$0xff] }
  0xc3   : > { %1181 = vmatprep.mubr.f32.mxu1 %v366_v18  ;;  %1261 = vmatpush1.msra.mxu0 %v795_v16  ;;  %v853_v18 = vunpack.c.h.bf16 %v577_v11  ;;  %v436_v11 = vld [vmem:[#allocation5 + $0x98] ss:$396 sps:$4 sm:$0xff]  }
  0xc4   : > { %3269 = vmatpush1.msra.mxu1 %v795_v16  ;;  %1021 = vmatmul.mubr.f32.gmra.mxu0 %v363_v20  ;;  %v3890_v16 = vld [vmem:[%s3760_s23 + $0x2a0] sm:$0xff]  ;;  %v850_v20 = vunpack.c.h.bf16 %v575_v15 }
  0xc5   : > { %1182 = vmatmul.mubr.f32.gmra.mxu1 %v365_v21  ;;  %1262 = vmatprep.subr.mxu0 %v889_v22  ;;  %v573_v21 = vld [vmem:[#allocation5 + $0x3cc] sm:$0xff] }
  0xc6   : > { %3238 = vmatprep.subr.mxu1 %v889_v22  ;;  %1263 = vmatpush2.msra.mxu0 %v888_v23  ;;  %v849_v22 = vunpack.c.l.bf16 %v575_v15 }
  0xc7   : > { %3270 = vmatpush2.msra.mxu1 %v888_v23  ;;  %1264 = vmatprep.subr.mxu0 %v886_v24  ;;  %v3900_v23 = vld [vmem:[%s3760_s23 + $0x2d8] sm:$0xff] }
  0xc8   : > { %3239 = vmatprep.subr.mxu1 %v886_v24  ;;  %1026 = vmatprep.mubr.f32.mxu0 %v3807_v27  ;;  %v3903_v24 = vld [vmem:[%s3760_s23 + $0x2e8] sm:$0xff] }
  0xc9   : > { %1187 = vmatprep.mubr.f32.mxu1 %v3810_v28  ;;  %1265 = vmatpush2.msra.mxu0 %v885_v26 }
  0xca   : > { %3271 = vmatpush2.msra.mxu1 %v885_v26  ;;  %1027 = vmatmul.mubr.f32.gmra.mxu0 %v3813_v30  ;;  %v3906_v26 = vld [vmem:[%s3760_s23 + $0x2d0] sm:$0xff] }
  0xcb   : > { %1188 = vmatmul.mubr.f32.gmra.mxu1 %v371_v31  ;;  %1266 = vmatprep.subr.mxu0 %v883_v32  ;;  %v847_v31 = vunpack.c.h.bf16 %v573_v21 }
  0xcc   : > { %3240 = vmatprep.subr.mxu1 %v883_v32  ;;  %1267 = vmatpush2.msra.mxu0 %v882_v33  ;;  %v846_v32 = vunpack.c.l.bf16 %v573_v21  ;;  %v641_v21 = vunpack.c.l.bf16 %v436_v11 }
  0xcd   : > { %3272 = vmatpush2.msra.mxu1 %v882_v33  ;;  %1268 = vmatprep.subr.mxu0 %v880_v34  ;;  %v844_v33 = vunpack.c.h.bf16 %v571_v25 }
  0xce   : > { %3241 = vmatprep.subr.mxu1 %v880_v34  ;;  %1032 = vmatprep.mubr.f32.mxu0 %v3820_v37  ;;  %v843_v34 = vunpack.c.l.bf16 %v571_v25  ;;  %v434_v25 = vld [vmem:[#allocation5 + $0x8c] ss:$396 sps:$4 sm:$0xff]  }
  0xcf   : > { %1193 = vmatprep.mubr.f32.mxu1 %v3823_v38  ;;  %1269 = vmatpush2.msra.mxu0 %v879_v36 }
  0xd0   : > { %3273 = vmatpush2.msra.mxu1 %v879_v36  ;;  %1033 = vmatmul.mubr.f32.gmra.mxu0 %v3826_v40  ;;  %v538_v36 = vld [vmem:[#allocation5 + $0x164] ss:$408 sps:$4 sm:$0xff]  }
  0xd1   : > { %1194 = vmatmul.mubr.f32.gmra.mxu1 %v3829_v41  ;;  %1270 = vmatprep.subr.mxu0 %v877_v42  ;;  %v794_v49 = vunpack.c.h.bf16 %v538_v36  ;;  %v692_v5 = vunpack.c.l.bf16 %v538_v36  ;;  %v638_v36 = vunpack.c.l.bf16 %v434_v25 }
  0xd2   : > { %3242 = vmatprep.subr.mxu1 %v877_v42  ;;  %1271 = vmatpush2.msra.mxu0 %v876_v43  ;;  %v3916_v42 = vld [vmem:[%s3760_s23 + $0x28] sm:$0xff] }
  0xd3   : > { %3274 = vmatpush2.msra.mxu1 %v876_v43  ;;  %1272 = vmatprep.subr.mxu0 %v874_v44  ;;  %v368_v43 = vld [vmem:[%s3760_s23 + $0x1a8] sm:$0xff] }
  0xd4   : > { %3243 = vmatprep.subr.mxu1 %v874_v44  ;;  %1038 = vmatprep.mubr.f32.mxu0 %v3836_v47  ;;  %v3920_v44 = vld [vmem:[%s3760_s23 + $0x20] sm:$0xff] }
  0xd5   : > { %1199 = vmatprep.mubr.f32.mxu1 %v3839_v48  ;;  %1273 = vmatpush2.msra.mxu0 %v873_v46 }
  0xd6   : > { %3275 = vmatpush2.msra.mxu1 %v873_v46  ;;  %1039 = vmatmul.mubr.f32.gmra.mxu0 %v3842_v50  ;;  %v698_v46 = vunpack.c.h.bf16 %v474_v35 }
  0xd7   : > { %1200 = vmatmul.mubr.f32.gmra.mxu1 %v3845_v51  ;;  %1274 = vmatprep.subr.mxu0 %v871_v52 }
  0xd8   : > { %3244 = vmatprep.subr.mxu1 %v871_v52  ;;  %1275 = vmatpush2.msra.mxu0 %v870_v53  ;;  %v506_v52 = vld [vmem:[#allocation5 + $0x23c] ss:$180 sps:$4 sm:$0xff]  }
  0xd9   : > { %3276 = vmatpush2.msra.mxu1 %v870_v53  ;;  %1276 = vmatprep.subr.mxu0 %v868_v54  ;;  %v650_v53 = vunpack.c.h.bf16 %v442_v39  ;;  %v737_v39 = vunpack.c.h.bf16 %v434_v25  ;;  %v426_v25 = vld [vmem:[#allocation5 + $0x5c] ss:$396 sps:$4 sm:$0xff]  }
  0xda   : > { %3245 = vmatprep.subr.mxu1 %v868_v54  ;;  %1044 = vmatprep.mubr.f32.mxu0 %v3852_v57  ;;  %v695_v54 = vunpack.c.l.bf16 %v474_v35 }
  0xdb   : > { %1205 = vmatprep.mubr.f32.mxu1 %v3855_v58  ;;  %1277 = vmatpush2.msra.mxu0 %v867_v56 }
  0xdc   : > { %3277 = vmatpush2.msra.mxu1 %v867_v56  ;;  %1045 = vmatmul.mubr.f32.gmra.mxu0 %v3858_v60  ;;  %v374_v56 = vld [vmem:[%s3760_s23 + $0x1d8] sm:$0xff] }
  0xdd   : > { %1206 = vmatmul.mubr.f32.gmra.mxu1 %v3861_v61  ;;  %1278 = vmatprep.subr.mxu0 %v865_v62 }
  0xde   : > { %3246 = vmatprep.subr.mxu1 %v865_v62  ;;  %1279 = vmatpush2.msra.mxu0 %v864_v63  ;;  %v746_v62 = vunpack.c.l.bf16 %v506_v52 }
  0xdf   : > { %3278 = vmatpush2.msra.mxu1 %v864_v63  ;;  %1280 = vmatprep.subr.mxu0 %v862_v0  ;;  %v438_v63 = vld [vmem:[#allocation5 + $0xa4] ss:$396 sps:$4 sm:$0xff]  }
  0xe0   : > { %3247 = vmatprep.subr.mxu1 %v862_v0  ;;  %1050 = vmatprep.mubr.f32.mxu0 %v3868_v3  ;;  %v468_v0 = vld [vmem:[#allocation5 + $0x158] ss:$396 sps:$4 sm:$0xff]  }
  0xe1   : > { %1211 = vmatprep.mubr.f32.mxu1 %v3871_v4  ;;  %1281 = vmatpush2.msra.mxu0 %v861_v2  ;;  %v788_v15 = vunpack.c.h.bf16 %v468_v0 }
  0xe2   : > { %3279 = vmatpush2.msra.mxu1 %v861_v2  ;;  %1051 = vmatmul.mubr.f32.gmra.mxu0 %v3874_v6  ;;  %v373_v2 = vld [vmem:[%s3760_s23 + $0x1d0] sm:$0xff] }
  0xe3   : > { %1212 = vmatmul.mubr.f32.gmra.mxu1 %v3877_v7  ;;  %1282 = vmatprep.subr.mxu0 %v859_v8 }
  0xe4   : > { %3248 = vmatprep.subr.mxu1 %v859_v8  ;;  %1283 = vmatpush2.msra.mxu0 %v858_v9  ;;  %v791_v8 = vunpack.c.h.bf16 %v506_v52  ;;  %v3946_v52 = vld [vmem:[%s3760_s23 + $0xb8] sm:$0xff] }
  0xe5   : > { %3280 = vmatpush2.msra.mxu1 %v858_v9  ;;  %1284 = vmatprep.subr.mxu0 %v856_v10  ;;  %v644_v9 = vunpack.c.l.bf16 %v438_v63 }
  0xe6   : > { %3249 = vmatprep.subr.mxu1 %v856_v10  ;;  %1056 = vmatprep.mubr.f32.mxu0 %v3884_v13  ;;  %v743_v10 = vunpack.c.h.bf16 %v438_v63  ;;  %v3950_v63 = vld [vmem:[%s3760_s23 + $0xb0] sm:$0xff] }
  0xe7   : > { %1217 = vmatprep.mubr.f32.mxu1 %v3887_v14  ;;  %1285 = vmatpush2.msra.mxu0 %v855_v12 }
  0xe8   : > { %3281 = vmatpush2.msra.mxu1 %v855_v12  ;;  %1057 = vmatmul.mubr.f32.gmra.mxu0 %v3890_v16  ;;  %v689_v12 = vunpack.c.l.bf16 %v468_v0  ;;  %v385_v0 = vld [vmem:[%s3760_s23 + $0x230] sm:$0xff] }
  0xe9   : > { %1218 = vmatmul.mubr.f32.gmra.mxu1 %v3893_v17  ;;  %1286 = vmatprep.subr.mxu0 %v853_v18 }
  0xea   : > { %3250 = vmatprep.subr.mxu1 %v853_v18  ;;  %1287 = vmatpush2.msra.mxu0 %v852_v19  ;;  %v466_v18 = vld [vmem:[#allocation5 + $0x14c] ss:$396 sps:$4 sm:$0xff]  }
  0xeb   : > { %3282 = vmatpush2.msra.mxu1 %v852_v19  ;;  %1288 = vmatprep.subr.mxu0 %v850_v20  ;;  %v3936_v19 = vld [vmem:[%s3760_s23 + $0x88] sm:$0xff]  ;;  %v785_v35 = vunpack.c.h.bf16 %v466_v18 }
  0xec   : > { %3251 = vmatprep.subr.mxu1 %v850_v20  ;;  %1062 = vmatprep.mubr.f32.mxu0 %v3900_v23  ;;  %v380_v20 = vld [vmem:[%s3760_s23 + $0x208] sm:$0xff] }
  0xed   : > { %1223 = vmatprep.mubr.f32.mxu1 %v3903_v24  ;;  %1289 = vmatpush2.msra.mxu0 %v849_v22 }
  0xee   : > { %3283 = vmatpush2.msra.mxu1 %v849_v22  ;;  %1063 = vmatmul.mubr.f32.gmra.mxu0 %v3906_v26  ;;  %v740_v22 = vunpack.c.h.bf16 %v436_v11 }
  0xef   : > { %1224 = vmatmul.mubr.f32.gmra.mxu1 %v3909_v29  ;;  %1290 = vmatprep.subr.mxu0 %v847_v31 }
  0xf0   : > { %3252 = vmatprep.subr.mxu1 %v847_v31  ;;  %1291 = vmatpush2.msra.mxu0 %v846_v32  ;;  %v464_v31 = vld [vmem:[#allocation5 + $0x140] ss:$396 sps:$4 sm:$0xff]  }
  0xf1   : > { %3284 = vmatpush2.msra.mxu1 %v846_v32  ;;  %1292 = vmatprep.subr.mxu0 %v844_v33  ;;  %v3940_v32 = vld [vmem:[%s3760_s23 + $0x80] sm:$0xff] }
  0xf2   : > { %3253 = vmatprep.subr.mxu1 %v844_v33  ;;  %1293 = vmatpush2.msra.mxu0 %v843_v34  ;;  %v379_v33 = vld [vmem:[%s3760_s23 + $0x200] sm:$0xff] }
  0xf3   : > { %3285 = vmatpush2.msra.mxu1 %v843_v34  ;;  %1294 = vmatprep.mubr.f32.mxu0 %v3916_v42  ;;  %v686_v34 = vunpack.c.l.bf16 %v466_v18  ;;  %v3956_v18 = vld [vmem:[%s3760_s23 + $0xe8] sm:$0xff] }
  0xf4   : > { %1342 = vmatprep.mubr.f32.mxu1 %v368_v43  ;;  %1295 = vmatmul.mubr.f32.vlgmr.msra.gmra.mxu0 %v3920_v44  ;;  %v432_v43 = vld [vmem:[#allocation5 + $0x80] ss:$396 sps:$4 sm:$0xff]  }
  0xf5   : > { %1343 = vmatmul.mubr.f32.vlgmr.msra.gmra.mxu1 %v367_v45  ;;  %2982 = vmatprep.subr.mxu1 %v698_v46  ;;  %v683_v45 = vunpack.c.l.bf16 %v464_v31  ;;  %v782_v46 = vunpack.c.h.bf16 %v464_v31  ;;  %v456_v31 = vld [vmem:[#allocation5 + $0x110] ss:$396 sps:$4 sm:$0xff]  }
  0xf6   : > { %3062 = vmatprep.subr.mxu0 %v794_v49  ;;  %2983 = vmatpush3.msra.mxu1 %v650_v53  ;;  %v462_v49 = vld [vmem:[#allocation5 + $0x134] ss:$396 sps:$4 sm:$0xff]   ;;  %v386_v53 = vld [vmem:[%s3760_s23 + $0x238] sm:$0xff] }
  0xf7   : > { %1300 = vmatprep.mubr.f32.mxu0 %v3925_v55  ;;  %2984 = vmatprep.subr.mxu1 %v695_v54  ;;  %v635_v54 = vunpack.c.l.bf16 %v432_v43 }
  0xf8   : > { %1348 = vmatprep.mubr.f32.mxu1 %v374_v56  ;;  %2985 = vmatpush3.msra.mxu1 %v647_v59  ;;  %v734_v56 = vunpack.c.h.bf16 %v432_v43  ;;  %v430_v59 = vld [vmem:[#allocation5 + $0x74] ss:$396 sps:$4 sm:$0xff]   ;;  %v725_v43 = vunpack.c.h.bf16 %v426_v25 }
  0xf9   : > { %3063 = vmatpush3.msra.mxu0 %v746_v62  ;;  %1349 = vmatmul.mubr.f32.gmra.mxu1 %v373_v2  ;;  %v460_v62 = vld [vmem:[#allocation5 + $0x128] ss:$396 sps:$4 sm:$0xff]   ;;  %v680_v2 = vunpack.c.l.bf16 %v462_v49 }
  0xfa   : > { %1301 = vmatmul.mubr.f32.gmra.mxu0 %v3931_v1  ;;  %2986 = vmatprep.subr.mxu1 %v692_v5  ;;  %v779_v5 = vunpack.c.h.bf16 %v462_v49  ;;  %v677_v11 = vunpack.c.l.bf16 %v460_v62  ;;  %v770_v49 = vunpack.c.h.bf16 %v456_v31 }
  0xfb   : > { %3064 = vmatprep.subr.mxu0 %v791_v8  ;;  %2987 = vmatpush3.msra.mxu1 %v644_v9  ;;  %v632_v8 = vunpack.c.l.bf16 %v430_v59  ;;  %v731_v9 = vunpack.c.h.bf16 %v430_v59 }
  0xfc   : > { %3065 = vmatpush3.msra.mxu0 %v743_v10  ;;  %2988 = vmatprep.subr.mxu1 %v689_v12  ;;  %v428_v10 = vld [vmem:[#allocation5 + $0x68] ss:$396 sps:$4 sm:$0xff]   ;;  %v776_v12 = vunpack.c.h.bf16 %v460_v62 }
  0xfd   : > { %3066 = vmatprep.subr.mxu0 %v788_v15  ;;  %1306 = vmatprep.mubr.f32.mxu0 %v3936_v19  ;;  %v458_v15 = vld [vmem:[#allocation5 + $0x11c] ss:$396 sps:$4 sm:$0xff]  }
  0xfe   : > { %1354 = vmatprep.mubr.f32.mxu1 %v380_v20  ;;  %2989 = vmatpush3.msra.mxu1 %v641_v21  ;;  %v392_v20 = vld [vmem:[%s3760_s23 + $0x268] sm:$0xff]  ;;  %v629_v21 = vunpack.c.l.bf16 %v428_v10 }
  0xff   : > { %3067 = vmatpush3.msra.mxu0 %v740_v22  ;;  %1355 = vmatmul.mubr.f32.gmra.mxu1 %v379_v33  ;;  %v728_v22 = vunpack.c.h.bf16 %v428_v10  ;;  %v3960_v33 = vld [vmem:[%s3760_s23 + $0xe0] sm:$0xff] }
 0x100   : > { %1307 = vmatmul.mubr.f32.gmra.mxu0 %v3940_v32  ;;  %2990 = vmatprep.subr.mxu1 %v686_v34  ;;  %v391_v34 = vld [vmem:[%s3760_s23 + $0x260] sm:$0xff] }
 0x101   : > { %3068 = vmatprep.subr.mxu0 %v785_v35  ;;  %2991 = vmatpush3.msra.mxu1 %v638_v36  ;;  %v674_v35 = vunpack.c.l.bf16 %v458_v15  ;;  %v773_v36 = vunpack.c.h.bf16 %v458_v15  ;;  %v420_v15 = vld [vmem:[#allocation5 + $0x38] ss:$396 sps:$4 sm:$0xff]  }
 0x102   : > { %3069 = vmatpush3.msra.mxu0 %v737_v39  ;;  %2992 = vmatprep.subr.mxu1 %v683_v45  ;;  %v626_v39 = vunpack.c.l.bf16 %v426_v25  ;;  %v424_v45 = vld [vmem:[#allocation5 + $0x50] ss:$396 sps:$4 sm:$0xff]   ;;  %v3976_v25 = vld [vmem:[%s3760_s23 + $0x148] sm:$0xff] }
 0x103   : > { %3070 = vmatprep.subr.mxu0 %v782_v46  ;;  %1312 = vmatprep.mubr.f32.mxu0 %v3946_v52  ;;  %v671_v46 = vunpack.c.l.bf16 %v456_v31  ;;  %v623_v59 = vunpack.c.l.bf16 %v424_v45  ;;  %v722_v62 = vunpack.c.h.bf16 %v424_v45  ;;  %v3979_v31 = vld [vmem:[%s3760_s23 + $0x2c8] sm:$0xff]  ;;  %v3985_v45 = vld [vmem:[%s3760_s23 + $0x2c0] sm:$0xff] }
 0x104   : > { %1360 = vmatprep.mubr.f32.mxu1 %v386_v53  ;;  %2993 = vmatpush3.msra.mxu1 %v635_v54  ;;  %v454_v53 = vld [vmem:[#allocation5 + $0x104] ss:$396 sps:$4 sm:$0xff]   ;;  %v3966_v54 = vld [vmem:[%s3760_s23 + $0x118] sm:$0xff] }
 0x105   : > { %3071 = vmatpush3.msra.mxu0 %v734_v56  ;;  %1361 = vmatmul.mubr.f32.gmra.mxu1 %v385_v0  ;;  %v398_v56 = vld [vmem:[%s3760_s23 + $0x298] sm:$0xff]  ;;  %v422_v0 = vld [vmem:[#allocation5 + $0x44] ss:$396 sps:$4 sm:$0xff]   ;;  %v767_v10 = vunpack.c.h.bf16 %v454_v53 }
 0x106   : > { %1313 = vmatmul.mubr.f32.gmra.mxu0 %v3950_v63  ;;  %2994 = vmatprep.subr.mxu1 %v680_v2  ;;  %v452_v2 = vld [vmem:[#allocation5 + $0xf8] ss:$396 sps:$4 sm:$0xff]  }
 0x107   : > { %3072 = vmatprep.subr.mxu0 %v779_v5  ;;  %2995 = vmatpush3.msra.mxu1 %v632_v8  ;;  %v3970_v5 = vld [vmem:[%s3760_s23 + $0x110] sm:$0xff] }
 0x108   : > { %3073 = vmatpush3.msra.mxu0 %v731_v9  ;;  %2996 = vmatprep.subr.mxu1 %v677_v11  ;;  %v397_v8 = vld [vmem:[%s3760_s23 + $0x290] sm:$0xff]  ;;  %v668_v9 = vunpack.c.l.bf16 %v454_v53  ;;  %v620_v11 = vunpack.c.l.bf16 %v422_v0 }
 0x109   : > { %3074 = vmatprep.subr.mxu0 %v776_v12  ;;  %1318 = vmatprep.mubr.f32.mxu0 %v3956_v18  ;;  %v719_v12 = vunpack.c.h.bf16 %v422_v0 }
 0x10a   : > { %1366 = vmatprep.mubr.f32.mxu1 %v392_v20  ;;  %2997 = vmatpush3.msra.mxu1 %v629_v21  ;;  %v665_v20 = vunpack.c.l.bf16 %v452_v2  ;;  %v764_v21 = vunpack.c.h.bf16 %v452_v2  ;;  %v446_v2 = vld [vmem:[#allocation5 + $0xd4] ss:$396 sps:$4 sm:$0xff]  }
 0x10b   : > { %3075 = vmatpush3.msra.mxu0 %v728_v22  ;;  %1367 = vmatmul.mubr.f32.gmra.mxu1 %v391_v34  ;;  %v450_v22 = vld [vmem:[#allocation5 + $0xec] ss:$396 sps:$4 sm:$0xff]   ;;  %v617_v34 = vunpack.c.l.bf16 %v420_v15 }
 0x10c   : > { %1319 = vmatmul.mubr.f32.gmra.mxu0 %v3960_v33  ;;  %2998 = vmatprep.subr.mxu1 %v674_v35  ;;  %v716_v35 = vunpack.c.h.bf16 %v420_v15  ;;  %v444_v15 = vld [vmem:[#allocation5 + $0xc8] ss:$396 sps:$4 sm:$0xff]  }
 0x10d   : > { %3076 = vmatprep.subr.mxu0 %v773_v36  ;;  %2999 = vmatpush3.msra.mxu1 %v626_v39  ;;  %v418_v36 = vld [vmem:[#allocation5 + $0x2c] ss:$396 sps:$4 sm:$0xff]  }
 0x10e   : > { %3077 = vmatpush3.msra.mxu0 %v725_v43  ;;  %3000 = vmatprep.subr.mxu1 %v671_v46  ;;  %v448_v39 = vld [vmem:[#allocation5 + $0xe0] ss:$396 sps:$4 sm:$0xff]   ;;  %v662_v46 = vunpack.c.l.bf16 %v450_v22  ;;  %v614_v53 = vunpack.c.l.bf16 %v418_v36 }
 0x10f   : > { %3078 = vmatprep.subr.mxu0 %v770_v49  ;;  %1324 = vmatprep.mubr.f32.mxu0 %v3966_v54  ;;  %v3982_v43 = vld [vmem:[%s3760_s23 + $0x140] sm:$0xff]  ;;  %v761_v49 = vunpack.c.h.bf16 %v450_v22  ;;  %v758_v0 = vunpack.c.h.bf16 %v448_v39  ;;  %v656_v22 = vunpack.c.l.bf16 %v446_v2 }
 0x110   : > { %1372 = vmatprep.mubr.f32.mxu1 %v398_v56  ;;  %3001 = vmatpush3.msra.mxu1 %v623_v59  ;;  %v713_v56 = vunpack.c.h.bf16 %v418_v36  ;;  %v416_v59 = vld [vmem:[#allocation5 + $0x20] ss:$396 sps:$4 sm:$0xff]  }
 0x111   : > { %3079 = vmatpush3.msra.mxu0 %v722_v62  ;;  %1373 = vmatmul.mubr.f32.gmra.mxu1 %v397_v8  ;;  %v659_v62 = vunpack.c.l.bf16 %v448_v39  ;;  %v3992_v8 = vld [vmem:[%s3760_s23 + $0x178] sm:$0xff] }
 0x112   : > { %1325 = vmatmul.mubr.f32.gmra.mxu0 %v3970_v5  ;;  %3002 = vmatprep.subr.mxu1 %v668_v9  ;;  %v3995_v9 = vld [vmem:[%s3760_s23 + $0x2f8] sm:$0xff] }
 0x113   : > { %3080 = vmatprep.subr.mxu0 %v767_v10  ;;  %3003 = vmatpush3.msra.mxu1 %v620_v11  ;;  %v611_v10 = vunpack.c.l.bf16 %v416_v59  ;;  %v710_v11 = vunpack.c.h.bf16 %v416_v59  ;;  %v476_v59 = vld [vmem:[#allocation5 + $0x188] ss:$564 sps:$4 sm:$0xff]  }
 0x114   : > { %3081 = vmatpush3.msra.mxu0 %v719_v12  ;;  %3004 = vmatprep.subr.mxu1 %v665_v20  ;;  %v414_v12 = vld [vmem:[#allocation5 + $0x14] ss:$396 sps:$4 sm:$0xff]  }
 0x115   : > { %3082 = vmatprep.subr.mxu0 %v764_v21  ;;  %1330 = vmatprep.mubr.f32.mxu0 %v3976_v25  ;;  %v3998_v20 = vld [vmem:[%s3760_s23 + $0x170] sm:$0xff]  ;;  %v608_v36 = vunpack.c.l.bf16 %v414_v12  ;;  %v707_v39 = vunpack.c.h.bf16 %v414_v12  ;;  %v3417_v12 = vld [vmem:[%s3760_s23 + $0x8] sm:$0xff] }
 0x116   : > { %1378 = vmatprep.mubr.f32.mxu1 %v3979_v31  ;;  %3005 = vmatpush3.msra.mxu1 %v617_v34  ;;  %v4001_v21 = vld [vmem:[%s3760_s23 + $0x2f0] sm:$0xff]  ;;  %v755_v34 = vunpack.c.h.bf16 %v446_v2 }
 0x117   : > { %3083 = vmatpush3.msra.mxu0 %v716_v35  ;;  %1379 = vmatmul.mubr.f32.gmra.mxu1 %v3985_v45  ;;  %5135 = vst [vmem:[#allocation11_spill] sm:$0xff] %v4001_v21  ;;  %v412_v35 = vld [vmem:[#allocation5 + $0x8] ss:$396 sps:$4 sm:$0xff]  }
 0x118   : > { %1331 = vmatmul.mubr.f32.gmra.mxu0 %v3982_v43  ;;  %3006 = vmatprep.subr.mxu1 %v662_v46  ;;  %v653_v46 = vunpack.c.l.bf16 %v444_v15 }
 0x119   : > { %3084 = vmatprep.subr.mxu0 %v761_v49  ;;  %3007 = vmatpush3.msra.mxu1 %v614_v53  ;;  %v752_v49 = vunpack.c.h.bf16 %v444_v15  ;;  %v508_v53 = vld [vmem:[#allocation5 + $0x248] ss:$564 sps:$4 sm:$0xff]   ;;  %v842_v15 = vunpack.c.h.bf16 %v476_v59 }
 0x11a   : > { %3085 = vmatpush3.msra.mxu0 %v713_v56  ;;  %3008 = vmatprep.subr.mxu1 %v659_v62  ;;  %v605_v56 = vunpack.c.l.bf16 %v412_v35  ;;  %v704_v62 = vunpack.c.h.bf16 %v412_v35  ;;  %v890_v2 = vunpack.c.h.bf16 %v508_v53  ;;  %v3419_v35 = vld [vmem:[%s3760_s23 + $0x18] sm:$0xff] }
 0x11b   : > { %3086 = vmatprep.subr.mxu0 %v758_v0  ;;  %1336 = vmatprep.mubr.f32.mxu0 %v3992_v8  ;;  %v749_v0 = vunpack.c.l.bf16 %v508_v53  ;;  %v564_v53 = vld [vmem:[#allocation5 + $0x38c] ss:$12 sps:$4 sm:$0xff]  }
 0x11c   : > { %1384 = vmatprep.mubr.f32.mxu1 %v3995_v9  ;;  %3009 = vmatpush3.msra.mxu1 %v611_v10  ;;  %v600_v10 = vld [vmem:[#allocation5 + $0x464] ss:$12 sps:$4 sm:$0xff]  }
 0x11d   : > { %3087 = vmatpush3.msra.mxu0 %v710_v11  ;;  %1385 = vmatmul.mubr.f32.gmra.mxu1 %v4001_v21  ;;  %v701_v11 = vunpack.c.l.bf16 %v476_v59  ;;  %v568_v21 = vld [vmem:[#allocation5 + $0x3a4] ss:$12 sps:$4 sm:$0xff]  }
 0x11e   : > { %1337 = vmatmul.mubr.f32.gmra.mxu0 %v3998_v20  ;;  %3010 = vmatprep.subr.mxu1 %v656_v22  ;;  %v3418_v22 = vld [vmem:[%s3760_s23] sm:$0xff]  ;;  %v836_v59 = vunpack.c.l.bf16 %v568_v21 }
 0x11f   : > { %3088 = vmatprep.subr.mxu0 %v755_v34  ;;  %3011 = vmatpush3.msra.mxu1 %v608_v36  ;;  %v887_v34 = vunpack.c.h.bf16 %v600_v10  ;;  %v839_v36 = vunpack.c.h.bf16 %v568_v21  ;;  %v3426_v21 = vld [vmem:[%s3760_s23 + $0x78] sm:$0xff] }
 0x120   : > { %3089 = vmatpush3.msra.mxu0 %v707_v39  ;;  %3012 = vmatprep.subr.mxu1 %v653_v46  ;;  %v596_v39 = vld [vmem:[#allocation5 + $0x44c] ss:$12 sps:$4 sm:$0xff]   ;;  %v3420_v46 = vld [vmem:[%s3760_s23 + $0x10] sm:$0xff] }
 0x121   : > { %3090 = vmatprep.subr.mxu0 %v752_v49  ;;  %3013 = vmatpush3.msra.mxu1 %v605_v56  ;;  %v884_v49 = vunpack.c.l.bf16 %v600_v10  ;;  %v3421_v56 = vld [vmem:[%s3760_s23 + $0x38] sm:$0xff]  ;;  %v3425_v10 = vld [vmem:[%s3760_s23 + $0x40] sm:$0xff] }
 0x122   : > { %1455 = vmatprep.mubr.f32.mxu1 %v3417_v12  ;;  %3091 = vmatpush3.msra.mxu0 %v704_v62  ;;  %v3422_v62 = vld [vmem:[%s3760_s23 + $0x30] sm:$0xff]  ;;  %v833_v12 = vunpack.c.h.bf16 %v564_v53 }
 0x123   : > { %1456 = vmatmul.mubr.f32.vlgmr.msra.gmra.mxu1 %v3418_v22  ;;  %3092 = vmatprep.subr.mxu0 %v749_v0  ;;  %v3423_v0 = vld [vmem:[%s3760_s23 + $0x48] sm:$0xff]  ;;  %v878_v22 = vunpack.c.l.bf16 %v596_v39 }
 0x124   : > { %3142 = vmatprep.subr.mxu1 %v890_v2  ;;  %3093 = vmatpush3.msra.mxu0 %v701_v11  ;;  %v881_v2 = vunpack.c.h.bf16 %v596_v39  ;;  %v3424_v11 = vld [vmem:[%s3760_s23 + $0x68] sm:$0xff] }
 0x125   : > { %1600 = vmatprep.mubr.f32.mxu0 %v3419_v35  ;;  %3143 = vmatpush3.msra.mxu1 %v842_v15  ;;  %v592_v15 = vld [vmem:[#allocation5 + $0x434] ss:$12 sps:$4 sm:$0xff]   ;;  %v830_v35 = vunpack.c.l.bf16 %v564_v53 }
 0x126   : > { %1601 = vmatmul.mubr.f32.vlgmr.msra.gmra.mxu0 %v3420_v46  ;;  %1460 = vmatprep.mubr.f32.mxu1 %v3421_v56  ;;  %v3427_v46 = vld [vmem:[%s3760_s23 + $0x60] sm:$0xff]  ;;  %v3428_v56 = vld [vmem:[%s3760_s23 + $0x98] sm:$0xff]  ;;  %v872_v39 = vunpack.c.l.bf16 %v592_v15 }
 0x127   : > { %3144 = vmatprep.subr.mxu1 %v887_v34  ;;  %1461 = vmatmul.mubr.f32.gmra.mxu1 %v3422_v62  ;;  %v560_v34 = vld [vmem:[#allocation5 + $0x374] ss:$12 sps:$4 sm:$0xff]  }
 0x128   : > { %1605 = vmatprep.mubr.f32.mxu0 %v3423_v0  ;;  %3145 = vmatpush3.msra.mxu1 %v839_v36  ;;  %v875_v36 = vunpack.c.h.bf16 %v592_v15  ;;  %v827_v62 = vunpack.c.h.bf16 %v560_v34  ;;  %v588_v0 = vld [vmem:[#allocation5 + $0x41c] ss:$12 sps:$4 sm:$0xff]   ;;  %v824_v53 = vunpack.c.l.bf16 %v560_v34 }
 0x129   : > { %1465 = vmatprep.mubr.f32.mxu1 %v3424_v11  ;;  %3146 = vmatprep.subr.mxu1 %v884_v49  ;;  %v3429_v49 = vld [vmem:[%s3760_s23 + $0x70] sm:$0xff]  ;;  %v556_v11 = vld [vmem:[#allocation5 + $0x35c] ss:$12 sps:$4 sm:$0xff]   ;;  %v866_v15 = vunpack.c.l.bf16 %v588_v0 }
 0x12a   : > { %1606 = vmatmul.mubr.f32.gmra.mxu0 %v3425_v10  ;;  %3147 = vmatpush3.msra.mxu1 %v836_v59  ;;  %v3430_v59 = vld [vmem:[%s3760_s23 + $0xa8] sm:$0xff]  ;;  %v869_v10 = vunpack.c.h.bf16 %v588_v0  ;;  %v818_v34 = vunpack.c.l.bf16 %v556_v11 }
 0x12b   : > { %1610 = vmatprep.mubr.f32.mxu0 %v3426_v21  ;;  %1466 = vmatmul.mubr.f32.gmra.mxu1 %v3427_v46  ;;  %v821_v21 = vunpack.c.h.bf16 %v556_v11  ;;  %v584_v46 = vld [vmem:[#allocation5 + $0x404] ss:$12 sps:$4 sm:$0xff]  }
 0x12c   : > { %3148 = vmatprep.subr.mxu1 %v881_v2  ;;  %1470 = vmatprep.mubr.f32.mxu1 %v3428_v56  ;;  %v3431_v2 = vld [vmem:[%s3760_s23 + $0x90] sm:$0xff]  ;;  %v860_v0 = vunpack.c.l.bf16 %v584_v46 }
 0x12d   : > { %3149 = vmatpush3.msra.mxu1 %v833_v12  ;;  %v3432_v12 = vld [vmem:[%s3760_s23 + $0xc8] sm:$0xff]  ;;  %v552_v56 = vld [vmem:[#allocation5 + $0x344] ss:$12 sps:$4 sm:$0xff]  }
 0x12e   : > { %1611 = vmatmul.mubr.f32.gmra.mxu0 %v3429_v49  ;;  %3150 = vmatprep.subr.mxu1 %v878_v22  ;;  %v3433_v22 = vld [vmem:[%s3760_s23 + $0xa0] sm:$0xff]  ;;  %v863_v49 = vunpack.c.h.bf16 %v584_v46  ;;  %v812_v11 = vunpack.c.l.bf16 %v552_v56 }
 0x12f   : > { %1615 = vmatprep.mubr.f32.mxu0 %v3430_v59  ;;  %3151 = vmatpush3.msra.mxu1 %v830_v35  ;;  %v3434_v35 = vld [vmem:[%s3760_s23 + $0xd8] sm:$0xff]  ;;  %v815_v59 = vunpack.c.h.bf16 %v552_v56 }
 0x130   : > { %1471 = vmatmul.mubr.f32.gmra.mxu1 %v3431_v2  ;;  %3152 = vmatprep.subr.mxu1 %v875_v36  ;;  %v3435_v36 = vld [vmem:[%s3760_s23 + $0xc0] sm:$0xff]  ;;  %v580_v2 = vld [vmem:[#allocation5 + $0x3ec] ss:$12 sps:$4 sm:$0xff]  }
 0x131   : > { %1475 = vmatprep.mubr.f32.mxu1 %v3432_v12  ;;  %3153 = vmatpush3.msra.mxu1 %v827_v62  ;;  %v3436_v62 = vld [vmem:[%s3760_s23 + $0xf8] sm:$0xff]  ;;  %v854_v46 = vunpack.c.l.bf16 %v580_v2 }
 0x132   : > { %1616 = vmatmul.mubr.f32.gmra.mxu0 %v3433_v22  ;;  %3154 = vmatprep.subr.mxu1 %v872_v39  ;;  %v3437_v39 = vld [vmem:[%s3760_s23 + $0xd0] sm:$0xff]  ;;  %v548_v12 = vld [vmem:[#allocation5 + $0x32c] ss:$12 sps:$4 sm:$0xff]   ;;  %v857_v22 = vunpack.c.h.bf16 %v580_v2 }
 0x133   : > { %1620 = vmatprep.mubr.f32.mxu0 %v3434_v35  ;;  %3155 = vmatpush3.msra.mxu1 %v824_v53  ;;  %v3438_v53 = vld [vmem:[%s3760_s23 + $0x108] sm:$0xff]  ;;  %v809_v35 = vunpack.c.h.bf16 %v548_v12  ;;  %v806_v56 = vunpack.c.l.bf16 %v548_v12 }
 0x134   : > { %1476 = vmatmul.mubr.f32.gmra.mxu1 %v3435_v36  ;;  %3156 = vmatprep.subr.mxu1 %v869_v10  ;;  %v3439_v10 = vld [vmem:[%s3760_s23 + $0xf0] sm:$0xff] }
 0x135   : > { %1480 = vmatprep.mubr.f32.mxu1 %v3436_v62  ;;  %3157 = vmatpush3.msra.mxu1 %v821_v21  ;;  %v3440_v21 = vld [vmem:[%s3760_s23 + $0x128] sm:$0xff]  ;;  %v576_v36 = vld [vmem:[#allocation5 + $0x3d4] ss:$12 sps:$4 sm:$0xff]  }
 0x136   : > { %1621 = vmatmul.mubr.f32.gmra.mxu0 %v3437_v39  ;;  %3158 = vmatprep.subr.mxu1 %v866_v15  ;;  %v3441_v15 = vld [vmem:[%s3760_s23 + $0x100] sm:$0xff]  ;;  %v851_v39 = vunpack.c.h.bf16 %v576_v36  ;;  %v848_v2 = vunpack.c.l.bf16 %v576_v36 }
 0x137   : > { %1625 = vmatprep.mubr.f32.mxu0 %v3438_v53  ;;  %3159 = vmatpush3.msra.mxu1 %v818_v34  ;;  %v544_v62 = vld [vmem:[#allocation5 + $0x314] ss:$12 sps:$4 sm:$0xff]   ;;  %v3442_v34 = vld [vmem:[%s3760_s23 + $0x138] sm:$0xff] }
 0x138   : > { %1481 = vmatmul.mubr.f32.gmra.mxu1 %v3439_v10  ;;  %3160 = vmatprep.subr.mxu1 %v863_v49  ;;  %v3443_v49 = vld [vmem:[%s3760_s23 + $0x120] sm:$0xff]  ;;  %v803_v53 = vunpack.c.h.bf16 %v544_v62  ;;  %v572_v10 = vld [vmem:[#allocation5 + $0x3c8] sm:$0xf]  ;;  %v800_v12 = vunpack.c.l.bf16 %v544_v62 }
 0x139   : > { %1485 = vmatprep.mubr.f32.mxu1 %v3440_v21  ;;  %3161 = vmatpush3.msra.mxu1 %v815_v59  ;;  %v3444_v59 = vld [vmem:[%s3760_s23 + $0x158] sm:$0xff]  ;;  %v540_v21 = vld [vmem:[#allocation5 + $0x308] sm:$0xf] }
 0x13a   : > { %1626 = vmatmul.mubr.f32.gmra.mxu0 %v3441_v15  ;;  %3162 = vmatprep.subr.mxu1 %v860_v0  ;;  %v3445_v0 = vld [vmem:[%s3760_s23 + $0x130] sm:$0xff]  ;;  %v797_v36 = vunpack.c.l.bf16 %v540_v21 }
 0x13b   : > { %1630 = vmatprep.mubr.f32.mxu0 %v3442_v34  ;;  %3163 = vmatpush3.msra.mxu1 %v812_v11  ;;  %v3446_v11 = vld [vmem:[%s3760_s23 + $0x168] sm:$0xff]  ;;  %v3447_v15 = vld [vmem:[%s3760_s23 + $0x150] sm:$0xff] }
 0x13c   : > { %1486 = vmatmul.mubr.f32.gmra.mxu1 %v3443_v49  ;;  %3164 = vmatprep.subr.mxu1 %v857_v22  ;;  %v1889_v22 = vld [vmem:[%s5106_s3 + $0x78] sm:$0xff]  ;;  %v3448_v34 = vld [vmem:[%s3760_s23 + $0x188] sm:$0xff]  ;;  %v3452_v21 = vld [vmem:[%s3760_s23 + $0x190] sm:$0xff] }
 0x13d   : > { %1490 = vmatprep.mubr.f32.mxu1 %v3444_v59  ;;  %3165 = vmatpush3.msra.mxu1 %v809_v35  ;;  %v845_v35 = vunpack.c.l.bf16 %v572_v10  ;;  %v1953_v62 = vunpack.c.h.bf16 %v1889_v22  ;;  %v3450_v49 = vld [vmem:[%s3760_s23 + $0x198] sm:$0xff]  ;;  %v1952_v59 = vunpack.c.l.bf16 %v1889_v22  ;;  %v3451_v10 = vld [vmem:[%s3760_s23 + $0x180] sm:$0xff] }
 0x13e   : > { %1631 = vmatmul.mubr.f32.gmra.mxu0 %v3445_v0  ;;  %3166 = vmatprep.subr.mxu1 %v854_v46  ;;  %v1888_v46 = vld [vmem:[%s5106_s3 + $0x70] sm:$0xff]  ;;  %v1885_v22 = vld [vmem:[%s5106_s3 + $0x58] sm:$0xff] }
 0x13f   : > { %1635 = vmatprep.mubr.f32.mxu0 %v3446_v11  ;;  %3167 = vmatpush3.msra.mxu1 %v806_v56  ;;  %v3449_v56 = vld [vmem:[%s3760_s23 + $0x160] sm:$0xff]  ;;  %v1950_v0 = vunpack.c.l.bf16 %v1888_v46 }
 0x140   : > { %1491 = vmatmul.mubr.f32.gmra.mxu1 %v3447_v15  ;;  %3168 = vmatprep.subr.mxu1 %v851_v39  ;;  %v1887_v39 = vld [vmem:[%s5106_s3 + $0x68] sm:$0xff] }
 0x141   : > { %1495 = vmatprep.mubr.f32.mxu1 %v3448_v34  ;;  %3169 = vmatpush3.msra.mxu1 %v803_v53  ;;  %v1951_v53 = vunpack.c.h.bf16 %v1888_v46  ;;  %v1949_v11 = vunpack.c.h.bf16 %v1887_v39  ;;  %v3453_v34 = vld [vmem:[%s3760_s23 + $0x1c0] sm:$0xff] }
 0x142   : > { %1636 = vmatmul.mubr.f32.gmra.mxu0 %v3449_v56  ;;  %3170 = vmatprep.subr.mxu1 %v848_v2  ;;  %v1886_v2 = vld [vmem:[%s5106_s3 + $0x60] sm:$0xff] }
 0x143   : > { %1640 = vmatprep.mubr.f32.mxu0 %v3450_v49  ;;  %3171 = vmatpush3.msra.mxu1 %v800_v12  ;;  %v1948_v12 = vunpack.c.l.bf16 %v1887_v39  ;;  %v1946_v15 = vunpack.c.l.bf16 %v1886_v2  ;;  %v1882_v56 = vld [vmem:[%s5106_s3 + $0x40] sm:$0xff] }
 0x144   : > { %1496 = vmatmul.mubr.f32.gmra.mxu1 %v3451_v10  ;;  %3172 = vmatprep.subr.mxu1 %v845_v35  ;;  %v1884_v35 = vld [vmem:[%s5106_s3 + $0x50] sm:$0xff]  ;;  %v1938_v49 = vunpack.c.l.bf16 %v1882_v56 }
 0x145   : > { %1500 = vmatprep.mubr.f32.mxu1 %v3807_v27  ;;  %3173 = vmatpush3.msra.mxu1 %v797_v36  ;;  %v1947_v27 = vunpack.c.h.bf16 %v1886_v2  ;;  %v1944_v36 = vunpack.c.l.bf16 %v1885_v22  ;;  %v1942_v46 = vunpack.c.l.bf16 %v1884_v35  ;;  %v1877_v2 = vld [vmem:[%s5106_s3 + $0x18] sm:$0xff] }
 0x146   : > { %1641 = vmatmul.mubr.f32.gmra.mxu0 %v3452_v21  ;;  %2030 = vmatprep.subr.mxu0 %v1953_v62 }
 0x147   : > { %1645 = vmatprep.mubr.f32.mxu0 %v3810_v28  ;;  %2031 = vmatpush1.msra.mxu0 %v1952_v59  ;;  %v1945_v28 = vunpack.c.h.bf16 %v1885_v22 }
 0x148   : > { %1501 = vmatmul.mubr.f32.gmra.mxu1 %v3813_v30  ;;  %2032 = vmatprep.subr.mxu0 %v1951_v53  ;;  %v1883_v30 = vld [vmem:[%s5106_s3 + $0x48] sm:$0xff] }
 0x149   : > { %1505 = vmatprep.mubr.f32.mxu1 %v3820_v37  ;;  %2033 = vmatpush1.msra.mxu0 %v1950_v0  ;;  %v1943_v37 = vunpack.c.h.bf16 %v1884_v35  ;;  %v1940_v62 = vunpack.c.l.bf16 %v1883_v30  ;;  %v1874_v35 = vld [vmem:[%s5106_s3] sm:$0xff] }
 0x14a   : > { %1646 = vmatmul.mubr.f32.gmra.mxu0 %v3453_v34  ;;  %2034 = vmatprep.subr.mxu0 %v1949_v11  ;;  %v1929_v11 = vunpack.c.h.bf16 %v1877_v2 }
 0x14b   : > { %1650 = vmatprep.mubr.f32.mxu0 %v3823_v38  ;;  %2035 = vmatpush1.msra.mxu0 %v1948_v12  ;;  %v1941_v38 = vunpack.c.h.bf16 %v1883_v30 }
 0x14c   : > { %1506 = vmatmul.mubr.f32.gmra.mxu1 %v3826_v40  ;;  %2036 = vmatprep.subr.mxu0 %v1947_v27  ;;  %v1881_v40 = vld [vmem:[%s5106_s3 + $0x38] sm:$0xff] }
 0x14d   : > { %1510 = vmatprep.mubr.f32.mxu1 %v3836_v47  ;;  %2037 = vmatpush1.msra.mxu0 %v1946_v15  ;;  %v1939_v47 = vunpack.c.h.bf16 %v1882_v56  ;;  %v1936_v59 = vunpack.c.l.bf16 %v1881_v40  ;;  %v1903_v56 = vld [vmem:[%s5106_s3 + $0xe8] sm:$0xff] }
 0x14e   : > { %1651 = vmatmul.mubr.f32.gmra.mxu0 %v3829_v41  ;;  %2038 = vmatprep.subr.mxu0 %v1945_v28  ;;  %v1880_v41 = vld [vmem:[%s5106_s3 + $0x30] sm:$0xff]  ;;  %v1923_v28 = vunpack.c.h.bf16 %v1874_v35 }
 0x14f   : > { %1655 = vmatprep.mubr.f32.mxu0 %v3839_v48  ;;  %2039 = vmatpush1.msra.mxu0 %v1944_v36  ;;  %v1937_v48 = vunpack.c.h.bf16 %v1881_v40  ;;  %v1981_v40 = vunpack.c.h.bf16 %v1903_v56 }
 0x150   : > { %1511 = vmatmul.mubr.f32.gmra.mxu1 %v3842_v50  ;;  %2040 = vmatprep.subr.mxu0 %v1943_v37  ;;  %v1879_v50 = vld [vmem:[%s5106_s3 + $0x28] sm:$0xff] }
 0x151   : > { %1515 = vmatprep.mubr.f32.mxu1 %v3852_v57  ;;  %2041 = vmatpush1.msra.mxu0 %v1942_v46  ;;  %v1935_v57 = vunpack.c.h.bf16 %v1880_v41  ;;  %v1933_v53 = vunpack.c.h.bf16 %v1879_v50 }
 0x152   : > { %1656 = vmatmul.mubr.f32.gmra.mxu0 %v3845_v51  ;;  %2042 = vmatprep.subr.mxu0 %v1941_v38  ;;  %v1934_v51 = vunpack.c.l.bf16 %v1880_v41  ;;  %v1980_v41 = vunpack.c.l.bf16 %v1903_v56 }
 0x153   : > { %1660 = vmatprep.mubr.f32.mxu0 %v3855_v58  ;;  %2043 = vmatpush1.msra.mxu0 %v1940_v62  ;;  %v1878_v58 = vld [vmem:[%s5106_s3 + $0x20] sm:$0xff] }
 0x154   : > { %1516 = vmatmul.mubr.f32.gmra.mxu1 %v3858_v60  ;;  %2044 = vmatprep.subr.mxu0 %v1939_v47  ;;  %v4092_v39 = vpop.f32.mrf.mxu0  ;;  %v1931_v21 = vunpack.c.h.bf16 %v1878_v58  ;;  %v1902_v62 = vld [vmem:[%s5106_s3 + $0xe0] sm:$0xff] }
 0x155   : > { %1520 = vmatprep.mubr.f32.mxu1 %v3868_v3  ;;  %v4094_v10 = vpop.f32.mrf.mxu1  ;;  %2045 = vmatpush1.msra.mxu0 %v1938_v49  ;;  %v1932_v3 = vunpack.c.l.bf16 %v1879_v50  ;;  %v1978_v50 = vunpack.c.l.bf16 %v1902_v62 }
 0x156   : > { %1661 = vmatmul.mubr.f32.gmra.mxu0 %v3861_v61  ;;  %2046 = vmatprep.subr.mxu0 %v1937_v48  ;;  %v4101_v60 = vpop.f32.mrf.mxu0  ;;  %v1930_v61 = vunpack.c.l.bf16 %v1878_v58 }
 0x157   : > { %1665 = vmatprep.mubr.f32.mxu0 %v3871_v4  ;;  %v4103_v0 = vpop.f32.mrf.mxu1  ;;  %2047 = vmatpush1.msra.mxu0 %v1936_v59  ;;  %v1876_v4 = vld [vmem:[%s5106_s3 + $0x10] sm:$0xff] }
 0x158   : > { %1521 = vmatmul.mubr.f32.gmra.mxu1 %v3874_v6  ;;  %2048 = vmatprep.subr.mxu0 %v1935_v57  ;;  %v1928_v6 = vunpack.c.l.bf16 %v1877_v2  ;;  %v1927_v27 = vunpack.c.h.bf16 %v1876_v4  ;;  %v1900_v57 = vld [vmem:[%s5106_s3 + $0xd0] sm:$0xff] }
 0x159   : > { %1525 = vmatprep.mubr.f32.mxu1 %v3884_v13  ;;  %2049 = vmatpush1.msra.mxu0 %v1934_v51  ;;  %v1875_v13 = vld [vmem:[%s5106_s3 + $0x8] sm:$0xff]  ;;  %v1974_v2 = vunpack.c.l.bf16 %v1900_v57 }
 0x15a   : > { %1666 = vmatmul.mubr.f32.gmra.mxu0 %v3877_v7  ;;  %2050 = vmatprep.subr.mxu0 %v1933_v53  ;;  %v4115_v12 = vpop.f32.mrf.mxu0  ;;  %v1925_v34 = vunpack.c.h.bf16 %v1875_v13 }
 0x15b   : > { %1670 = vmatprep.mubr.f32.mxu0 %v3887_v14  ;;  %v4117_v22 = vpop.f32.mrf.mxu1  ;;  %2051 = vmatpush1.msra.mxu0 %v1932_v3  ;;  %v1926_v14 = vunpack.c.l.bf16 %v1876_v4 }
 0x15c   : > { %1526 = vmatmul.mubr.f32.gmra.mxu1 %v3890_v16  ;;  %2052 = vmatprep.subr.mxu0 %v1931_v21  ;;  %v4124_v7 = vpop.f32.mrf.mxu0  ;;  %v1924_v16 = vunpack.c.l.bf16 %v1875_v13  ;;  %v1898_v21 = vld [vmem:[%s5106_s3 + $0xc0] sm:$0xff] }
 0x15d   : > { %1530 = vmatprep.mubr.f32.mxu1 %v3900_v23  ;;  %v4126_v15 = vpop.f32.mrf.mxu1  ;;  %2053 = vmatpush1.msra.mxu0 %v1930_v61  ;;  %v1905_v23 = vld [vmem:[%s5106_s3 + $0xf8] sm:$0xff]  ;;  %v1971_v13 = vunpack.c.h.bf16 %v1898_v21 }
 0x15e   : > { %1671 = vmatmul.mubr.f32.gmra.mxu0 %v3893_v17  ;;  %2054 = vmatprep.subr.mxu0 %v1929_v11  ;;  %v1922_v17 = vunpack.c.l.bf16 %v1874_v35  ;;  %v1985_v37 = vunpack.c.h.bf16 %v1905_v23  ;;  %v1970_v35 = vunpack.c.l.bf16 %v1898_v21 }
 0x15f   : > { %1675 = vmatprep.mubr.f32.mxu0 %v3903_v24  ;;  %2055 = vmatpush1.msra.mxu0 %v1928_v6  ;;  %v1904_v24 = vld [vmem:[%s5106_s3 + $0xf0] sm:$0xff]  ;;  %v1921_v6 = vld [vmem:[%s5106_s3 + $0x178] sm:$0xff] }
 0x160   : > { %1531 = vmatmul.mubr.f32.gmra.mxu1 %v3906_v26  ;;  %2056 = vmatprep.subr.mxu0 %v1927_v27  ;;  %v4138_v36 = vpop.f32.mrf.mxu0  ;;  %v1983_v38 = vunpack.c.h.bf16 %v1904_v24  ;;  %v2016_v27 = vunpack.c.l.bf16 %v1921_v6 }
 0x161   : > { %1745 = vmatprep.mubr.f32.mxu1 %v3916_v42  ;;  %v4140_v30 = vpop.f32.mrf.mxu1  ;;  %2057 = vmatpush1.msra.mxu0 %v1926_v14  ;;  %v1984_v42 = vunpack.c.l.bf16 %v1905_v23  ;;  %v2017_v14 = vunpack.c.h.bf16 %v1921_v6 }
 0x162   : > { %1676 = vmatmul.mubr.f32.gmra.mxu0 %v3909_v29  ;;  %2058 = vmatprep.subr.mxu0 %v1925_v34  ;;  %v4146_v46 = vpop.f32.mrf.mxu0  ;;  %v1982_v29 = vunpack.c.l.bf16 %v1904_v24  ;;  %v1896_v34 = vld [vmem:[%s5106_s3 + $0xb0] sm:$0xff] }
 0x163   : > { %v4148_v26 = vpop.f32.mrf.mxu1  ;;  %2059 = vmatpush1.msra.mxu0 %v1924_v16  ;;  %2191 = vmatprep.subr.mxu1 %v2017_v14  ;;  %v1967_v24 = vunpack.c.h.bf16 %v1896_v34 }
 0x164   : > { %1746 = vmatmul.mubr.f32.vlgmr.msra.gmra.mxu1 %v3920_v44  ;;  %2060 = vmatprep.subr.mxu0 %v1923_v28  ;;  %v1901_v44 = vld [vmem:[%s5106_s3 + $0xd8] sm:$0xff] }
 0x165   : > { %1750 = vmatprep.mubr.f32.mxu1 %v3925_v55  ;;  %2061 = vmatpush1.msra.mxu0 %v1922_v17  ;;  %v1979_v55 = vunpack.c.h.bf16 %v1902_v62  ;;  %v1977_v51 = vunpack.c.h.bf16 %v1901_v44  ;;  %v1976_v58 = vunpack.c.l.bf16 %v1901_v44  ;;  %v1895_v17 = vld [vmem:[%s5106_s3 + $0xa8] sm:$0xff]  ;;  %v1894_v62 = vld [vmem:[%s5106_s3 + $0xa0] sm:$0xff] }
 0x166   : > { %2062 = vmatprep.subr.mxu0 %v1985_v37  ;;  %v4158_v47 = vpop.f32.mrf.mxu0  ;;  %2192 = vmatpush1.msra.mxu1 %v2016_v27  ;;  %v1963_v44 = vunpack.c.h.bf16 %v1894_v62  ;;  %v1890_v27 = vld [vmem:[%s5106_s3 + $0x80] sm:$0xff] }
 0x167   : > { %v4160_v49 = vpop.f32.mrf.mxu1  ;;  %2063 = vmatpush2.msra.mxu0 %v1984_v42 }
 0x168   : > { %1751 = vmatmul.mubr.f32.gmra.mxu1 %v3931_v1  ;;  %2064 = vmatprep.subr.mxu0 %v1983_v38  ;;  %v4167_v48 = vpop.f32.mrf.mxu0  ;;  %v1899_v1 = vld [vmem:[%s5106_s3 + $0xc8] sm:$0xff] }
 0x169   : > { %1755 = vmatprep.mubr.f32.mxu1 %v3936_v19  ;;  %v4169_v59 = vpop.f32.mrf.mxu1  ;;  %2065 = vmatpush2.msra.mxu0 %v1982_v29  ;;  %v1975_v19 = vunpack.c.h.bf16 %v1900_v57  ;;  %v1973_v61 = vunpack.c.h.bf16 %v1899_v1  ;;  %v1966_v29 = vunpack.c.l.bf16 %v1896_v34 }
 0x16a   : > { %2066 = vmatprep.subr.mxu0 %v1981_v40  ;;  %v1965_v40 = vunpack.c.h.bf16 %v1895_v17 }
 0x16b   : > { %2067 = vmatpush2.msra.mxu0 %v1980_v41  ;;  %v1893_v41 = vld [vmem:[%s5106_s3 + $0x98] sm:$0xff] }
 0x16c   : > { %1756 = vmatmul.mubr.f32.gmra.mxu1 %v3940_v32  ;;  %2068 = vmatprep.subr.mxu0 %v1979_v55  ;;  %v4179_v53 = vpop.f32.mrf.mxu0  ;;  %v1972_v32 = vunpack.c.l.bf16 %v1899_v1  ;;  %v1892_v1 = vld [vmem:[%s5106_s3 + $0x90] sm:$0xff]  ;;  %v1960_v21 = vunpack.c.l.bf16 %v1893_v41 }
 0x16d   : > { %1760 = vmatprep.mubr.f32.mxu1 %v3946_v52  ;;  %v4181_v3 = vpop.f32.mrf.mxu1  ;;  %2069 = vmatpush2.msra.mxu0 %v1978_v50  ;;  %v1897_v52 = vld [vmem:[%s5106_s3 + $0xb8] sm:$0xff] }
 0x16e   : > { %2070 = vmatprep.subr.mxu0 %v1977_v51  ;;  %v4186_v4 = vpop.f32.mrf.mxu0  ;;  %v1969_v16 = vunpack.c.h.bf16 %v1897_v52 }
 0x16f   : > { %v4188_v11 = vpop.f32.mrf.mxu1  ;;  %2071 = vmatpush2.msra.mxu0 %v1976_v58  ;;  %v1962_v58 = vunpack.c.l.bf16 %v1894_v62 }
 0x170   : > { %1761 = vmatmul.mubr.f32.gmra.mxu1 %v3950_v63  ;;  %2072 = vmatprep.subr.mxu0 %v1975_v19  ;;  %v1968_v63 = vunpack.c.l.bf16 %v1897_v52  ;;  %v1961_v19 = vunpack.c.h.bf16 %v1893_v41 }
 0x171   : > { %1765 = vmatprep.mubr.f32.mxu1 %v3956_v18  ;;  %2073 = vmatpush2.msra.mxu0 %v1974_v2  ;;  %v1920_v18 = vld [vmem:[%s5106_s3 + $0x170] sm:$0xff] }
 0x172   : > { %2074 = vmatprep.subr.mxu0 %v1973_v61  ;;  %v4201_v23 = vpop.f32.mrf.mxu0  ;;  %v2014_v37 = vunpack.c.l.bf16 %v1920_v18  ;;  %v2015_v42 = vunpack.c.h.bf16 %v1920_v18  ;;  %v1918_v61 = vld [vmem:[%s5106_s3 + $0x160] sm:$0xff]  ;;  %v3454_v18 = vld [vmem:[%s3760_s23 + $0x1a8] sm:$0xff] }
 0x173   : > { %v4203_v28 = vpop.f32.mrf.mxu1  ;;  %2075 = vmatpush2.msra.mxu0 %v1972_v32  ;;  %v1959_v32 = vunpack.c.h.bf16 %v1892_v1  ;;  %v2010_v52 = vunpack.c.l.bf16 %v1918_v61  ;;  %v2011_v6 = vunpack.c.h.bf16 %v1918_v61 }
 0x174   : > { %1766 = vmatmul.mubr.f32.gmra.mxu1 %v3960_v33  ;;  %2076 = vmatprep.subr.mxu0 %v1971_v13  ;;  %v4213_v56 = vpop.f32.mrf.mxu0  ;;  %v1964_v33 = vunpack.c.l.bf16 %v1895_v17  ;;  %v1958_v13 = vunpack.c.l.bf16 %v1892_v1 }
 0x175   : > { %1770 = vmatprep.mubr.f32.mxu1 %v3966_v54  ;;  %v4215_v38 = vpop.f32.mrf.mxu1  ;;  %2077 = vmatpush2.msra.mxu0 %v1970_v35  ;;  %v1919_v54 = vld [vmem:[%s5106_s3 + $0x168] sm:$0xff] }
 0x176   : > { %2078 = vmatprep.subr.mxu0 %v1969_v16  ;;  %2193 = vmatprep.subr.mxu1 %v2015_v42  ;;  %v2012_v55 = vunpack.c.l.bf16 %v1919_v54  ;;  %v2013_v50 = vunpack.c.h.bf16 %v1919_v54  ;;  %v1955_v16 = vunpack.c.h.bf16 %v1890_v27  ;;  %v1954_v42 = vunpack.c.l.bf16 %v1890_v27  ;;  %v3460_v27 = vld [vmem:[%s3760_s23 + $0x238] sm:$0xff] }
 0x177   : > { %2079 = vmatpush2.msra.mxu0 %v1968_v63  ;;  %2194 = vmatpush1.msra.mxu1 %v2014_v37 }
 0x178   : > { %1771 = vmatmul.mubr.f32.gmra.mxu1 %v3970_v5  ;;  %2080 = vmatprep.subr.mxu0 %v1967_v24  ;;  %v4228_v57 = vpop.f32.mrf.mxu0 }
 0x179   : > { %1775 = vmatprep.mubr.f32.mxu1 %v3976_v25  ;;  %v4230_v51 = vpop.f32.mrf.mxu1  ;;  %2081 = vmatpush2.msra.mxu0 %v1966_v29  ;;  %v1891_v25 = vld [vmem:[%s5106_s3 + $0x88] sm:$0xff]  ;;  %v3455_v29 = vld [vmem:[%s3760_s23 + $0x1a0] sm:$0xff] }
 0x17a   : > { %2082 = vmatprep.subr.mxu0 %v1965_v40  ;;  %2195 = vmatprep.subr.mxu1 %v2013_v50  ;;  %v4235_v5 = vpop.f32.mrf.mxu0  ;;  %v1957_v14 = vunpack.c.h.bf16 %v1891_v25  ;;  %v1915_v50 = vld [vmem:[%s5106_s3 + $0x148] sm:$0xff] }
 0x17b   : > { %v4237_v2 = vpop.f32.mrf.mxu1  ;;  %2083 = vmatpush2.msra.mxu0 %v1964_v33  ;;  %2196 = vmatpush1.msra.mxu1 %v2012_v55  ;;  %v3456_v33 = vld [vmem:[%s3760_s23 + $0x1d8] sm:$0xff]  ;;  %v2004_v1 = vunpack.c.l.bf16 %v1915_v50 }
 0x17c   : > { %1776 = vmatmul.mubr.f32.gmra.mxu1 %v3982_v43  ;;  %2084 = vmatprep.subr.mxu0 %v1963_v44  ;;  %v1956_v43 = vunpack.c.l.bf16 %v1891_v25 }
 0x17d   : > { %1780 = vmatprep.mubr.f32.mxu1 %v3992_v8  ;;  %2085 = vmatpush2.msra.mxu0 %v1962_v58  ;;  %v1917_v8 = vld [vmem:[%s5106_s3 + $0x158] sm:$0xff]  ;;  %v3457_v58 = vld [vmem:[%s3760_s23 + $0x1d0] sm:$0xff] }
 0x17e   : > { %2086 = vmatprep.subr.mxu0 %v1961_v19  ;;  %2197 = vmatprep.subr.mxu1 %v2011_v6  ;;  %v4250_v35 = vpop.f32.mrf.mxu0  ;;  %v2008_v63 = vunpack.c.l.bf16 %v1917_v8  ;;  %v2009_v17 = vunpack.c.h.bf16 %v1917_v8  ;;  %v2005_v19 = vunpack.c.h.bf16 %v1915_v50  ;;  %v1913_v8 = vld [vmem:[%s5106_s3 + $0x138] sm:$0xff] }
 0x17f   : > { %v4252_v34 = vpop.f32.mrf.mxu1  ;;  %2087 = vmatpush2.msra.mxu0 %v1960_v21  ;;  %2198 = vmatpush1.msra.mxu1 %v2010_v52  ;;  %v3458_v21 = vld [vmem:[%s3760_s23 + $0x208] sm:$0xff]  ;;  %v3459_v52 = vld [vmem:[%s3760_s23 + $0x200] sm:$0xff] }
 0x180   : > { %1781 = vmatmul.mubr.f32.gmra.mxu1 %v3998_v20  ;;  %2088 = vmatprep.subr.mxu0 %v1959_v32  ;;  %v4259_v24 = vpop.f32.mrf.mxu0  ;;  %v1916_v20 = vld [vmem:[%s5106_s3 + $0x150] sm:$0xff]  ;;  %v1914_v32 = vld [vmem:[%s5106_s3 + $0x140] sm:$0xff] }
 0x181   : > { %1785 = vmatprep.mubr.f32.mxu1 %v3454_v18  ;;  %v4261_v37 = vpop.f32.mrf.mxu1  ;;  %2089 = vmatpush2.msra.mxu0 %v1958_v13  ;;  %v2006_v62 = vunpack.c.l.bf16 %v1916_v20  ;;  %v2007_v40 = vunpack.c.h.bf16 %v1916_v20  ;;  %v2002_v6 = vunpack.c.l.bf16 %v1914_v32  ;;  %v2003_v13 = vunpack.c.h.bf16 %v1914_v32  ;;  %v3462_v18 = vld [vmem:[%s3760_s23 + $0x268] sm:$0xff] }
 0x182   : > { %2090 = vmatprep.subr.mxu0 %v1957_v14  ;;  %2199 = vmatprep.subr.mxu1 %v2009_v17  ;;  %v2001_v17 = vunpack.c.h.bf16 %v1913_v8  ;;  %v1911_v32 = vld [vmem:[%s5106_s3 + $0x128] sm:$0xff] }
 0x183   : > { %2091 = vmatpush2.msra.mxu0 %v1956_v43  ;;  %2200 = vmatpush1.msra.mxu1 %v2008_v63  ;;  %v2000_v63 = vunpack.c.l.bf16 %v1913_v8 }
 0x184   : > { %1786 = vmatmul.mubr.f32.gmra.mxu1 %v3455_v29  ;;  %2092 = vmatprep.subr.mxu0 %v1955_v16  ;;  %v4268_v41 = vpop.f32.mrf.mxu0  ;;  %v3461_v16 = vld [vmem:[%s3760_s23 + $0x230] sm:$0xff] }
 0x185   : > { %1790 = vmatprep.mubr.f32.mxu1 %v3456_v33  ;;  %v4270_v54 = vpop.f32.mrf.mxu1  ;;  %2093 = vmatpush2.msra.mxu0 %v1954_v42  ;;  %v3463_v33 = vld [vmem:[%s3760_s23 + $0x260] sm:$0xff] }
 0x186   : > { %2201 = vmatprep.subr.mxu1 %v2007_v40  ;;  %v4272_v44 = vpop.f32.mrf.mxu0  ;;  %v1912_v40 = vld [vmem:[%s5106_s3 + $0x130] sm:$0xff] }
 0x187   : > { %v4274_v55 = vpop.f32.mrf.mxu1  ;;  %2202 = vmatpush1.msra.mxu1 %v2006_v62  ;;  %v1998_v50 = vunpack.c.l.bf16 %v1912_v40 }
 0x188   : > { %1791 = vmatmul.mubr.f32.gmra.mxu1 %v3457_v58  ;;  %2203 = vmatprep.subr.mxu1 %v2005_v19  ;;  %v1999_v58 = vunpack.c.h.bf16 %v1912_v40 }
 0x189   : > { %1795 = vmatprep.mubr.f32.mxu1 %v3458_v21  ;;  %2204 = vmatpush1.msra.mxu1 %v2004_v1  ;;  %v3464_v1 = vld [vmem:[%s3760_s23 + $0x298] sm:$0xff] }
 0x18a   : > { %v4281_v25 = vpop.f32.mrf.mxu0  ;;  %2205 = vmatprep.subr.mxu1 %v2003_v13  ;;  %v1997_v13 = vunpack.c.h.bf16 %v1911_v32 }
 0x18b   : > { %v4283_v61 = vpop.f32.mrf.mxu1  ;;  %2206 = vmatpush1.msra.mxu1 %v2002_v6  ;;  %v1996_v6 = vunpack.c.l.bf16 %v1911_v32  ;;  %v893_v32 = vlaneseq }
 0x18c   : > { %1796 = vmatmul.mubr.f32.gmra.mxu1 %v3459_v52  ;;  %v4290_v14 = vpop.f32.mrf.mxu0  ;;  %2207 = vmatprep.subr.mxu1 %v2001_v17  ;;  %v3465_v52 = vld [vmem:[%s3760_s23 + $0x290] sm:$0xff] }
 0x18d   : > { %1800 = vmatprep.mubr.f32.mxu1 %v3460_v27  ;;  %v4292_v43 = vpop.f32.mrf.mxu1  ;;  %2208 = vmatpush1.msra.mxu1 %v2000_v63 }
 0x18e   : > { %2209 = vmatprep.subr.mxu1 %v1999_v58  ;;  %v5140_v58 = vld [vmem:[#allocation11_spill] sm:$0xff] }
 0x18f   : > { %2210 = vmatpush1.msra.mxu1 %v1998_v50  ;;  %v1909_v50 = vld [vmem:[%s5106_s3 + $0x118] sm:$0xff] }
 0x190   : > { %1801 = vmatmul.mubr.f32.gmra.mxu1 %v3461_v16  ;;  %v4299_v42 = vpop.f32.mrf.mxu0  ;;  %2211 = vmatprep.subr.mxu1 %v1997_v13  ;;  %v1910_v16 = vld [vmem:[%s5106_s3 + $0x120] sm:$0xff] }
 0x191   : > { %1805 = vmatprep.mubr.f32.mxu1 %v3462_v18  ;;  %v4301_v20 = vpop.f32.mrf.mxu1  ;;  %2212 = vmatpush1.msra.mxu1 %v1996_v6  ;;  %v1994_v63 = vunpack.c.l.bf16 %v1910_v16  ;;  %v1995_v17 = vunpack.c.h.bf16 %v1910_v16  ;;  %v1908_v6 = vld [vmem:[%s5106_s3 + $0x110] sm:$0xff] }
 0x192   : > { %v4303_v29 = vpop.f32.mrf.mxu0  ;;  %v1990_v13 = vunpack.c.l.bf16 %v1908_v6  ;;  %v1991_v16 = vunpack.c.h.bf16 %v1908_v6  ;;  %v5116_v6 = vmov 0.0  }
 0x193   : > { %v4305_v62 = vpop.f32.mrf.mxu1  ;;  %2213 = vmatprep.subr.mxu1 %v1995_v17  ;;  %2488 = vmatprep.subr.mxu0 %v5116_v6 }
 0x194   : > { %1806 = vmatmul.mubr.f32.gmra.mxu1 %v3463_v33 }
 0x195   : > { %1810 = vmatprep.mubr.f32.mxu1 %v3464_v1  ;;  %2214 = vmatpush1.msra.mxu1 %v1994_v63  ;;  %v1993_v1 = vunpack.c.h.bf16 %v1909_v50  ;;  %v4349_v63 = vshrl.u32 %v893_v32, 7 }
 0x196   : > { %v4312_v19 = vpop.f32.mrf.mxu0 }
 0x197   : > { %v4314_v21 = vpop.f32.mrf.mxu1  ;;  %2215 = vmatprep.subr.mxu1 %v1993_v1  ;;  %5143 = vst [vmem:[#allocation17_spill] sm:$0xff] %v4349_v63 }
 0x198   : > { %5136 = vst [vmem:[#allocation12_spill] sm:$0xff] %v4314_v21  ;;  %1811 = vmatmul.mubr.f32.gmra.mxu1 %v3465_v52  ;;  %v4321_v27 = vpop.f32.mrf.mxu0 }
 0x199   : > { %1815 = vmatprep.mubr.f32.mxu1 %v3979_v31  ;;  %v4323_v8 = vpop.f32.mrf.mxu1 }
 0x19c   : > { %1816 = vmatmul.mubr.f32.gmra.mxu1 %v3985_v45  ;;  %v4330_v18 = vpop.f32.mrf.mxu0  ;;  %v1992_v45 = vunpack.c.l.bf16 %v1909_v50  ;;  %v1907_v50 = vld [vmem:[%s5106_s3 + $0x108] sm:$0xff] }
 0x19d   : > { %1820 = vmatprep.mubr.f32.mxu1 %v3995_v9  ;;  %5137 = vst [vmem:[#allocation13_spill] sm:$0xff] %v4330_v18  ;;  %v4332_v40 = vpop.f32.mrf.mxu1  ;;  %v1988_v1 = vunpack.c.l.bf16 %v1907_v50 }
 0x19e   : > { %5138 = vst [vmem:[#allocation14_spill] sm:$0xff] %v4332_v40  ;;  %v4334_v31 = vpop.f32.mrf.mxu0  ;;  %2216 = vmatpush1.msra.mxu1 %v1992_v45  ;;  %v1989_v45 = vunpack.c.h.bf16 %v1907_v50 }
 0x19f   : > { %v4336_v33 = vpop.f32.mrf.mxu1  ;;  %2217 = vmatprep.subr.mxu1 %v1991_v16  ;;  %v4369_v16 = vld [vmem:[%s5105_s2] sm:$0x7] }
 0x1a0   : > { %5139 = vst [vmem:[#allocation15_spill] sm:$0xff] %v4336_v33  ;;  %1821 = vmatmul.mubr.f32.gmra.mxu1 %v5140_v58  ;;  %5148 = vst [vmem:[#allocation22_spill] sm:$0xff] %v4369_v16 }
 0x1a1   : > { %2218 = vmatpush1.msra.mxu1 %v1990_v13  ;;  %v5120_v13 = vsub.s32 1, %v4349_v63  ;;  %2255 = vmatprep.mubr.f32.mxu1 %v5116_v6 }
 0x1a2   : > { %v4342_v9 = vpop.f32.mrf.mxu0  ;;  %2219 = vmatprep.subr.mxu1 %v1989_v45  ;;  %v5151_v45 = vsub.s32 0, %v4349_v63 }
 0x1a3   : > { %5141 = vst [vmem:[#allocation11_spill] sm:$0xff] %v4342_v9  ;;  %v4344_v52 = vpop.f32.mrf.mxu1  ;;  %2220 = vmatpush1.msra.mxu1 %v1988_v1 }
 0x1a4   : > { %5142 = vst [vmem:[#allocation16_spill] sm:$0xff] %v4344_v52  ;;  %v4351_v17 = vpop.f32.mrf.mxu0  ;;  %v1906_v52 = vld [vmem:[%s5106_s3 + $0x100] sm:$0xff] }
 0x1a5   : > { %5144 = vst [vmem:[#allocation18_spill] sm:$0xff] %v4351_v17  ;;  %v4353_v58 = vpop.f32.mrf.mxu1  ;;  %v1986_v50 = vunpack.c.l.bf16 %v1906_v52 }
 0x1a6   : > { %5145 = vst [vmem:[#allocation19_spill] sm:$0xff] %v4353_v58  ;;  %v1987_v58 = vunpack.c.h.bf16 %v1906_v52  ;;  %v4386_v52 = vrot.slane %v4369_v16, %v5120_v13 }
 0x1a8   : > { %v4362_v32 = vpop.f32.mrf.mxu0  ;;  %2221 = vmatprep.subr.mxu1 %v1987_v58 }
 0x1a9   : > { %5146 = vst [vmem:[#allocation20_spill] sm:$0xff] %v4362_v32  ;;  %v4364_v9 = vpop.f32.mrf.mxu1  ;;  %2222 = vmatpush1.msra.mxu1 %v1986_v50 }
 0x1aa   : > { %5147 = vst [vmem:[#allocation21_spill] sm:$0xff] %v4364_v9  ;;  %v4372_v40 = vpop.f32.mrf.mxu0  ;;  %v4380_v9 = vrot.slane %v4369_v16, %v5151_v45  ;;  %v977_v45 = vadd.f32 %v4101_v60, %v4386_v52 }
 0x1ab   : > { %5149 = vst [vmem:[#allocation23_spill] sm:$0xff] %v4372_v40  ;;  %v4374_v17 = vpop.f32.mrf.mxu1 }
 0x1ac   : > { %5150 = vst [vmem:[#allocation24_spill] sm:$0xff] %v4374_v17  ;;  %v975_v58 = vadd.f32 %v4092_v39, %v4380_v9  ;;  %v1138_v13 = vadd.f32 %v4103_v0, %v977_v45  ;;  %v981_v16 = vadd.f32 %v4115_v12, %v4380_v9  ;;  %v983_v39 = vadd.f32 %v4124_v7, %v4386_v52 }
 0x1ad   : > { %v987_v12 = vadd.f32 %v4138_v36, %v4380_v9  ;;  %v993_v36 = vadd.f32 %v4158_v47, %v4380_v9  ;;  %v999_v47 = vadd.f32 %v4179_v53, %v4380_v9  ;;  %v1005_v53 = vadd.f32 %v4201_v23, %v4380_v9 }
 0x1ae   : > { %v4388_v1 = vpop.f32.mrf.mxu0  ;;  %v1136_v6 = vadd.f32 %v4094_v10, %v975_v58  ;;  %v1142_v60 = vadd.f32 %v4117_v22, %v981_v16  ;;  %v1144_v18 = vadd.f32 %v4126_v15, %v983_v39  ;;  %v1011_v23 = vadd.f32 %v4228_v57, %v4380_v9 }
 0x1af   : > { %5152 = vst [vmem:[#allocation25_spill] sm:$0xff] %v4388_v1  ;;  %v4390_v17 = vpop.f32.mrf.mxu1  ;;  %v1017_v57 = vadd.f32 %v4250_v35, %v4380_v9 }
 0x1b0   : > { %5153 = vst [vmem:[#allocation26_spill] sm:$0xff] %v4390_v17  ;;  %v4394_v50 = vpop.f32.mrf.mxu0 }
 0x1b1   : > { %5154 = vst [vmem:[#allocation27_spill] sm:$0xff] %v4394_v50  ;;  %v4396_v32 = vpop.f32.mrf.mxu1 }
 0x1b2   : > { %5155 = vst [vmem:[#allocation28_spill] sm:$0xff] %v4396_v32 }
 0x1b4   : > { %v1296_v63 = vpop.f32.mrf.mxu0 }
 0x1b5   : > { %v4401_v40 = vpop.f32.mrf.mxu1  ;;  %v1297_v17 = vadd.f32 %v1296_v63, %v1136_v6  ;;  %v989_v63 = vadd.f32 %v4146_v46, %v4386_v52  ;;  %v995_v46 = vadd.f32 %v4167_v48, %v4386_v52  ;;  %v1001_v48 = vadd.f32 %v4186_v4, %v4386_v52 }
 0x1b6   : > { %v1298_v1 = vpop.f32.mrf.mxu0  ;;  %v1007_v4 = vadd.f32 %v4213_v56, %v4386_v52  ;;  %v1013_v56 = vadd.f32 %v4235_v5, %v4386_v52  ;;  %v1019_v5 = vadd.f32 %v4259_v24, %v4386_v52  ;;  %v1031_v24 = vadd.f32 %v4290_v14, %v4386_v52 }
 0x1b7   : > { %v4408_v50 = vpop.f32.mrf.mxu1  ;;  %v1299_v32 = vadd.f32 %v1298_v1, %v1138_v13  ;;  %v1826_v0 = vmax.f32 %v1297_v17, 0.0  ;;  %v1150_v17 = vadd.f32 %v4148_v26, %v989_v63  ;;  %v1156_v26 = vadd.f32 %v4169_v59, %v995_v46 }
 0x1b8   : > { %v1162_v59 = vadd.f32 %v4188_v11, %v1001_v48  ;;  %v1166_v46 = vadd.f32 %v4203_v28, %v1005_v53  ;;  %v1168_v11 = vadd.f32 %v4215_v38, %v1007_v4  ;;  %v1174_v38 = vadd.f32 %v4237_v2, %v1013_v56 }
 0x1b9   : > { %v1827_v33 = vmax.f32 %v1299_v32, 0.0  ;;  %v4411_v58 = vpop.f32.mrf.mxu1  ;;  %v1148_v32 = vadd.f32 %v4140_v30, %v987_v12  ;;  %v1178_v53 = vadd.f32 %v4252_v34, %v1017_v57  ;;  %v1023_v2 = vadd.f32 %v4268_v41, %v4380_v9 }
 0x1ba   : > { %v1302_v10 = vpop.f32.mrf.mxu0  ;;  %v1180_v4 = vadd.f32 %v4261_v37, %v1019_v5  ;;  %v1192_v37 = vadd.f32 %v4292_v43, %v1031_v24  ;;  %v5156_v5 = vld [vmem:[#allocation12_spill] sm:$0xff] }
 0x1bb   : > { %v1303_v45 = vadd.f32 %v1302_v10, %v1142_v60  ;;  %v4416_v7 = vpop.f32.mrf.mxu1  ;;  %2094 = vmatprep.mubr.f32.mxu0 %v1827_v33 }
 0x1bc   : > { %v1304_v21 = vpop.f32.mrf.mxu0  ;;  %2095 = vmatmul.mubr.f32.vlgmr.msra.gmra.mxu0 %v1826_v0 }
 0x1bd   : > { %v1305_v6 = vadd.f32 %v1304_v21, %v1144_v18  ;;  %v1829_v16 = vmax.f32 %v1303_v45, 0.0  ;;  %v1154_v18 = vadd.f32 %v4160_v49, %v993_v36 }
 0x1bf   : > { %v1830_v22 = vmax.f32 %v1305_v6, 0.0  ;;  %v4421_v15 = vpop.f32.mrf.mxu1 }
 0x1c0   : > { %v1308_v13 = vpop.f32.mrf.mxu0 }
 0x1c1   : > { %2100 = vmatprep.mubr.f32.mxu0 %v1830_v22  ;;  %v1309_v1 = vadd.f32 %v1308_v13, %v1148_v32  ;;  %v4426_v39 = vpop.f32.mrf.mxu1  ;;  %v1160_v22 = vadd.f32 %v4181_v3, %v999_v47 }
 0x1c2   : > { %v1310_v33 = vpop.f32.mrf.mxu0  ;;  %2101 = vmatmul.mubr.f32.gmra.mxu0 %v1829_v16 }
 0x1c3   : > { %v1311_v21 = vadd.f32 %v1310_v33, %v1150_v17  ;;  %v1832_v60 = vmax.f32 %v1309_v1, 0.0 }
 0x1c5   : > { %v1833_v30 = vmax.f32 %v1311_v21, 0.0  ;;  %v4431_v0 = vpop.f32.mrf.mxu1 }
 0x1c6   : > { %v1314_v10 = vpop.f32.mrf.mxu0 }
 0x1c7   : > { %2106 = vmatprep.mubr.f32.mxu0 %v1833_v30  ;;  %v1315_v12 = vadd.f32 %v1314_v10, %v1154_v18  ;;  %v4436_v63 = vpop.f32.mrf.mxu1 }
 0x1c8   : > { %v1316_v45 = vpop.f32.mrf.mxu0  ;;  %2107 = vmatmul.mubr.f32.gmra.mxu0 %v1832_v60 }
 0x1c9   : > { %v1317_v6 = vadd.f32 %v1316_v45, %v1156_v26  ;;  %v1835_v32 = vmax.f32 %v1315_v12, 0.0  ;;  %v1172_v12 = vadd.f32 %v4230_v51, %v1011_v23  ;;  %v1025_v51 = vadd.f32 %v4272_v44, %v4386_v52 }
 0x1cb   : > { %v1836_v49 = vmax.f32 %v1317_v6, 0.0  ;;  %v4441_v13 = vpop.f32.mrf.mxu1 }
 0x1cc   : > { %v1320_v16 = vpop.f32.mrf.mxu0 }
 0x1cd   : > { %2112 = vmatprep.mubr.f32.mxu0 %v1836_v49  ;;  %v1321_v17 = vadd.f32 %v1320_v16, %v1160_v22  ;;  %v4446_v1 = vpop.f32.mrf.mxu1 }
 0x1ce   : > { %v1322_v36 = vpop.f32.mrf.mxu0  ;;  %2113 = vmatmul.mubr.f32.gmra.mxu0 %v1835_v32 }
 0x1cf   : > { %v1323_v33 = vadd.f32 %v1322_v36, %v1162_v59  ;;  %v1838_v21 = vmax.f32 %v1321_v17, 0.0 }
 0x1d1   : > { %v1839_v3 = vmax.f32 %v1323_v33, 0.0  ;;  %v4451_v18 = vpop.f32.mrf.mxu1  ;;  %v1186_v33 = vadd.f32 %v4274_v55, %v1025_v51  ;;  %v1037_v55 = vadd.f32 %v4303_v29, %v4386_v52 }
 0x1d2   : > { %v1326_v30 = vpop.f32.mrf.mxu0 }
 0x1d3   : > { %2118 = vmatprep.mubr.f32.mxu0 %v1839_v3  ;;  %v1327_v60 = vadd.f32 %v1326_v30, %v1166_v46  ;;  %v4456_v26 = vpop.f32.mrf.mxu1  ;;  %v1347_v34 = vadd.f32 %v4408_v50, %v1186_v33  ;;  %v1029_v30 = vadd.f32 %v4281_v25, %v4380_v9  ;;  %v1353_v50 = vadd.f32 %v4416_v7, %v1192_v37 }
 0x1d4   : > { %v1328_v10 = vpop.f32.mrf.mxu0  ;;  %2119 = vmatmul.mubr.f32.gmra.mxu0 %v1838_v21  ;;  %v1184_v21 = vadd.f32 %v4270_v54, %v1023_v2  ;;  %v1035_v25 = vadd.f32 %v4299_v42, %v4380_v9  ;;  %v1198_v29 = vadd.f32 %v4305_v62, %v1037_v55  ;;  %v5159_v2 = vld [vmem:[#allocation18_spill] sm:$0xff]  ;;  %v5163_v55 = vld [vmem:[#allocation23_spill] sm:$0xff] }
 0x1d5   : > { %v1329_v47 = vadd.f32 %v1328_v10, %v1168_v11  ;;  %v1841_v45 = vmax.f32 %v1327_v60, 0.0  ;;  %v1851_v10 = vmax.f32 %v1347_v34, 0.0  ;;  %v1190_v54 = vadd.f32 %v4283_v61, %v1029_v30  ;;  %v5161_v34 = vld [vmem:[#allocation11_spill] sm:$0xff] }
 0x1d6   : > { %v1345_v23 = vadd.f32 %v4401_v40, %v1184_v21  ;;  %v1043_v40 = vadd.f32 %v4321_v27, %v4386_v52  ;;  %v1854_v61 = vmax.f32 %v1353_v50, 0.0  ;;  %v1196_v42 = vadd.f32 %v4301_v20, %v1035_v25  ;;  %v5162_v30 = vld [vmem:[#allocation19_spill] sm:$0xff] }
 0x1d7   : > { %v1842_v28 = vmax.f32 %v1329_v47, 0.0  ;;  %v4461_v6 = vpop.f32.mrf.mxu1  ;;  %v1351_v7 = vadd.f32 %v4411_v58, %v1190_v54  ;;  %v1049_v58 = vadd.f32 %v4334_v31, %v4386_v52  ;;  %v5158_v31 = vld [vmem:[#allocation15_spill] sm:$0xff]  ;;  %v5164_v54 = vld [vmem:[#allocation16_spill] sm:$0xff] }
 0x1d8   : > { %v1332_v48 = vpop.f32.mrf.mxu0  ;;  %v1850_v47 = vmax.f32 %v1345_v23, 0.0  ;;  %v1204_v27 = vadd.f32 %v4323_v8, %v1043_v40 }
 0x1d9   : > { %2124 = vmatprep.mubr.f32.mxu0 %v1842_v28  ;;  %v1333_v49 = vadd.f32 %v1332_v48, %v1172_v12  ;;  %v4466_v32 = vpop.f32.mrf.mxu1  ;;  %v1041_v48 = vadd.f32 %v4312_v19, %v4380_v9  ;;  %v1853_v57 = vmax.f32 %v1351_v7, 0.0  ;;  %v5166_v7 = vld [vmem:[#allocation24_spill] sm:$0xff] }
 0x1da   : > { %v1334_v22 = vpop.f32.mrf.mxu0  ;;  %2125 = vmatmul.mubr.f32.gmra.mxu0 %v1841_v45  ;;  %v1359_v45 = vadd.f32 %v4426_v39, %v1198_v29  ;;  %v1365_v19 = vadd.f32 %v4436_v63, %v1204_v27  ;;  %v5165_v29 = vld [vmem:[#allocation20_spill] sm:$0xff] }
 0x1db   : > { %v1335_v16 = vadd.f32 %v1334_v22, %v1174_v38  ;;  %v1844_v17 = vmax.f32 %v1333_v49, 0.0  ;;  %v1357_v49 = vadd.f32 %v4421_v15, %v1196_v42  ;;  %v1202_v51 = vadd.f32 %v5156_v5, %v1041_v48 }
 0x1dc   : > { %v1857_v22 = vmax.f32 %v1359_v45, 0.0  ;;  %v1055_v15 = vadd.f32 %v5159_v2, %v4386_v52  ;;  %v1860_v33 = vmax.f32 %v1365_v19, 0.0  ;;  %v1059_v40 = vadd.f32 %v5165_v29, %v4380_v9  ;;  %v5167_v45 = vld [vmem:[#allocation27_spill] sm:$0xff]  ;;  %v5169_v19 = vld [vmem:[#allocation25_spill] sm:$0xff] }
 0x1dd   : > { %v1845_v59 = vmax.f32 %v1335_v16, 0.0  ;;  %v4475_v36 = vpop.f32.mrf.mxu1  ;;  %v5157_v16 = vld [vmem:[#allocation13_spill] sm:$0xff]  ;;  %v1065_v5 = vadd.f32 %v5169_v19, %v4380_v9 }
 0x1de   : > { %v1338_v35 = vpop.f32.mrf.mxu0  ;;  %v1216_v37 = vadd.f32 %v5162_v30, %v1055_v15  ;;  %v5171_v15 = vld [vmem:[#allocation26_spill] sm:$0xff] }
 0x1df   : > { %2130 = vmatprep.mubr.f32.mxu0 %v1845_v59  ;;  %v1339_v44 = vadd.f32 %v1338_v35, %v1178_v53  ;;  %v4481_v46 = vpop.f32.mrf.mxu1  ;;  %v1047_v59 = vadd.f32 %v5157_v16, %v4380_v9  ;;  %v1210_v53 = vadd.f32 %v5158_v31, %v1049_v58  ;;  %v1363_v35 = vadd.f32 %v4431_v0, %v1202_v51 }
 0x1e0   : > { %v1340_v3 = vpop.f32.mrf.mxu0  ;;  %2131 = vmatmul.mubr.f32.gmra.mxu0 %v1844_v17  ;;  %v1856_v17 = vmax.f32 %v1357_v49, 0.0  ;;  %v1061_v0 = vadd.f32 %v5163_v55, %v4386_v52  ;;  %v1377_v50 = vadd.f32 %v4456_v26, %v1216_v37  ;;  %v5168_v49 = vld [vmem:[#allocation21_spill] sm:$0xff] }
 0x1e1   : > { %v1341_v41 = vadd.f32 %v1340_v3, %v1180_v4  ;;  %v1847_v60 = vmax.f32 %v1339_v44, 0.0  ;;  %v1371_v24 = vadd.f32 %v4446_v1, %v1210_v53  ;;  %v5160_v44 = vld [vmem:[#allocation14_spill] sm:$0xff] }
 0x1e2   : > { %v1208_v3 = vadd.f32 %v5160_v44, %v1047_v59  ;;  %v1866_v58 = vmax.f32 %v1377_v50, 0.0 }
 0x1e3   : > { %v1848_v14 = vmax.f32 %v1341_v41, 0.0  ;;  %v4490_v11 = vpop.f32.mrf.mxu1  ;;  %v1053_v41 = vadd.f32 %v5161_v34, %v4380_v9 }
 0x1e4   : > { %v1369_v23 = vadd.f32 %v4441_v13, %v1208_v3  ;;  %v1067_v13 = vadd.f32 %v5167_v45, %v4386_v52  ;;  %v5170_v52 = vld [vmem:[#allocation28_spill] sm:$0xff] }
 0x1e5   : > { %v4494_v56 = vpop.f32.mrf.mxu1  ;;  %2136 = vmatprep.mubr.f32.mxu0 %v1848_v14  ;;  %v1859_v14 = vmax.f32 %v1363_v35, 0.0  ;;  %v1214_v25 = vadd.f32 %v5164_v54, %v1053_v41 }
 0x1e6   : > { %v4499_v43 = vpop.f32.mrf.mxu0  ;;  %2137 = vmatmul.mubr.f32.gmra.mxu0 %v1847_v60  ;;  %v1862_v42 = vmax.f32 %v1369_v23, 0.0  ;;  %v1228_v16 = vadd.f32 %v5170_v52, %v1067_v13  ;;  %v5172_v13 = vld [vmem:[#allocation17_spill] sm:$0xff]  ;;  %v3016_v19 = vadd.f32 %v4494_v56, %v4490_v11 }
 0x1e7   : > { %2142 = vmatprep.mubr.f32.mxu0 %v1851_v10  ;;  %v4505_v28 = vpop.f32.mrf.mxu1  ;;  %v1863_v10 = vmax.f32 %v1371_v24, 0.0  ;;  %v1375_v48 = vadd.f32 %v4451_v18, %v1214_v25 }
 0x1e8   : > { %v4507_v12 = vpop.f32.mrf.mxu0 }
 0x1e9   : > { %v4513_v62 = vpop.f32.mrf.mxu1  ;;  %v1865_v59 = vmax.f32 %v1375_v48, 0.0 }
 0x1ea   : > { %v4515_v38 = vpop.f32.mrf.mxu0  ;;  %2143 = vmatmul.mubr.f32.gmra.mxu0 %v1850_v47 }
 0x1eb   : > { %2148 = vmatprep.mubr.f32.mxu0 %v1854_v61  ;;  %v4521_v39 = vpop.f32.mrf.mxu1  ;;  %v1222_v61 = vadd.f32 %v5166_v7, %v1061_v0 }
 0x1ec   : > { %v4523_v20 = vpop.f32.mrf.mxu0 }
 0x1ed   : > { %v4529_v8 = vpop.f32.mrf.mxu1 }
 0x1ee   : > { %2149 = vmatmul.mubr.f32.gmra.mxu0 %v1853_v57  ;;  %v4535_v4 = vpop.f32.mrf.mxu0  ;;  %v1383_v57 = vadd.f32 %v4466_v32, %v1222_v61  ;;  %v1389_v32 = vadd.f32 %v4481_v46, %v1228_v16  ;;  %v3022_v11 = vadd.f32 %v4529_v8, %v4521_v39 }
 0x1ef   : > { %2154 = vmatprep.mubr.f32.mxu0 %v1857_v22  ;;  %v1220_v22 = vadd.f32 %v5168_v49, %v1059_v40  ;;  %v5173_v49 = vld [vmem:[#allocation22_spill] sm:$0xff] }
 0x1f0   : > { %v4537_v63 = vpop.f32.mrf.mxu1  ;;  %v4549_v60 = vpop.f32.mrf.mxu0  ;;  %v1869_v2 = vmax.f32 %v1383_v57, 0.0 }
 0x1f1   : > { %v1381_v18 = vadd.f32 %v4461_v6, %v1220_v22  ;;  %v1872_v6 = vmax.f32 %v1389_v32, 0.0 }
 0x1f2   : > { %v4543_v21 = vpop.f32.mrf.mxu1  ;;  %2155 = vmatmul.mubr.f32.gmra.mxu0 %v1856_v17  ;;  %v4563_v27 = vpop.f32.mrf.mxu0  ;;  %v1226_v17 = vadd.f32 %v5171_v15, %v1065_v5 }
 0x1f3   : > { %2160 = vmatprep.mubr.f32.mxu0 %v1860_v33  ;;  %v1868_v9 = vmax.f32 %v1381_v18, 0.0  ;;  %v3096_v18 = vadd.f32 %v4507_v12, %v4499_v43  ;;  %v3025_v39 = vadd.f32 %v4543_v21, %v4537_v63 }
 0x1f4   : > { %v4551_v1 = vpop.f32.mrf.mxu1  ;;  %v4575_v31 = vpop.f32.mrf.mxu0  ;;  %v1387_v33 = vadd.f32 %v4475_v36, %v1226_v17 }
 0x1f6   : > { %v4557_v47 = vpop.f32.mrf.mxu1  ;;  %2161 = vmatmul.mubr.f32.gmra.mxu0 %v1859_v14  ;;  %v4584_v24 = vpop.f32.mrf.mxu0  ;;  %v1871_v34 = vmax.f32 %v1387_v33, 0.0  ;;  %v3099_v33 = vadd.f32 %v4523_v20, %v4515_v38 }
 0x1f7   : > { %2166 = vmatprep.mubr.f32.mxu0 %v1863_v10 }
 0x1f8   : > { %v4565_v26 = vpop.f32.mrf.mxu1  ;;  %v4590_v46 = vpop.f32.mrf.mxu0 }
 0x1fa   : > { %v4571_v51 = vpop.f32.mrf.mxu1  ;;  %2167 = vmatmul.mubr.f32.gmra.mxu0 %v1862_v42  ;;  %v4596_v37 = vpop.f32.mrf.mxu0  ;;  %v903_v42 = vsub.s32 2, %v5172_v13 }
 0x1fb   : > { %2172 = vmatprep.mubr.f32.mxu0 %v1866_v58 }
 0x1fc   : > { %v4577_v53 = vpop.f32.mrf.mxu1  ;;  %v4602_v0 = vpop.f32.mrf.mxu0  ;;  %v4634_v22 = vrot.slane %v5173_v49, %v903_v42 }
 0x1fe   : > { %v4581_v35 = vpop.f32.mrf.mxu1  ;;  %2173 = vmatmul.mubr.f32.gmra.mxu0 %v1865_v59  ;;  %v4608_v10 = vpop.f32.mrf.mxu0  ;;  %v1458_v59 = vadd.f32 %v3016_v19, %v4634_v22 }
 0x1ff   : > { %2178 = vmatprep.mubr.f32.mxu0 %v1869_v2  ;;  %v3019_v2 = vadd.f32 %v4513_v62, %v4505_v28  ;;  %v1468_v28 = vadd.f32 %v3022_v11, %v4634_v22  ;;  %v3102_v62 = vadd.f32 %v4549_v60, %v4535_v4  ;;  %v5174_v11 = vmov 0.0  }
 0x200   : > { %v4586_v44 = vpop.f32.mrf.mxu1  ;;  %v4614_v25 = vpop.f32.mrf.mxu0  ;;  %v1603_v17 = vadd.f32 %v3096_v18, %v1458_v59  ;;  %v1473_v4 = vadd.f32 %v3025_v39, %v4634_v22  ;;  %v3105_v60 = vadd.f32 %v4575_v31, %v4563_v27  ;;  %v3111_v39 = vadd.f32 %v4602_v0, %v4596_v37 }
 0x201   : > { %v1613_v18 = vadd.f32 %v3102_v62, %v1468_v28 }
 0x202   : > { %v4588_v3 = vpop.f32.mrf.mxu1  ;;  %2179 = vmatmul.mubr.f32.gmra.mxu0 %v1868_v9  ;;  %v4620_v7 = vpop.f32.mrf.mxu0  ;;  %v1463_v9 = vadd.f32 %v3019_v2, %v4634_v22  ;;  %v3028_v2 = vadd.f32 %v4557_v47, %v4551_v1  ;;  %v3108_v1 = vadd.f32 %v4590_v46, %v4584_v24  ;;  %v3031_v47 = vadd.f32 %v4571_v51, %v4565_v26 }
 0x203   : > { %2184 = vmatprep.mubr.f32.mxu0 %v1872_v6  ;;  %v3034_v26 = vadd.f32 %v4581_v35, %v4577_v53  ;;  %v3114_v35 = vadd.f32 %v4614_v25, %v4608_v10  ;;  %v3037_v0 = vadd.f32 %v4588_v3, %v4586_v44 }
 0x204   : > { %v4592_v41 = vpop.f32.mrf.mxu1  ;;  %v4627_v48 = vpop.f32.mrf.mxu0  ;;  %v1608_v49 = vadd.f32 %v3099_v33, %v1463_v9  ;;  %v1478_v33 = vadd.f32 %v3028_v2, %v4634_v22  ;;  %v1483_v24 = vadd.f32 %v3031_v47, %v4634_v22 }
 0x205   : > { %v1488_v53 = vadd.f32 %v3034_v26, %v4634_v22  ;;  %v1493_v3 = vadd.f32 %v3037_v0, %v4634_v22  ;;  %v3117_v47 = vadd.f32 %v4627_v48, %v4620_v7 }
 0x206   : > { %v4594_v30 = vpop.f32.mrf.mxu1  ;;  %2185 = vmatmul.mubr.f32.gmra.mxu0 %v1871_v34  ;;  %v4638_v5 = vpop.f32.mrf.mxu0  ;;  %v1628_v37 = vadd.f32 %v3111_v39, %v1483_v24 }
 0x208   : > { %v4598_v36 = vpop.f32.mrf.mxu1  ;;  %v4649_v32 = vpop.f32.mrf.mxu0 }
 0x209   : > { %v3120_v7 = vadd.f32 %v4649_v32, %v4638_v5 }
 0x20a   : > { %v4600_v55 = vpop.f32.mrf.mxu1  ;;  %v4656_v34 = vpop.f32.mrf.mxu0 }
 0x20b   : > { %v3043_v48 = vadd.f32 %v4600_v55, %v4598_v36  ;;  %v2974_v36 = vld [vmem:[%s5108_s5 + $0x20] sm:$0xff]  }
 0x20c   : > { %v4604_v14 = vpop.f32.mrf.mxu1  ;;  %v4663_v59 = vpop.f32.mrf.mxu0 }
 0x20d   : > { %v1503_v5 = vadd.f32 %v3043_v48, %v4634_v22 }
 0x20e   : > { %v4606_v23 = vpop.f32.mrf.mxu1 }
 0x20f   : > { %v3046_v32 = vadd.f32 %v4606_v23, %v4604_v14  ;;  %v2973_v14 = vld [vmem:[%s5108_s5 + $0x18] sm:$0xff]   ;;  %v2972_v23 = vld [vmem:[%s5108_s5 + $0x10] sm:$0xff]  }
 0x210   : > { %v4610_v50 = vpop.f32.mrf.mxu1 }
 0x212   : > { %v4612_v54 = vpop.f32.mrf.mxu1 }
 0x214   : > { %v4616_v29 = vpop.f32.mrf.mxu1 }
 0x216   : > { %v4618_v40 = vpop.f32.mrf.mxu1 }
 0x218   : > { %v4622_v61 = vpop.f32.mrf.mxu1 }
 0x21a   : > { %v4624_v45 = vpop.f32.mrf.mxu1 }
 0x21c   : > { %v4629_v58 = vpop.f32.mrf.mxu1 }
 0x21e   : > { %v4631_v57 = vpop.f32.mrf.mxu1 }
 0x220   : > { %v4640_v52 = vpop.f32.mrf.mxu1 }
 0x222   : > { %v4642_v16 = vpop.f32.mrf.mxu1 }
 0x224   : > { %v3174_v15 = vpop.f32.mrf.mxu1 }
 0x226   : > { %v3175_v56 = vpop.f32.mrf.mxu1 }
 0x227   : > { %v3176_v6 = vadd.f32 %v3175_v56, %v3174_v15  ;;  %v4671_v56 = vpop.f32.mrf.mxu0 }
 0x228   : > { %v3177_v43 = vpop.f32.mrf.mxu1 }
 0x229   : > { %v1748_v12 = vadd.f32 %v3176_v6, %v1603_v17 }
 0x22a   : > { %v3178_v42 = vpop.f32.mrf.mxu1 }
 0x22b   : > { %v1828_v8 = vmax.f32 %v1748_v12, 0.0  ;;  %v3179_v19 = vadd.f32 %v3178_v42, %v3177_v43  ;;  %v1618_v43 = vadd.f32 %v3105_v60, %v1473_v4  ;;  %v4679_v12 = vpop.f32.mrf.mxu0  ;;  %v2977_v42 = vld [vmem:[%s5108_s5 + $0x38] sm:$0xff]  }
 0x22c   : > { %v3180_v38 = vpop.f32.mrf.mxu1  ;;  %v2954_v46 = vunpack.c.h.bf16 %v2977_v42 }
 0x22d   : > { %v1753_v20 = vadd.f32 %v3179_v19, %v1608_v49  ;;  %2256 = vmatmul.mubr.f32.vlgmr.msra.gmra.mxu1 %v1828_v8  ;;  %v1623_v49 = vadd.f32 %v3108_v1, %v1478_v33  ;;  %v1633_v33 = vadd.f32 %v3114_v35, %v1488_v53  ;;  %v3040_v1 = vadd.f32 %v4594_v30, %v4592_v41 }
 0x22e   : > { %v3181_v15 = vpop.f32.mrf.mxu1  ;;  %2261 = vmatprep.mubr.f32.mxu1 %v5174_v11  ;;  %2489 = vmatpush1.msra.mxu0 %v2954_v46  ;;  %v2941_v35 = vunpack.c.l.bf16 %v2974_v36 }
 0x22f   : > { %v1831_v63 = vmax.f32 %v1753_v20, 0.0  ;;  %v3182_v21 = vadd.f32 %v3181_v15, %v3180_v38  ;;  %v2953_v38 = vunpack.c.l.bf16 %v2977_v42  ;;  %v4690_v20 = vpop.f32.mrf.mxu0  ;;  %2490 = vmatprep.subr.mxu0 %v5174_v11 }
 0x230   : > { %v3183_v17 = vpop.f32.mrf.mxu1 }
 0x231   : > { %v1758_v9 = vadd.f32 %v3182_v21, %v1613_v18  ;;  %2262 = vmatmul.mubr.f32.gmra.mxu1 %v1831_v63  ;;  %2491 = vmatpush1.msra.mxu0 %v2953_v38  ;;  %v2976_v63 = vld [vmem:[%s5108_s5 + $0x30] sm:$0xff]   ;;  %v4703_v21 = vpop.f32.mrf.mxu0  ;;  %v2942_v38 = vunpack.c.h.bf16 %v2974_v36 }
 0x232   : > { %v3184_v6 = vpop.f32.mrf.mxu1  ;;  %2267 = vmatprep.mubr.f32.mxu1 %v5174_v11  ;;  %2492 = vmatprep.subr.mxu0 %v5174_v11  ;;  %v2950_v10 = vunpack.c.h.bf16 %v2976_v63 }
 0x233   : > { %v1834_v27 = vmax.f32 %v1758_v9, 0.0  ;;  %v3185_v31 = vadd.f32 %v3184_v6, %v3183_v17  ;;  %v2949_v9 = vunpack.c.l.bf16 %v2976_v63  ;;  %v2937_v63 = vunpack.c.l.bf16 %v2973_v14 }
 0x234   : > { %v3186_v28 = vpop.f32.mrf.mxu1  ;;  %2493 = vmatpush1.msra.mxu0 %v2950_v10  ;;  %v3049_v10 = vadd.f32 %v4612_v54, %v4610_v50  ;;  %v3052_v50 = vadd.f32 %v4618_v40, %v4616_v29  ;;  %v2924_v29 = vld [vmem:[%s5108_s5] sm:$0xff]  }
 0x235   : > { %v1763_v62 = vadd.f32 %v3185_v31, %v1618_v43  ;;  %2268 = vmatmul.mubr.f32.gmra.mxu1 %v1834_v27  ;;  %2494 = vmatprep.subr.mxu0 %v5174_v11  ;;  %v2975_v27 = vld [vmem:[%s5108_s5 + $0x28] sm:$0xff]   ;;  %v4715_v31 = vpop.f32.mrf.mxu0 }
 0x236   : > { %v3187_v51 = vpop.f32.mrf.mxu1  ;;  %2273 = vmatprep.mubr.f32.mxu1 %v5174_v11  ;;  %2495 = vmatpush1.msra.mxu0 %v2949_v9  ;;  %v2946_v30 = vunpack.c.h.bf16 %v2975_v27  ;;  %v1518_v40 = vadd.f32 %v3052_v50, %v4634_v22 }
 0x237   : > { %v1837_v8 = vmax.f32 %v1763_v62, 0.0  ;;  %v3188_v19 = vadd.f32 %v3187_v51, %v3186_v28  ;;  %2496 = vmatprep.subr.mxu0 %v5174_v11  ;;  %v1498_v62 = vadd.f32 %v3040_v1, %v4634_v22  ;;  %v2945_v51 = vunpack.c.l.bf16 %v2975_v27  ;;  %v4725_v46 = vpop.f32.mrf.mxu0 }
 0x238   : > { %v3189_v18 = vpop.f32.mrf.mxu1  ;;  %2497 = vmatpush1.msra.mxu0 %v2946_v30 }
 0x239   : > { %v1768_v2 = vadd.f32 %v3188_v19, %v1623_v49  ;;  %2274 = vmatmul.mubr.f32.gmra.mxu1 %v1837_v8  ;;  %v1638_v49 = vadd.f32 %v3117_v47, %v1493_v3  ;;  %2498 = vmatprep.subr.mxu0 %v5174_v11  ;;  %v1643_v55 = vadd.f32 %v3120_v7, %v1498_v62  ;;  %v2933_v47 = vunpack.c.l.bf16 %v2972_v23 }
 0x23a   : > { %v3190_v15 = vpop.f32.mrf.mxu1  ;;  %2279 = vmatprep.mubr.f32.mxu1 %v5174_v11  ;;  %2499 = vmatpush1.msra.mxu0 %v2945_v51 }
 0x23b   : > { %v1840_v4 = vmax.f32 %v1768_v2, 0.0  ;;  %v3191_v60 = vadd.f32 %v3190_v15, %v3189_v18  ;;  %2500 = vmatprep.subr.mxu0 %v5174_v11  ;;  %v3123_v18 = vadd.f32 %v4663_v59, %v4656_v34  ;;  %v4737_v15 = vpop.f32.mrf.mxu0  ;;  %v1508_v34 = vadd.f32 %v3046_v32, %v4634_v22 }
 0x23c   : > { %v3192_v17 = vpop.f32.mrf.mxu1  ;;  %2501 = vmatpush1.msra.mxu0 %v2942_v38  ;;  %v3126_v59 = vadd.f32 %v4679_v12, %v4671_v56  ;;  %v2971_v56 = vld [vmem:[%s5108_s5 + $0x8] sm:$0xff]  }
 0x23d   : > { %v1773_v25 = vadd.f32 %v3191_v60, %v1628_v37  ;;  %2280 = vmatmul.mubr.f32.gmra.mxu1 %v1840_v4  ;;  %2502 = vmatprep.subr.mxu0 %v5174_v11  ;;  %v2938_v60 = vunpack.c.h.bf16 %v2973_v14  ;;  %v2930_v62 = vunpack.c.h.bf16 %v2971_v56  ;;  %v2929_v48 = vunpack.c.l.bf16 %v2971_v56 }
 0x23e   : > { %v3193_v44 = vpop.f32.mrf.mxu1  ;;  %2285 = vmatprep.mubr.f32.mxu1 %v5174_v11  ;;  %2503 = vmatpush1.msra.mxu0 %v2941_v35  ;;  %v1653_v12 = vadd.f32 %v3126_v59, %v1508_v34 }
 0x23f   : > { %v1843_v6 = vmax.f32 %v1773_v25, 0.0  ;;  %v3194_v43 = vadd.f32 %v3193_v44, %v3192_v17  ;;  %v1648_v17 = vadd.f32 %v3123_v18, %v1503_v5  ;;  %2504 = vmatprep.subr.mxu0 %v5174_v11  ;;  %v2934_v44 = vunpack.c.h.bf16 %v2972_v23 }
 0x240   : > { %v3195_v41 = vpop.f32.mrf.mxu1  ;;  %2505 = vmatpush1.msra.mxu0 %v2938_v60  ;;  %v3061_v23 = vadd.f32 %v4642_v16, %v4640_v52 }
 0x241   : > { %v1778_v28 = vadd.f32 %v3194_v43, %v1633_v33  ;;  %2286 = vmatmul.mubr.f32.gmra.mxu1 %v1843_v6  ;;  %v3134_v33 = vpop.f32.mrf.mxu0  ;;  %2506 = vmatprep.subr.mxu0 %v5174_v11  ;;  %v1513_v6 = vadd.f32 %v3049_v10, %v4634_v22  ;;  %v3129_v43 = vadd.f32 %v4703_v21, %v4690_v20  ;;  %v2979_v10 = vld [vmem:[%s5108_s5 + $0x48] sm:$0xff]  }
 0x242   : > { %v3196_v42 = vpop.f32.mrf.mxu1  ;;  %2291 = vmatprep.mubr.f32.mxu1 %v5174_v11  ;;  %2507 = vmatpush1.msra.mxu0 %v2937_v63  ;;  %v3132_v20 = vadd.f32 %v4725_v46, %v4715_v31  ;;  %v2981_v31 = vld [vmem:[%s5108_s5 + $0x58] sm:$0xff]   ;;  %v3135_v32 = vadd.f32 %v3134_v33, %v4737_v15  ;;  %v1533_v16 = vadd.f32 %v3061_v23, %v4634_v22  ;;  %v2962_v56 = vunpack.c.h.bf16 %v2979_v10 }
 0x243   : > { %v1846_v24 = vmax.f32 %v1778_v28, 0.0  ;;  %v3197_v26 = vadd.f32 %v3196_v42, %v3195_v41  ;;  %2508 = vmatprep.subr.mxu0 %v5174_v11  ;;  %v3136_v30 = vpop.f32.mrf.mxu0  ;;  %v1658_v42 = vadd.f32 %v3129_v43, %v1513_v6 }
 0x244   : > { %v3198_v39 = vpop.f32.mrf.mxu1  ;;  %2509 = vmatpush1.msra.mxu0 %v2934_v44  ;;  %v1663_v46 = vadd.f32 %v3132_v20, %v1518_v40 }
 0x245   : > { %v1783_v8 = vadd.f32 %v3197_v26, %v1638_v49  ;;  %2292 = vmatmul.mubr.f32.gmra.mxu1 %v1846_v24  ;;  %2510 = vmatprep.subr.mxu0 %v5174_v11  ;;  %v3055_v49 = vadd.f32 %v4624_v45, %v4622_v61  ;;  %v3137_v51 = vpop.f32.mrf.mxu0  ;;  %v3058_v61 = vadd.f32 %v4631_v57, %v4629_v58  ;;  %v2980_v58 = vld [vmem:[%s5108_s5 + $0x50] sm:$0xff]  }
 0x246   : > { %v3199_v19 = vpop.f32.mrf.mxu1  ;;  %2297 = vmatprep.mubr.f32.mxu1 %v5174_v11  ;;  %2511 = vmatpush1.msra.mxu0 %v2933_v47  ;;  %v2966_v63 = vunpack.c.h.bf16 %v2980_v58  ;;  %v2965_v52 = vunpack.c.l.bf16 %v2980_v58 }
 0x247   : > { %v1849_v2 = vmax.f32 %v1783_v8, 0.0  ;;  %v3200_v53 = vadd.f32 %v3199_v19, %v3198_v39  ;;  %2512 = vmatprep.subr.mxu0 %v5174_v11  ;;  %v2926_v8 = vunpack.c.h.bf16 %v2924_v29  ;;  %v1523_v5 = vadd.f32 %v3055_v49, %v4634_v22  ;;  %v3139_v18 = vpop.f32.mrf.mxu0 }
 0x248   : > { %v3201_v37 = vpop.f32.mrf.mxu1  ;;  %2513 = vmatpush1.msra.mxu0 %v2930_v62  ;;  %v1528_v57 = vadd.f32 %v3058_v61, %v4634_v22 }
 0x249   : > { %v1788_v0 = vadd.f32 %v3200_v53, %v1643_v55  ;;  %2298 = vmatmul.mubr.f32.gmra.mxu1 %v1849_v2  ;;  %2514 = vmatprep.subr.mxu0 %v5174_v11  ;;  %v2925_v55 = vunpack.c.l.bf16 %v2924_v29  ;;  %v2970_v53 = vunpack.c.h.bf16 %v2981_v31  ;;  %v1668_v14 = vadd.f32 %v3135_v32, %v1523_v5 }
 0x24a   : > { %v3202_v4 = vpop.f32.mrf.mxu1  ;;  %2303 = vmatprep.mubr.f32.mxu1 %v5174_v11  ;;  %2515 = vmatpush1.msra.mxu0 %v2929_v48 }
 0x24b   : > { %v1852_v25 = vmax.f32 %v1788_v0, 0.0  ;;  %v3203_v9 = vadd.f32 %v3202_v4, %v3201_v37  ;;  %2516 = vmatprep.subr.mxu0 %v5174_v11  ;;  %v3138_v37 = vadd.f32 %v3137_v51, %v3136_v30  ;;  %v2969_v0 = vunpack.c.l.bf16 %v2981_v31  ;;  %v3140_v4 = vpop.f32.mrf.mxu0 }
 0x24c   : > { %v3204_v1 = vpop.f32.mrf.mxu1  ;;  %2517 = vmatpush1.msra.mxu0 %v2926_v8  ;;  %v3141_v33 = vadd.f32 %v3140_v4, %v3139_v18 }
 0x24d   : > { %v1793_v3 = vadd.f32 %v3203_v9, %v1648_v17  ;;  %2304 = vmatmul.mubr.f32.gmra.mxu1 %v1852_v25  ;;  %2518 = vmatprep.subr.mxu0 %v5174_v11  ;;  %v1673_v25 = vadd.f32 %v3138_v37, %v1528_v57 }
 0x24e   : > { %v3205_v54 = vpop.f32.mrf.mxu1  ;;  %2309 = vmatprep.mubr.f32.mxu1 %v5174_v11  ;;  %2519 = vmatpush1.msra.mxu0 %v2925_v55 }
 0x24f   : > { %v1855_v27 = vmax.f32 %v1793_v3, 0.0  ;;  %v3206_v41 = vadd.f32 %v3205_v54, %v3204_v1  ;;  %2536 = vmatprep.subr.mxu0 %v5174_v11  ;;  %v1678_v54 = vadd.f32 %v3141_v33, %v1533_v16 }
 0x250   : > { %v3207_v28 = vpop.f32.mrf.mxu1  ;;  %2537 = vmatpush2.msra.mxu0 %v2970_v53 }
 0x251   : > { %v1798_v7 = vadd.f32 %v3206_v41, %v1653_v12  ;;  %2310 = vmatmul.mubr.f32.gmra.mxu1 %v1855_v27  ;;  %2538 = vmatprep.subr.mxu0 %v5174_v11  ;;  %v2961_v27 = vunpack.c.l.bf16 %v2979_v10  ;;  %v2978_v41 = vld [vmem:[%s5108_s5 + $0x40] sm:$0xff]  }
 0x252   : > { %v3208_v21 = vpop.f32.mrf.mxu1  ;;  %2315 = vmatprep.mubr.f32.mxu1 %v5174_v11  ;;  %2539 = vmatpush2.msra.mxu0 %v2969_v0  ;;  %v2958_v30 = vunpack.c.h.bf16 %v2978_v41 }
 0x253   : > { %v1858_v24 = vmax.f32 %v1798_v7, 0.0  ;;  %v3209_v26 = vadd.f32 %v3208_v21, %v3207_v28  ;;  %2540 = vmatprep.subr.mxu0 %v5174_v11  ;;  %v2957_v28 = vunpack.c.l.bf16 %v2978_v41 }
 0x254   : > { %v3210_v39 = vpop.f32.mrf.mxu1  ;;  %2541 = vmatpush2.msra.mxu0 %v2966_v63 }
 0x255   : > { %v1803_v36 = vadd.f32 %v3209_v26, %v1658_v42  ;;  %2316 = vmatmul.mubr.f32.gmra.mxu1 %v1858_v24  ;;  %2542 = vmatprep.subr.mxu0 %v5174_v11 }
 0x256   : > { %v3211_v45 = vpop.f32.mrf.mxu1  ;;  %2321 = vmatprep.mubr.f32.mxu1 %v5174_v11  ;;  %2543 = vmatpush2.msra.mxu0 %v2965_v52 }
 0x257   : > { %v1861_v19 = vmax.f32 %v1803_v36, 0.0  ;;  %v3212_v38 = vadd.f32 %v3211_v45, %v3210_v39  ;;  %2544 = vmatprep.subr.mxu0 %v5174_v11  ;;  %v5176_v45 = vsub.s32 1, %v5172_v13 }
 0x258   : > { %v3213_v2 = vpop.f32.mrf.mxu1  ;;  %2545 = vmatpush2.msra.mxu0 %v2962_v56 }
 0x259   : > { %v1808_v35 = vadd.f32 %v3212_v38, %v1663_v46  ;;  %2322 = vmatmul.mubr.f32.gmra.mxu1 %v1861_v19  ;;  %2546 = vmatprep.subr.mxu0 %v5174_v11  ;;  %v5175_v46 = vsub.s32 0, %v5172_v13 }
 0x25a   : > { %v3214_v15 = vpop.f32.mrf.mxu1  ;;  %2327 = vmatprep.mubr.f32.mxu1 %v5174_v11  ;;  %2547 = vmatpush2.msra.mxu0 %v2961_v27 }
 0x25b   : > { %v1864_v34 = vmax.f32 %v1808_v35, 0.0  ;;  %v3215_v59 = vadd.f32 %v3214_v15, %v3213_v2  ;;  %2548 = vmatprep.subr.mxu0 %v5174_v11 }
 0x25c   : > { %v3216_v60 = vpop.f32.mrf.mxu1  ;;  %2549 = vmatpush2.msra.mxu0 %v2958_v30 }
 0x25d   : > { %v1813_v17 = vadd.f32 %v3215_v59, %v1668_v14  ;;  %2328 = vmatmul.mubr.f32.gmra.mxu1 %v1864_v34  ;;  %2550 = vmatprep.subr.mxu0 %v5174_v11 }
 0x25e   : > { %v3217_v9 = vpop.f32.mrf.mxu1  ;;  %2333 = vmatprep.mubr.f32.mxu1 %v5174_v11  ;;  %2551 = vmatpush2.msra.mxu0 %v2957_v28 }
 0x25f   : > { %v1867_v1 = vmax.f32 %v1813_v17, 0.0  ;;  %v3218_v44 = vadd.f32 %v3217_v9, %v3216_v60 }
 0x260   : > { %v3219_v3 = vpop.f32.mrf.mxu1 }
 0x261   : > { %v1818_v12 = vadd.f32 %v3218_v44, %v1673_v25  ;;  %2334 = vmatmul.mubr.f32.gmra.mxu1 %v1867_v1 }
 0x262   : > { %v3220_v50 = vpop.f32.mrf.mxu1  ;;  %2339 = vmatprep.mubr.f32.mxu1 %v5174_v11 }
 0x263   : > { %v1870_v47 = vmax.f32 %v1818_v12, 0.0  ;;  %v3221_v6 = vadd.f32 %v3220_v50, %v3219_v3 }
 0x265   : > { %v1823_v22 = vadd.f32 %v3221_v6, %v1678_v54  ;;  %2340 = vmatmul.mubr.f32.gmra.mxu1 %v1870_v47 }
 0x266   : > { %2345 = vmatprep.mubr.f32.mxu1 %v5174_v11  ;;  %v2018_v11 = vld [vmem:[%s5107_s4] sm:$0x3] }
 0x267   : > { %v1873_v43 = vmax.f32 %v1823_v22, 0.0  ;;  %v4826_v61 = vrot.slane %v2018_v11, %v5175_v46  ;;  %v4830_v55 = vrot.slane %v2018_v11, %v5176_v45 }
 0x269   : > { %2346 = vmatmul.mubr.f32.gmra.mxu1 %v1873_v43 }
 0x27c   : > { %v2096_v62 = vpop.f32.mrf.mxu0 }
 0x27d   : > { %v2097_v32 = vadd.f32 %v2096_v62, %v4826_v61 }
 0x27e   : > { %v2098_v7 = vpop.f32.mrf.mxu0 }
 0x27f   : > { %v2099_v38 = vadd.f32 %v2098_v7, %v4830_v55 }
 0x282   : > { %v2102_v29 = vpop.f32.mrf.mxu0 }
 0x283   : > { %v2103_v58 = vadd.f32 %v2102_v29, %v4826_v61 }
 0x284   : > { %v2104_v40 = vpop.f32.mrf.mxu0 }
 0x285   : > { %v2105_v13 = vadd.f32 %v2104_v40, %v4830_v55 }
 0x288   : > { %v2108_v20 = vpop.f32.mrf.mxu0 }
 0x289   : > { %v2109_v59 = vadd.f32 %v2108_v20, %v4826_v61 }
 0x28a   : > { %v2110_v21 = vpop.f32.mrf.mxu0 }
 0x28b   : > { %v2111_v60 = vadd.f32 %v2110_v21, %v4830_v55 }
 0x28e   : > { %v2114_v48 = vpop.f32.mrf.mxu0 }
 0x28f   : > { %v2115_v16 = vadd.f32 %v2114_v48, %v4826_v61 }
 0x290   : > { %v2116_v42 = vpop.f32.mrf.mxu0 }
 0x291   : > { %v2117_v1 = vadd.f32 %v2116_v42, %v4830_v55 }
 0x294   : > { %v2120_v49 = vpop.f32.mrf.mxu0 }
 0x295   : > { %v2121_v47 = vadd.f32 %v2120_v49, %v4826_v61 }
 0x296   : > { %v2122_v24 = vpop.f32.mrf.mxu0 }
 0x297   : > { %v2123_v22 = vadd.f32 %v2122_v24, %v4830_v55 }
 0x29a   : > { %v2126_v26 = vpop.f32.mrf.mxu0 }
 0x29b   : > { %v2127_v7 = vadd.f32 %v2126_v26, %v4826_v61 }
 0x29c   : > { %v4811_v51 = vpop.f32.mrf.mxu0 }
 0x29d   : > { %v2129_v40 = vadd.f32 %v4811_v51, %v4830_v55 }
 0x2a0   : > { %v4813_v39 = vpop.f32.mrf.mxu0 }
 0x2a1   : > { %v2133_v11 = vadd.f32 %v4813_v39, %v4826_v61 }
 0x2a2   : > { %v4815_v8 = vpop.f32.mrf.mxu0 }
 0x2a3   : > { %v2135_v26 = vadd.f32 %v4815_v8, %v4830_v55 }
 0x2a6   : > { %v4817_v36 = vpop.f32.mrf.mxu0 }
 0x2a8   : > { %v4822_v31 = vpop.f32.mrf.mxu0 }
 0x2a9   : > { %v2141_v39 = vadd.f32 %v4822_v31, %v4830_v55 }
 0x2aa   : > { %v4832_v5 = vpop.f32.mrf.mxu0 }
 0x2ac   : > { %v4836_v18 = vpop.f32.mrf.mxu0 }
 0x2ae   : > { %v4840_v15 = vpop.f32.mrf.mxu0 }
 0x2b0   : > { %v4845_v17 = vpop.f32.mrf.mxu0 }
 0x2b2   : > { %v4850_v3 = vpop.f32.mrf.mxu0 }
 0x2b4   : > { %v4855_v27 = vpop.f32.mrf.mxu0 }
 0x2b6   : > { %v2162_v21 = vpop.f32.mrf.mxu0 }
 0x2ed   : > { %v2257_v19 = vpop.f32.mrf.mxu1 }
 0x2ee   : > { %v2258_v2 = vadd.f32 %v2257_v19, %v2097_v32  ;;  %v2164_v32 = vpop.f32.mrf.mxu0 }
 0x2ef   : > { %v2259_v53 = vpop.f32.mrf.mxu1 }
 0x2f0   : > { %v2260_v35 = vadd.f32 %v2259_v53, %v2099_v38  ;;  %v2352_v0 = vmax.f32 %v2258_v2, 0.0  ;;  %v2139_v53 = vadd.f32 %v4817_v36, %v4826_v61  ;;  %v2147_v36 = vadd.f32 %v4836_v18, %v4830_v55 }
 0x2f1   : > { %v2263_v57 = vpop.f32.mrf.mxu1 }
 0x2f2   : > { %v2353_v37 = vmax.f32 %v2260_v35, 0.0  ;;  %v2264_v14 = vadd.f32 %v2263_v57, %v2103_v58  ;;  %v2168_v57 = vpop.f32.mrf.mxu0 }
 0x2f3   : > { %v2265_v23 = vpop.f32.mrf.mxu1 }
 0x2f4   : > { %v2266_v34 = vadd.f32 %v2265_v23, %v2105_v13  ;;  %2901 = vmatprep.mubr.msk.f32.mxu0 %vm2439_vm0, %v2353_v37  ;;  %v2354_v10 = vmax.f32 %v2264_v14, 0.0  ;;  %v2145_v14 = vadd.f32 %v4832_v5, %v4826_v61  ;;  %v2153_v5 = vadd.f32 %v4845_v17, %v4830_v55 }
 0x2f5   : > { %v2269_v4 = vpop.f32.mrf.mxu1  ;;  %2553 = vmatmul.mubr.f32.vlgmr.msra.gmra.mxu0 %v2352_v0 }
 0x2f6   : > { %v2355_v63 = vmax.f32 %v2266_v34, 0.0  ;;  %v2270_v25 = vadd.f32 %v2269_v4, %v2109_v59  ;;  %v2170_v59 = vpop.f32.mrf.mxu0 }
 0x2f7   : > { %v2271_v9 = vpop.f32.mrf.mxu1 }
 0x2f8   : > { %v2272_v52 = vadd.f32 %v2271_v9, %v2111_v60  ;;  %2902 = vmatprep.mubr.msk.f32.mxu0 %vm2439_vm0, %v2355_v63  ;;  %v2356_v56 = vmax.f32 %v2270_v25, 0.0 }
 0x2f9   : > { %v2275_v33 = vpop.f32.mrf.mxu1  ;;  %2558 = vmatmul.mubr.f32.gmra.mxu0 %v2354_v10  ;;  %v2151_v10 = vadd.f32 %v4840_v15, %v4826_v61  ;;  %v2159_v15 = vadd.f32 %v4855_v27, %v4830_v55 }
 0x2fa   : > { %v2357_v44 = vmax.f32 %v2272_v52, 0.0  ;;  %v2276_v12 = vadd.f32 %v2275_v33, %v2115_v16  ;;  %v2174_v52 = vpop.f32.mrf.mxu0 }
 0x2fb   : > { %v2277_v50 = vpop.f32.mrf.mxu1 }
 0x2fc   : > { %v2278_v54 = vadd.f32 %v2277_v50, %v2117_v1  ;;  %2903 = vmatprep.mubr.msk.f32.mxu0 %vm2439_vm0, %v2357_v44  ;;  %v2358_v41 = vmax.f32 %v2276_v12, 0.0  ;;  %v2157_v44 = vadd.f32 %v4850_v3, %v4826_v61  ;;  %v2176_v50 = vpop.f32.mrf.mxu0 }
 0x2fd   : > { %v2281_v6 = vpop.f32.mrf.mxu1  ;;  %2563 = vmatmul.mubr.f32.gmra.mxu0 %v2356_v56 }
 0x2fe   : > { %v2359_v43 = vmax.f32 %v2278_v54, 0.0  ;;  %v2282_v30 = vadd.f32 %v2281_v6, %v2121_v47 }
 0x2ff   : > { %v2283_v28 = vpop.f32.mrf.mxu1 }
 0x300   : > { %v2284_v62 = vadd.f32 %v2283_v28, %v2123_v22  ;;  %2904 = vmatprep.mubr.msk.f32.mxu0 %vm2439_vm0, %v2359_v43  ;;  %v2360_v48 = vmax.f32 %v2282_v30, 0.0  ;;  %v2163_v22 = vadd.f32 %v2162_v21, %v4826_v61  ;;  %v2180_v30 = vpop.f32.mrf.mxu0 }
 0x301   : > { %v2287_v29 = vpop.f32.mrf.mxu1  ;;  %2568 = vmatmul.mubr.f32.gmra.mxu0 %v2358_v41  ;;  %v2165_v41 = vadd.f32 %v2164_v32, %v4830_v55 }
 0x302   : > { %v2361_v20 = vmax.f32 %v2284_v62, 0.0  ;;  %v2288_v42 = vadd.f32 %v2287_v29, %v2127_v7  ;;  %v2169_v29 = vadd.f32 %v2168_v57, %v4826_v61  ;;  %v2182_v21 = vpop.f32.mrf.mxu0 }
 0x303   : > { %v2289_v49 = vpop.f32.mrf.mxu1 }
 0x304   : > { %v2290_v24 = vadd.f32 %v2289_v49, %v2129_v40  ;;  %2905 = vmatprep.mubr.msk.f32.mxu0 %vm2439_vm0, %v2361_v20  ;;  %v2362_v19 = vmax.f32 %v2288_v42, 0.0  ;;  %v2171_v20 = vadd.f32 %v2170_v59, %v4830_v55 }
 0x305   : > { %v2293_v46 = vpop.f32.mrf.mxu1  ;;  %2573 = vmatmul.mubr.f32.gmra.mxu0 %v2360_v48 }
 0x306   : > { %v2363_v45 = vmax.f32 %v2290_v24, 0.0  ;;  %v2294_v51 = vadd.f32 %v2293_v46, %v2133_v11  ;;  %v2175_v46 = vadd.f32 %v2174_v52, %v4826_v61 }
 0x307   : > { %v2295_v38 = vpop.f32.mrf.mxu1 }
 0x308   : > { %v2296_v2 = vadd.f32 %v2295_v38, %v2135_v26  ;;  %2906 = vmatprep.mubr.msk.f32.mxu0 %vm2439_vm0, %v2363_v45  ;;  %v2364_v13 = vmax.f32 %v2294_v51, 0.0  ;;  %v2177_v45 = vadd.f32 %v2176_v50, %v4830_v55 }
 0x309   : > { %v2299_v35 = vpop.f32.mrf.mxu1  ;;  %2578 = vmatmul.mubr.f32.gmra.mxu0 %v2362_v19  ;;  %v2186_v19 = vpop.f32.mrf.mxu0 }
 0x30a   : > { %v2365_v58 = vmax.f32 %v2296_v2, 0.0  ;;  %v2300_v8 = vadd.f32 %v2299_v35, %v2139_v53  ;;  %v2181_v35 = vadd.f32 %v2180_v30, %v4826_v61 }
 0x30b   : > { %v2301_v37 = vpop.f32.mrf.mxu1 }
 0x30c   : > { %v2302_v0 = vadd.f32 %v2301_v37, %v2141_v39  ;;  %2907 = vmatprep.mubr.msk.f32.mxu0 %vm2439_vm0, %v2365_v58  ;;  %v2366_v4 = vmax.f32 %v2300_v8, 0.0  ;;  %v2183_v58 = vadd.f32 %v2182_v21, %v4830_v55 }
 0x30d   : > { %v2305_v23 = vpop.f32.mrf.mxu1  ;;  %2583 = vmatmul.mubr.f32.gmra.mxu0 %v2364_v13  ;;  %v2188_v13 = vpop.f32.mrf.mxu0 }
 0x30e   : > { %v2367_v34 = vmax.f32 %v2302_v0, 0.0  ;;  %v2306_v31 = vadd.f32 %v2305_v23, %v2145_v14  ;;  %v2187_v23 = vadd.f32 %v2186_v19, %v4826_v61  ;;  %v2900_v61 = vld [vmem:[%s5109_s6] ss:$0 sm:$0xff] }
 0x30f   : > { %v2307_v60 = vpop.f32.mrf.mxu1 }
 0x310   : > { %v2308_v63 = vadd.f32 %v2307_v60, %v2147_v36  ;;  %2908 = vmatprep.mubr.msk.f32.mxu0 %vm2439_vm0, %v2367_v34  ;;  %v2368_v16 = vmax.f32 %v2306_v31, 0.0  ;;  %v2189_v34 = vadd.f32 %v2188_v13, %v4830_v55 }
 0x311   : > { %v2311_v25 = vpop.f32.mrf.mxu1  ;;  %2588 = vmatmul.mubr.f32.gmra.mxu0 %v2366_v4 }
 0x312   : > { %v2369_v9 = vmax.f32 %v2308_v63, 0.0  ;;  %v2312_v18 = vadd.f32 %v2311_v25, %v2151_v10 }
 0x313   : > { %v2313_v33 = vpop.f32.mrf.mxu1 }
 0x314   : > { %v2314_v1 = vadd.f32 %v2313_v33, %v2153_v5  ;;  %2909 = vmatprep.mubr.msk.f32.mxu0 %vm2439_vm0, %v2369_v9  ;;  %v2370_v54 = vmax.f32 %v2312_v18, 0.0 }
 0x315   : > { %v2317_v56 = vpop.f32.mrf.mxu1  ;;  %2593 = vmatmul.mubr.f32.gmra.mxu0 %v2368_v16 }
 0x316   : > { %v2371_v12 = vmax.f32 %v2314_v1, 0.0  ;;  %v2318_v17 = vadd.f32 %v2317_v56, %v2157_v44 }
 0x317   : > { %v2319_v47 = vpop.f32.mrf.mxu1 }
 0x318   : > { %v2320_v6 = vadd.f32 %v2319_v47, %v2159_v15  ;;  %2910 = vmatprep.mubr.msk.f32.mxu0 %vm2439_vm0, %v2371_v12  ;;  %v2372_v28 = vmax.f32 %v2318_v17, 0.0 }
 0x319   : > { %v2323_v43 = vpop.f32.mrf.mxu1  ;;  %2598 = vmatmul.mubr.f32.gmra.mxu0 %v2370_v54 }
 0x31a   : > { %v2373_v3 = vmax.f32 %v2320_v6, 0.0  ;;  %v2324_v62 = vadd.f32 %v2323_v43, %v2163_v22 }
 0x31b   : > { %v2325_v7 = vpop.f32.mrf.mxu1 }
 0x31c   : > { %v2326_v27 = vadd.f32 %v2325_v7, %v2165_v41  ;;  %2911 = vmatprep.mubr.msk.f32.mxu0 %vm2439_vm0, %v2373_v3  ;;  %v2374_v42 = vmax.f32 %v2324_v62, 0.0 }
 0x31d   : > { %v2329_v40 = vpop.f32.mrf.mxu1  ;;  %2603 = vmatmul.mubr.f32.gmra.mxu0 %v2372_v28 }
 0x31e   : > { %v2375_v48 = vmax.f32 %v2326_v27, 0.0  ;;  %v2330_v49 = vadd.f32 %v2329_v40, %v2169_v29 }
 0x31f   : > { %v2331_v24 = vpop.f32.mrf.mxu1 }
 0x320   : > { %v2332_v11 = vadd.f32 %v2331_v24, %v2171_v20  ;;  %2912 = vmatprep.mubr.msk.f32.mxu0 %vm2439_vm0, %v2375_v48  ;;  %v2376_v51 = vmax.f32 %v2330_v49, 0.0 }
 0x321   : > { %v2335_v26 = vpop.f32.mrf.mxu1  ;;  %2608 = vmatmul.mubr.f32.gmra.mxu0 %v2374_v42 }
 0x322   : > { %v2377_v32 = vmax.f32 %v2332_v11, 0.0  ;;  %v2336_v38 = vadd.f32 %v2335_v26, %v2175_v46 }
 0x323   : > { %v2337_v2 = vpop.f32.mrf.mxu1 }
 0x324   : > { %v2338_v53 = vadd.f32 %v2337_v2, %v2177_v45  ;;  %2913 = vmatprep.mubr.msk.f32.mxu0 %vm2439_vm0, %v2377_v32  ;;  %v2378_v8 = vmax.f32 %v2336_v38, 0.0 }
 0x325   : > { %v2341_v39 = vpop.f32.mrf.mxu1  ;;  %2613 = vmatmul.mubr.f32.gmra.mxu0 %v2376_v51 }
 0x326   : > { %v2379_v57 = vmax.f32 %v2338_v53, 0.0  ;;  %v2342_v37 = vadd.f32 %v2341_v39, %v2181_v35 }
 0x327   : > { %v2343_v0 = vpop.f32.mrf.mxu1 }
 0x328   : > { %v2344_v14 = vadd.f32 %v2343_v0, %v2183_v58  ;;  %2914 = vmatprep.mubr.msk.f32.mxu0 %vm2439_vm0, %v2379_v57  ;;  %v2380_v4 = vmax.f32 %v2342_v37, 0.0 }
 0x329   : > { %v2347_v36 = vpop.f32.mrf.mxu1  ;;  %2618 = vmatmul.mubr.f32.gmra.mxu0 %v2378_v8 }
 0x32a   : > { %v2381_v59 = vmax.f32 %v2344_v14, 0.0  ;;  %v2348_v31 = vadd.f32 %v2347_v36, %v2187_v23 }
 0x32b   : > { %v2349_v60 = vpop.f32.mrf.mxu1 }
 0x32c   : > { %v2350_v63 = vadd.f32 %v2349_v60, %v2189_v34  ;;  %2915 = vmatprep.mubr.msk.f32.mxu0 %vm2439_vm0, %v2381_v59  ;;  %v2382_v25 = vmax.f32 %v2348_v31, 0.0 }
 0x32d   : > { %2623 = vmatmul.mubr.f32.gmra.mxu0 %v2380_v4 }
 0x32e   : > { %v2383_v10 = vmax.f32 %v2350_v63, 0.0 }
 0x330   : > { %2916 = vmatprep.mubr.msk.f32.mxu0 %vm2439_vm0, %v2383_v10 }
 0x331   : > { %2628 = vmatmul.mubr.f32.gmra.mxu0 %v2382_v25 }
 0x3b5   : > { %v2554_v5 = vpop.f32.mrf.mxu0 }
 0x3b6   : > { %v4906_v9 = vadd.f32 %v2900_v61, %v2554_v5 }
 0x3b7   : > { %v2556_v55 = vpop.f32.mrf.mxu0 }
 0x3b8   : > { %2633 = vmax.xlane.f32.xlu0 %v4906_v9 }
 0x3b9   : > { %v2559_v52 = vpop.f32.mrf.mxu0 }
 0x3ba   : > { %v4909_v16 = vadd.f32 %v2900_v61, %v2559_v52 }
 0x3bb   : > { %v2561_v18 = vpop.f32.mrf.mxu0 }
 0x3bc   : > { %2635 = vmax.xlane.f32.xlu0 %v4909_v16 }
 0x3bd   : > { %v2564_v33 = vpop.f32.mrf.mxu0 }
 0x3be   : > { %v4912_v1 = vadd.f32 %v2900_v61, %v2564_v33 }
 0x3bf   : > { %v2566_v44 = vpop.f32.mrf.mxu0 }
 0x3c0   : > { %2637 = vmax.xlane.f32.xlu1 %v4912_v1 }
 0x3c1   : > { %v2569_v56 = vpop.f32.mrf.mxu0 }
 0x3c2   : > { %v4915_v15 = vadd.f32 %v2900_v61, %v2569_v56 }
 0x3c3   : > { %v2571_v12 = vpop.f32.mrf.mxu0 }
 0x3c4   : > { %2639 = vmax.xlane.f32.xlu1 %v4915_v15 }
 0x3c5   : > { %v2574_v50 = vpop.f32.mrf.mxu0 }
 0x3c6   : > { %v4918_v54 = vadd.f32 %v2900_v61, %v2574_v50 }
 0x3c7   : > { %v2576_v17 = vpop.f32.mrf.mxu0 }
 0x3c8   : > { %2641 = vmax.xlane.f32.xlu0 %v4918_v54 }
 0x3c9   : > { %v2579_v47 = vpop.f32.mrf.mxu0 }
 0x3ca   : > { %v4921_v6 = vadd.f32 %v2900_v61, %v2579_v47 }
 0x3cb   : > { %v2581_v22 = vpop.f32.mrf.mxu0 }
 0x3cc   : > { %2643 = vmax.xlane.f32.xlu1 %v4921_v6 }
 0x3cd   : > { %v2584_v43 = vpop.f32.mrf.mxu0 }
 0x3ce   : > { %v4924_v41 = vadd.f32 %v2900_v61, %v2584_v43 }
 0x3cf   : > { %v2586_v3 = vpop.f32.mrf.mxu0 }
 0x3d0   : > { %2645 = vmax.xlane.f32.xlu0 %v4924_v41 }
 0x3d1   : > { %v2589_v30 = vpop.f32.mrf.mxu0 }
 0x3d2   : > { %v4927_v28 = vadd.f32 %v2900_v61, %v2589_v30 }
 0x3d3   : > { %v2591_v62 = vpop.f32.mrf.mxu0 }
 0x3d4   : > { %2647 = vmax.xlane.f32.xlu1 %v4927_v28 }
 0x3d5   : > { %v2594_v7 = vpop.f32.mrf.mxu0 }
 0x3d6   : > { %v4930_v27 = vadd.f32 %v2900_v61, %v2594_v7 }
 0x3d7   : > { %v2596_v29 = vpop.f32.mrf.mxu0 }
 0x3d8   : > { %2649 = vmax.xlane.f32.xlu0 %v4930_v27 }
 0x3d9   : > { %v2599_v40 = vpop.f32.mrf.mxu0 }
 0x3da   : > { %v4933_v20 = vadd.f32 %v2900_v61, %v2599_v40 }
 0x3db   : > { %v2601_v48 = vpop.f32.mrf.mxu0 }
 0x3dc   : > { %2651 = vmax.xlane.f32.xlu1 %v4933_v20 }
 0x3dd   : > { %v2604_v21 = vpop.f32.mrf.mxu0 }
 0x3de   : > { %v4936_v42 = vadd.f32 %v2900_v61, %v2604_v21 }
 0x3df   : > { %v2606_v49 = vpop.f32.mrf.mxu0 }
 0x3e0   : > { %2653 = vmax.xlane.f32.xlu0 %v4936_v42 }
 0x3e1   : > { %v2609_v24 = vpop.f32.mrf.mxu0 }
 0x3e2   : > { %v4939_v11 = vadd.f32 %v2900_v61, %v2609_v24 }
 0x3e3   : > { %v2611_v46 = vpop.f32.mrf.mxu0 }
 0x3e4   : > { %2655 = vmax.xlane.f32.xlu1 %v4939_v11 }
 0x3e5   : > { %v2614_v26 = vpop.f32.mrf.mxu0 }
 0x3e6   : > { %v4942_v45 = vadd.f32 %v2900_v61, %v2614_v26 }
 0x3e7   : > { %v2616_v32 = vpop.f32.mrf.mxu0 }
 0x3e8   : > { %2657 = vmax.xlane.f32.xlu0 %v4942_v45 }
 0x3e9   : > { %v2619_v19 = vpop.f32.mrf.mxu0 }
 0x3ea   : > { %v4945_v51 = vadd.f32 %v2900_v61, %v2619_v19 }
 0x3eb   : > { %v2621_v38 = vpop.f32.mrf.mxu0 }
 0x3ec   : > { %2659 = vmax.xlane.f32.xlu1 %v4945_v51 }
 0x3ed   : > { %v2624_v2 = vpop.f32.mrf.mxu0 }
 0x3ee   : > { %v4948_v53 = vadd.f32 %v2900_v61, %v2624_v2 }
 0x3ef   : > { %v2626_v35 = vpop.f32.mrf.mxu0 }
 0x3f0   : > { %2661 = vmax.xlane.f32.xlu0 %v4948_v53 }
 0x3f1   : > { %v2629_v39 = vpop.f32.mrf.mxu0 }
 0x3f2   : > { %v4951_v58 = vadd.f32 %v2900_v61, %v2629_v39 }
 0x3f3   : > { %v2631_v57 = vpop.f32.mrf.mxu0 }
 0x3f4   : > { %2663 = vmax.xlane.f32.xlu1 %v4951_v58 }
 0x441   : > { %v2634_v13 = vpop.xlane.xlu0 %2633 }
 0x442   : > { %v2665_v8 = vsub.f32 %v4906_v9, %v2634_v13 }
 0x444   : > { %v2681_v37 = vmul.f32 1.442695, %v2665_v8 }
 0x445   : > { %v2636_v0 = vpop.xlane.xlu0 %2635 }
 0x446   : > { %3353 = vpow2.f32 %v2681_v37  ;;  %v2666_v14 = vsub.f32 %v4909_v16, %v2636_v0 }
 0x448   : > { %v2683_v23 = vmul.f32 1.442695, %v2666_v14 }
 0x449   : > { %v2638_v36 = vpop.xlane.xlu1 %2637 }
 0x44a   : > { %3355 = vpow2.f32 %v2683_v23  ;;  %v2667_v34 = vsub.f32 %v4912_v1, %v2638_v36 }
 0x44c   : > { %v2685_v59 = vmul.f32 1.442695, %v2667_v34 }
 0x44d   : > { %v2640_v4 = vpop.xlane.xlu1 %2639 }
 0x44e   : > { %3357 = vpow2.f32 %v2685_v59  ;;  %v2668_v31 = vsub.f32 %v4915_v15, %v2640_v4 }
 0x450   : > { %v2687_v60 = vmul.f32 1.442695, %v2668_v31 }
 0x451   : > { %v2642_v63 = vpop.xlane.xlu0 %2641 }
 0x452   : > { %3359 = vpow2.f32 %v2687_v60  ;;  %v2669_v10 = vsub.f32 %v4918_v54, %v2642_v63 }
 0x453   : > { %v4959_v25 = vpop.eup %3353 }
 0x454   : > { %v2689_v61 = vmul.f32 1.442695, %v2669_v10  ;;  %2713 = vadd.xlane.f32.xlu0 %v4959_v25 }
 0x455   : > { %v2644_v5 = vpop.xlane.xlu1 %2643 }
 0x456   : > { %3361 = vpow2.f32 %v2689_v61  ;;  %v2670_v9 = vsub.f32 %v4921_v6, %v2644_v5 }
 0x457   : > { %v4963_v55 = vpop.eup %3355 }
 0x458   : > { %v2691_v52 = vmul.f32 1.442695, %v2670_v9  ;;  %2715 = vadd.xlane.f32.xlu1 %v4963_v55 }
 0x459   : > { %v2646_v16 = vpop.xlane.xlu0 %2645 }
 0x45a   : > { %3363 = vpow2.f32 %v2691_v52  ;;  %v2671_v18 = vsub.f32 %v4924_v41, %v2646_v16 }
 0x45b   : > { %v4967_v33 = vpop.eup %3357 }
 0x45c   : > { %v2693_v1 = vmul.f32 1.442695, %v2671_v18  ;;  %2717 = vadd.xlane.f32.xlu0 %v4967_v33 }
 0x45d   : > { %v2648_v44 = vpop.xlane.xlu1 %2647 }
 0x45e   : > { %3365 = vpow2.f32 %v2693_v1  ;;  %v2672_v56 = vsub.f32 %v4927_v28, %v2648_v44 }
 0x45f   : > { %v4971_v15 = vpop.eup %3359 }
 0x460   : > { %v2695_v12 = vmul.f32 1.442695, %v2672_v56  ;;  %2719 = vadd.xlane.f32.xlu1 %v4971_v15 }
 0x461   : > { %v2650_v50 = vpop.xlane.xlu0 %2649 }
 0x462   : > { %3367 = vpow2.f32 %v2695_v12  ;;  %v2673_v54 = vsub.f32 %v4930_v27, %v2650_v50 }
 0x463   : > { %v4975_v17 = vpop.eup %3361 }
 0x464   : > { %v2697_v47 = vmul.f32 1.442695, %v2673_v54  ;;  %2721 = vadd.xlane.f32.xlu0 %v4975_v17 }
 0x465   : > { %v2652_v6 = vpop.xlane.xlu1 %2651 }
 0x466   : > { %3369 = vpow2.f32 %v2697_v47  ;;  %v2674_v22 = vsub.f32 %v4933_v20, %v2652_v6 }
 0x467   : > { %v4979_v43 = vpop.eup %3363 }
 0x468   : > { %v2699_v41 = vmul.f32 1.442695, %v2674_v22  ;;  %2723 = vadd.xlane.f32.xlu1 %v4979_v43 }
 0x469   : > { %v2654_v3 = vpop.xlane.xlu0 %2653 }
 0x46a   : > { %3371 = vpow2.f32 %v2699_v41  ;;  %v2675_v30 = vsub.f32 %v4936_v42, %v2654_v3 }
 0x46b   : > { %v4983_v28 = vpop.eup %3365 }
 0x46c   : > { %v2701_v62 = vmul.f32 1.442695, %v2675_v30  ;;  %2725 = vadd.xlane.f32.xlu0 %v4983_v28 }
 0x46d   : > { %v2656_v7 = vpop.xlane.xlu1 %2655 }
 0x46e   : > { %3373 = vpow2.f32 %v2701_v62  ;;  %v2676_v27 = vsub.f32 %v4939_v11, %v2656_v7 }
 0x46f   : > { %v4987_v29 = vpop.eup %3367 }
 0x470   : > { %v2703_v40 = vmul.f32 1.442695, %v2676_v27  ;;  %2727 = vadd.xlane.f32.xlu1 %v4987_v29 }
 0x471   : > { %v2658_v20 = vpop.xlane.xlu0 %2657 }
 0x472   : > { %3375 = vpow2.f32 %v2703_v40  ;;  %v2677_v48 = vsub.f32 %v4942_v45, %v2658_v20 }
 0x473   : > { %v4991_v21 = vpop.eup %3369 }
 0x474   : > { %v2705_v42 = vmul.f32 1.442695, %v2677_v48  ;;  %2729 = vadd.xlane.f32.xlu0 %v4991_v21 }
 0x475   : > { %v2660_v49 = vpop.xlane.xlu1 %2659 }
 0x476   : > { %3377 = vpow2.f32 %v2705_v42  ;;  %v2678_v24 = vsub.f32 %v4945_v51, %v2660_v49 }
 0x477   : > { %v4995_v46 = vpop.eup %3371 }
 0x478   : > { %v2707_v11 = vmul.f32 1.442695, %v2678_v24  ;;  %2731 = vadd.xlane.f32.xlu1 %v4995_v46 }
 0x479   : > { %v2662_v26 = vpop.xlane.xlu0 %2661 }
 0x47a   : > { %3379 = vpow2.f32 %v2707_v11  ;;  %v2679_v32 = vsub.f32 %v4948_v53, %v2662_v26 }
 0x47b   : > { %v4999_v19 = vpop.eup %3373 }
 0x47c   : > { %v2709_v45 = vmul.f32 1.442695, %v2679_v32  ;;  %2733 = vadd.xlane.f32.xlu0 %v4999_v19 }
 0x47d   : > { %v2664_v38 = vpop.xlane.xlu1 %2663 }
 0x47e   : > { %3381 = vpow2.f32 %v2709_v45  ;;  %v2680_v2 = vsub.f32 %v4951_v58, %v2664_v38 }
 0x47f   : > { %v5003_v35 = vpop.eup %3375 }
 0x480   : > { %v2711_v51 = vmul.f32 1.442695, %v2680_v2  ;;  %2735 = vadd.xlane.f32.xlu1 %v5003_v35 }
 0x482   : > { %3383 = vpow2.f32 %v2711_v51 }
 0x483   : > { %v5006_v39 = vpop.eup %3377 }
 0x484   : > { %2737 = vadd.xlane.f32.xlu0 %v5006_v39 }
 0x487   : > { %v5009_v53 = vpop.eup %3379 }
 0x488   : > { %2739 = vadd.xlane.f32.xlu1 %v5009_v53 }
 0x48b   : > { %v5012_v57 = vpop.eup %3381 }
 0x48c   : > { %2741 = vadd.xlane.f32.xlu0 %v5012_v57 }
 0x48f   : > { %v5015_v58 = vpop.eup %3383 }
 0x490   : > { %2743 = vadd.xlane.f32.xlu1 %v5015_v58 }
 0x4dd   : > { %v2714_v13 = vpop.xlane.xlu0 %2713 }
 0x4de   : > { %3385 = vrcp.f32 %v2714_v13 }
 0x4e1   : > { %v2716_v8 = vpop.xlane.xlu1 %2715 }
 0x4e2   : > { %3387 = vrcp.f32 %v2716_v8 }
 0x4e5   : > { %v2718_v37 = vpop.xlane.xlu0 %2717 }
 0x4e6   : > { %3389 = vrcp.f32 %v2718_v37 }
 0x4e9   : > { %v2720_v0 = vpop.xlane.xlu1 %2719 }
 0x4ea   : > { %3391 = vrcp.f32 %v2720_v0 }
 0x4eb   : > { %v3386_v14 = vpop.eup %3385 }
 0x4ec   : > { %v2761_v23 = vmul.f32 %v3386_v14, %v4959_v25 }
 0x4ed   : > { %v2722_v36 = vpop.xlane.xlu0 %2721 }
 0x4ee   : > { %2777 = vst [vmem:[%s5020_s14] sm:$0xff] %v2761_v23  ;;  %3393 = vrcp.f32 %v2722_v36 }
 0x4ef   : > { %v3388_v34 = vpop.eup %3387 }
 0x4f0   : > { %v2762_v59 = vmul.f32 %v3388_v34, %v4963_v55 }
 0x4f1   : > { %v2724_v4 = vpop.xlane.xlu1 %2723 }
 0x4f2   : > { %2778 = vst [vmem:[%s5020_s14 + $0x8] sm:$0xff] %v2762_v59  ;;  %3395 = vrcp.f32 %v2724_v4 }
 0x4f3   : > { %v3390_v31 = vpop.eup %3389 }
 0x4f4   : > { %v2763_v60 = vmul.f32 %v3390_v31, %v4967_v33 }
 0x4f5   : > { %v2726_v63 = vpop.xlane.xlu0 %2725 }
 0x4f6   : > { %2779 = vst [vmem:[%s5020_s14 + $0x10] sm:$0xff] %v2763_v60  ;;  %3397 = vrcp.f32 %v2726_v63 }
 0x4f7   : > { %v3392_v10 = vpop.eup %3391 }
 0x4f8   : > { %v2764_v25 = vmul.f32 %v3392_v10, %v4971_v15 }
 0x4f9   : > { %v2728_v61 = vpop.xlane.xlu1 %2727 }
 0x4fa   : > { %2780 = vst [vmem:[%s5020_s14 + $0x18] sm:$0xff] %v2764_v25  ;;  %3399 = vrcp.f32 %v2728_v61 }
 0x4fb   : > { %v3394_v5 = vpop.eup %3393 }
 0x4fc   : > { %v2765_v9 = vmul.f32 %v3394_v5, %v4975_v17 }
 0x4fd   : > { %v2730_v55 = vpop.xlane.xlu0 %2729 }
 0x4fe   : > { %2781 = vst [vmem:[%s5020_s14 + $0x20] sm:$0xff] %v2765_v9  ;;  %3401 = vrcp.f32 %v2730_v55 }
 0x4ff   : > { %v3396_v52 = vpop.eup %3395 }
 0x500   : > { %v2766_v16 = vmul.f32 %v3396_v52, %v4979_v43 }
 0x501   : > { %v2732_v18 = vpop.xlane.xlu1 %2731 }
 0x502   : > { %2782 = vst [vmem:[%s5020_s14 + $0x28] sm:$0xff] %v2766_v16  ;;  %3403 = vrcp.f32 %v2732_v18 }
 0x503   : > { %v3398_v33 = vpop.eup %3397 }
 0x504   : > { %v2767_v1 = vmul.f32 %v3398_v33, %v4983_v28 }
 0x505   : > { %v2734_v44 = vpop.xlane.xlu0 %2733 }
 0x506   : > { %2783 = vst [vmem:[%s5020_s14 + $0x30] sm:$0xff] %v2767_v1  ;;  %3405 = vrcp.f32 %v2734_v44 }
 0x507   : > { %v3400_v56 = vpop.eup %3399 }
 0x508   : > { %v2768_v15 = vmul.f32 %v3400_v56, %v4987_v29 }
 0x509   : > { %v2736_v12 = vpop.xlane.xlu1 %2735 }
 0x50a   : > { %2784 = vst [vmem:[%s5020_s14 + $0x38] sm:$0xff] %v2768_v15  ;;  %3407 = vrcp.f32 %v2736_v12 }
 0x50b   : > { %v3402_v50 = vpop.eup %3401 }
 0x50c   : > { %v2769_v54 = vmul.f32 %v3402_v50, %v4991_v21 }
 0x50d   : > { %v2738_v17 = vpop.xlane.xlu0 %2737 }
 0x50e   : > { %2785 = vst [vmem:[%s5020_s14 + $0x40] sm:$0xff] %v2769_v54  ;;  %3409 = vrcp.f32 %v2738_v17 }
 0x50f   : > { %v3404_v47 = vpop.eup %3403 }
 0x510   : > { %v2770_v6 = vmul.f32 %v3404_v47, %v4995_v46 }
 0x511   : > { %v2740_v22 = vpop.xlane.xlu1 %2739 }
 0x512   : > { %2786 = vst [vmem:[%s5020_s14 + $0x48] sm:$0xff] %v2770_v6  ;;  %3411 = vrcp.f32 %v2740_v22 }
 0x513   : > { %v3406_v43 = vpop.eup %3405 }
 0x514   : > { %v2771_v41 = vmul.f32 %v3406_v43, %v4999_v19 }
 0x515   : > { %v2742_v3 = vpop.xlane.xlu0 %2741 }
 0x516   : > { %2787 = vst [vmem:[%s5020_s14 + $0x50] sm:$0xff] %v2771_v41  ;;  %3413 = vrcp.f32 %v2742_v3 }
 0x517   : > { %v3408_v30 = vpop.eup %3407 }
 0x518   : > { %v2772_v28 = vmul.f32 %v3408_v30, %v5003_v35 }
 0x519   : > { %v2744_v62 = vpop.xlane.xlu1 %2743 }
 0x51a   : > { %2788 = vst [vmem:[%s5020_s14 + $0x58] sm:$0xff] %v2772_v28  ;;  %3415 = vrcp.f32 %v2744_v62 }
 0x51b   : > { %v3410_v7 = vpop.eup %3409 }
 0x51c   : > { %v2773_v27 = vmul.f32 %v3410_v7, %v5006_v39 }
 0x51e   : > { %2789 = vst [vmem:[%s5020_s14 + $0x60] sm:$0xff] %v2773_v27 }
 0x51f   : > { %v3412_v29 = vpop.eup %3411 }
 0x520   : > { %v2774_v40 = vmul.f32 %v3412_v29, %v5009_v53 }
 0x522   : > { %2790 = vst [vmem:[%s5020_s14 + $0x68] sm:$0xff] %v2774_v40 }
 0x523   : > { %v3414_v20 = vpop.eup %3413 }
 0x524   : > { %v2775_v48 = vmul.f32 %v3414_v20, %v5012_v57 }
 0x526   : > { %2791 = vst [vmem:[%s5020_s14 + $0x70] sm:$0xff] %v2775_v48 }
 0x527   : > { %v3416_v21 = vpop.eup %3415 }
 0x528   : > { %v2776_v42 = vmul.f32 %v3416_v21, %v5015_v58 }
 0x52a   : > { %2792 = vst [vmem:[%s5020_s14 + $0x78] sm:$0xff] %v2776_v42 }
 0x52b   : > { %3533 = shalt.err (!%p3530_p0)
}
 0x52c   : > { %s3534_s11 = scalar_lea.hbm %s5056_s12, 2048  ;;  %s3538_s10 = scalar_lea.hbm %s5110_s7, 4096 }
 0x52d   : > { %p3535_p5 = scmp.ne.s32.totalorder %s5056_s12, %s3534_s11  ;;  %p3539_p4 = scmp.lt.s32.totalorder %s5056_s12, %s5110_s7 }
 0x52e   : > { %p3540_p6 = scmp.lt.s32.totalorder %s3538_s10, %s3534_s11 }
 0x52f   : > { %p3536_p9 = pnand %p3535_p5, %p5177_p11 }
 0x530   : > { %p3541_p8 = por %p3540_p6, %p3539_p4 }
 0x531   : > { %p3537_p1 = pneg %p3536_p9 }
 0x533   : > { %p3542_p3 = pnand %p3541_p8, %p3537_p1 }
 0x535   : > { %3545 = shalt.err (!%p3542_p3)
}
 0x536   : > { %s3598_s23 = smov 128   ;;  %s3599_s18 = smov 8  }
 0x537   : > { %3295 = dma.vmem_to_hbm [thread:$0]  (%p5177_p11), %s5058_s1, 2048, %s5056_s12, %s2794_s16, %s3598_s23, %s3598_s23, %s3599_s18  }
 0x538 PF: > { %s2822_s30 = sand.u32 1, %s3576_s24   ;;  %p5178_p7 = scmp.ne.s32.totalorder %s5124_s8, 0 }
 0x539   : > { %p5179_p12 = scmp.ge.s32.totalorder %s3588_s27, 2  ;;  %s2823_s28 = scalar_lea.sflag [#allocation4], %s2822_s30 }
 0x53b   : > { %p3306_p10 = pnand %p5179_p12, %p5178_p7 }
 0x53d   : > { %p3307_p2 = pneg %p3306_p10 }
 0x53f   : > { %3571 = dma.done.wait (%p3307_p2), %s2823_s28, 2048  }
 0x540   : > { %3573 = vsyncadd (%p3307_p2), %s2823_s28, 4294965248  ;;  %p21_p13 = scmp.ge.s32.totalorder %s3694_s13, 4   ;;  %s5180_s24 = smov %s3580_s25 }
 0x541   : > { %s5181_s25 = smov %s3584_s26  ;;  %s5182_s26 = smov %s3711_s21 }
 0x542   : > { %s5183_s27 = smov %s3694_s13  ;;  %23 = sbr.rel (!%p21_p13) target bundleno = 8 (0x8), region = 97 }
 0x547   :  { %2828 = vsyncpa [#allocation3], 1 }
 0x548   :  { %2830 = vsyncpa [#allocation3 + $0x1], 1 }
 0x549   :  { %2831 = vsyncpa [#allocation6], 1 }
 0x54a   :  { %2832 = vsyncpa [#allocation4], 1 }
 0x54b   :  { %2834 = vsyncpa [#allocation4 + $0x1], 1 }

</bundles_post_ra>
